<compile_context>
chip_gen: v6e
topology: v6e:2x2x1
jax: 0.10.0
libtpu: 0.0.40
codegen_flags: <defaults>
</compile_context>

<pallas_src>
import jax
import jax.numpy as jnp
import numpy as np
from jax.experimental import pallas as pl
from jax.experimental.pallas import tpu as pltpu

BN_EPS = 1e-5


# --------------------------------------------------------------------------- forward
def input_transition_forward(params, x):
    n, cin, d, h, w = x.shape
    cout = params["w"].shape[0]
    rep = 16 // cin
    assert cout == 16 and cin * rep == 16, "InputTransition needs outChans==16, 16 % in_channels == 0"

    wq = w + 4                          # padded width (W halo)
    hq = h + 5                          # padded height (2,3): extra row keeps tap slices in bounds
    dq = d + 4                          # padded depth
    flat = hq * wq                      # flattened padded plane length
    mcols = h * wq                      # output cols per plane (q = r*wq + c); c >= w are junk
    nt = n * d                          # one (batch, depth) output plane per grid step
    kdim = 125 * cin                    # conv contraction size
    kpad = ((kdim + 255) // 256) * 256  # 256-aligned contraction (v6e/v7x MXU, also 128-aligned for v5e)
    krows = 5 * cin                     # patch rows contributed per (kh, kw) tap (all 5 depth taps)

    xf = x.astype(jnp.float32)

    # ---- JAX glue: layout prep (all O(input) sized, ~1 MB total) ----------------------
    xp = jnp.pad(xf, ((0, 0), (0, 0), (2, 2), (2, 3), (2, 2)))           # (n,cin,dq,hq,wq)
    xp = xp.reshape(n, cin, dq, flat)
    # depth-stacked slabs: row index = kd*cin + ci ; one contiguous (5*cin, flat) slab per plane
    stk = jnp.stack([xp[:, :, kd:kd + d, :] for kd in range(5)], axis=2)  # (n,cin,5,d,flat)
    xslab = stk.transpose(0, 3, 2, 1, 4).reshape(nt, 5 * cin, flat).astype(jnp.bfloat16)

    # weights: (Cout, Cin, kd, kh, kw) -> K order (kh, kw, kd, ci), zero-padded, bf16 MXU operand
    wmat = jnp.transpose(params["w"], (0, 3, 4, 2, 1)).reshape(cout, kdim)
    wmat = jnp.pad(wmat, ((0, 0), (0, kpad - kdim))).astype(jnp.bfloat16)

    # mask of valid output columns (junk columns come from the flattened W halo)
    col_mask = (jnp.arange(mcols) % wq < w).astype(jnp.float32)[None, :]

    # residual x16 = cat([x]*rep, dim=1): only Cin channels read from HBM; tiling done in kernel 2
    xr = jnp.pad(xf, ((0, 0), (0, 0), (0, 0), (0, 0), (0, wq - w)))
    xr = xr.transpose(0, 2, 1, 3, 4).reshape(nt, cin, mcols)

    cparams = pltpu.CompilerParams(
        dimension_semantics=("parallel",),          # shard planes across v7x's 2 TensorCores
        vmem_limit_bytes=32 * 1024 * 1024)          # explicit; fits all generations (v7x: 64 MiB phys)

    # ---- kernel 1: conv (tap-sliced matmul) + per-plane one-pass BN partial stats -----
    def conv_stats_kernel(w_ref, m_ref, s_ref, y_ref, st_ref, patch_ref):
        slab = s_ref[...].astype(jnp.float32)                  # (5*cin, flat)
        for kh in range(5):
            for kw in range(5):
                row = (kh * 5 + kw) * krows
                off = kh * wq + kw                             # contiguous lane-slice of the slab
                patch_ref[row:row + krows, :] = slab[:, off:off + mcols]
        # zero the K padding rows every step (scratch is per-core & persistent -> never
        # rely on program_id==0 under "parallel"); 0*garbage would otherwise risk NaN.
        patch_ref[kdim:, :] = jnp.zeros((kpad - kdim, mcols), jnp.float32)
        y = jnp.dot(w_ref[...], patch_ref[...].astype(jnp.bfloat16),
                    preferred_element_type=jnp.float32)        # (cout, mcols) f32 on the MXU
        y_ref[...] = y                                         # conv bias omitted: BN mean cancels it
        yv = y * m_ref[...]                                    # zero junk columns for the stats
        st_ref[...] = jnp.concatenate(
            [jnp.sum(yv, axis=1, keepdims=True),
             jnp.sum(yv * yv, axis=1, keepdims=True)], axis=1)  # (cout, 2): one-pass sum / sumsq

    y, st_partial = pl.pallas_call(
        conv_stats_kernel,
        grid=(nt,),
        in_specs=[pl.BlockSpec((cout, kpad), lambda t: (0, 0)),        # weights: resident
                  pl.BlockSpec((1, mcols), lambda t: (0, 0)),          # valid-column mask
                  pl.BlockSpec((None, 5 * cin, flat), lambda t: (t, 0, 0))],   # contiguous slab
        out_specs=(pl.BlockSpec((None, cout, mcols), lambda t: (t, 0, 0)),
                   pl.BlockSpec((None, cout, 2), lambda t: (t, 0, 0))),
        out_shape=(jax.ShapeDtypeStruct((nt, cout, mcols), jnp.float32),
                   jax.ShapeDtypeStruct((nt, cout, 2), jnp.float32)),
        scratch_shapes=[pltpu.VMEM((kpad, mcols), jnp.float32)],       # patch assembly buffer
        compiler_params=cparams,
    )(wmat, col_mask, xslab)

    # ---- tiny BN finalize in plain JAX ((Cout,)-sized -> fold BN into one FMA) --------
    stats = jnp.sum(st_partial, axis=0)                        # global batch stats (all planes)
    count = float(nt * h * w)
    mean = stats[:, 0] / count
    var = stats[:, 1] / count - mean * mean                    # biased var (PyTorch training BN)
    inv = jax.lax.rsqrt(var + BN_EPS)
    scale = (params["gamma"] * inv)[:, None]                   # (cout, 1)
    shift = (params["beta"] - mean * params["gamma"] * inv)[:, None]

    # ---- kernel 2: folded-BN FMA + residual cat([x]*rep, dim=1) + ELU, 8 planes/step ---
    dblk = max(b for b in (8, 4, 2, 1) if nt % b == 0)

    def bn_res_elu_kernel(y_ref, xr_ref, sc_ref, sh_ref, o_ref):
        z = y_ref[...] * sc_ref[...][None] + sh_ref[...][None]         # per-channel FMA
        z = z + jnp.concatenate([xr_ref[...]] * rep, axis=1)           # torch.cat([x]*rep, dim=1)
        o_ref[...] = jnp.where(z > 0, z, jnp.exp(jnp.minimum(z, 0.0)) - 1.0)   # ELU(alpha=1)

    out_flat = pl.pallas_call(
        bn_res_elu_kernel,
        grid=(nt // dblk,),
        in_specs=[pl.BlockSpec((dblk, cout, mcols), lambda t: (t, 0, 0)),
                  pl.BlockSpec((dblk, cin, mcols), lambda t: (t, 0, 0)),
                  pl.BlockSpec((cout, 1), lambda t: (0, 0)),
                  pl.BlockSpec((cout, 1), lambda t: (0, 0))],
        out_specs=pl.BlockSpec((dblk, cout, mcols), lambda t: (t, 0, 0)),
        out_shape=jax.ShapeDtypeStruct((nt, cout, mcols), jnp.float32),
        compiler_params=cparams,
    )(y, xr, scale, shift)

    # strip the junk halo columns and return NCDHW
    out = out_flat.reshape(n, d, cout, h, wq)[..., :w]
    return out.transpose(0, 2, 1, 3, 4)


# --------------------------------------------------------------------------- params
def init_params(key, in_channels, out_channels):
    k1, k2, k3, k4 = jax.random.split(key, 4)
    return {
        "w": 0.05 * jax.random.normal(k1, (out_channels, in_channels, 5, 5, 5), jnp.float32),
        "b": 0.1 * jax.random.normal(k2, (out_channels,), jnp.float32),
        "gamma": 1.0 + 0.1 * jax.random.normal(k3, (out_channels,), jnp.float32),
        "beta": 0.1 * jax.random.normal(k4, (out_channels,), jnp.float32),
    }


# --------------------------------------------------------------------------- pure-JAX reference
def reference_forward(params, x):
    y = jax.lax.conv_general_dilated(
        x.astype(jnp.float32), params["w"], window_strides=(1, 1, 1),
        padding=[(2, 2)] * 3, dimension_numbers=("NCDHW", "OIDHW", "NCDHW"),
        precision=jax.lax.Precision.HIGHEST)
    y = y + params["b"][None, :, None, None, None]
    mean = jnp.mean(y, axis=(0, 2, 3, 4), keepdims=True)
    var = jnp.mean(jnp.square(y - mean), axis=(0, 2, 3, 4), keepdims=True)
    z = (y - mean) * jax.lax.rsqrt(var + BN_EPS)
    z = z * params["gamma"][None, :, None, None, None] + params["beta"][None, :, None, None, None]
    x16 = jnp.concatenate([x] * (16 // x.shape[1]), axis=1)
    z = z + x16
    return jnp.where(z > 0, z, jnp.expm1(z))


# --------------------------------------------------------------------------- main
if __name__ == "__main__":
    key = jax.random.PRNGKey(0)
    kx, kp = jax.random.split(key)

    N, CIN, D, H, W = 2, 4, 16, 16, 16     # in_channels=4, outChans=16 (required by the residual cat)
    COUT = 16

    x = jax.random.normal(kx, (N, CIN, D, H, W), jnp.float32)
    params = init_params(kp, CIN, COUT)

    fwd = jax.jit(input_transition_forward)
    out = jax.block_until_ready(fwd(params, x))
    assert out.shape == (N, COUT, D, H, W), out.shape

    ref = jax.block_until_ready(reference_forward(params, x))
    # bf16 MXU operands with f32 accumulation -> few-1e-3 absolute error on the BN-normalized,
    # O(1)-scale output; 3e-2 gives comfortable headroom.
    np.testing.assert_allclose(np.asarray(out), np.asarray(ref), rtol=3e-2, atol=3e-2)

    print("KERNEL_OK")
</pallas_src>

<mosaic_0001>
module attributes {stable_mosaic.version = 11 : i64} {
  func.func @conv_stats_kernel(%arg0: i32, %arg1: memref<16x512xbf16, #tpu.memory_space<vmem>>, %arg2: memref<1x320xf32, #tpu.memory_space<vmem>>, %arg3: memref<1x20x420xbf16, #tpu.memory_space<vmem>>, %arg4: memref<1x16x320xf32, #tpu.memory_space<vmem>>, %arg5: memref<1x16x2xf32, #tpu.memory_space<vmem>>, %arg6: memref<512x320xf32, #tpu.memory_space<vmem>>) attributes {dimension_semantics = [#tpu.dimension_semantics<parallel>], iteration_bounds = array<i64: 32>, scalar_prefetch = 0 : i64, scratch_operands = 1 : i64, tpu.core_type = #tpu.core_type<tc>, window_params = [{pipeline_mode = #tpu.pipeline_mode<synchronous>, transform_indices = @transform_0, window_bounds = array<i64: 16, 512>}, {pipeline_mode = #tpu.pipeline_mode<synchronous>, transform_indices = @transform_1, window_bounds = array<i64: 1, 320>}, {transform_indices = @transform_2, window_bounds = array<i64: 1, 20, 420>}, {transform_indices = @transform_3, window_bounds = array<i64: 1, 16, 320>}, {transform_indices = @transform_4, window_bounds = array<i64: 1, 16, 2>}]} {
    %c0 = arith.constant 0 : index
    %c0_0 = arith.constant 0 : index
    %c0_1 = arith.constant 0 : index
    %0 = vector.load %arg3[%c0, %c0_0, %c0_1] : memref<1x20x420xbf16, #tpu.memory_space<vmem>>, vector<1x20x420xbf16>
    %1 = vector.shape_cast %0 : vector<1x20x420xbf16> to vector<20x420xbf16>
    %2 = arith.extf %1 : vector<20x420xbf16> to vector<20x420xf32>
    %3 = vector.extract_strided_slice %2 {offsets = [0, 0], sizes = [20, 320], strides = [1, 1]} : vector<20x420xf32> to vector<20x320xf32>
    %c0_2 = arith.constant 0 : index
    %c0_3 = arith.constant 0 : index
    %4 = vector.load %arg6[%c0_2, %c0_3] : memref<512x320xf32, #tpu.memory_space<vmem>>, vector<20x320xf32>
    tpu.vector_store %arg6[%c0_2, %c0_3], %3 {strides = array<i32>} : memref<512x320xf32, #tpu.memory_space<vmem>>, vector<20x320xf32>,
    %5 = vector.extract_strided_slice %2 {offsets = [0, 1], sizes = [20, 320], strides = [1, 1]} : vector<20x420xf32> to vector<20x320xf32>
    %c20 = arith.constant 20 : index
    %c0_4 = arith.constant 0 : index
    %6 = vector.load %arg6[%c20, %c0_4] : memref<512x320xf32, #tpu.memory_space<vmem>>, vector<20x320xf32>
    tpu.vector_store %arg6[%c20, %c0_4], %5 {strides = array<i32>} : memref<512x320xf32, #tpu.memory_space<vmem>>, vector<20x320xf32>,
    %7 = vector.extract_strided_slice %2 {offsets = [0, 2], sizes = [20, 320], strides = [1, 1]} : vector<20x420xf32> to vector<20x320xf32>
    %c40 = arith.constant 40 : index
    %c0_5 = arith.constant 0 : index
    %8 = vector.load %arg6[%c40, %c0_5] : memref<512x320xf32, #tpu.memory_space<vmem>>, vector<20x320xf32>
    tpu.vector_store %arg6[%c40, %c0_5], %7 {strides = array<i32>} : memref<512x320xf32, #tpu.memory_space<vmem>>, vector<20x320xf32>,
    %9 = vector.extract_strided_slice %2 {offsets = [0, 3], sizes = [20, 320], strides = [1, 1]} : vector<20x420xf32> to vector<20x320xf32>
    %c60 = arith.constant 60 : index
    %c0_6 = arith.constant 0 : index
    %10 = vector.load %arg6[%c60, %c0_6] : memref<512x320xf32, #tpu.memory_space<vmem>>, vector<20x320xf32>
    tpu.vector_store %arg6[%c60, %c0_6], %9 {strides = array<i32>} : memref<512x320xf32, #tpu.memory_space<vmem>>, vector<20x320xf32>,
    %11 = vector.extract_strided_slice %2 {offsets = [0, 4], sizes = [20, 320], strides = [1, 1]} : vector<20x420xf32> to vector<20x320xf32>
    %c80 = arith.constant 80 : index
    %c0_7 = arith.constant 0 : index
    %12 = vector.load %arg6[%c80, %c0_7] : memref<512x320xf32, #tpu.memory_space<vmem>>, vector<20x320xf32>
    tpu.vector_store %arg6[%c80, %c0_7], %11 {strides = array<i32>} : memref<512x320xf32, #tpu.memory_space<vmem>>, vector<20x320xf32>,
    %13 = vector.extract_strided_slice %2 {offsets = [0, 20], sizes = [20, 320], strides = [1, 1]} : vector<20x420xf32> to vector<20x320xf32>
    %c100 = arith.constant 100 : index
    %c0_8 = arith.constant 0 : index
    %14 = vector.load %arg6[%c100, %c0_8] : memref<512x320xf32, #tpu.memory_space<vmem>>, vector<20x320xf32>
    tpu.vector_store %arg6[%c100, %c0_8], %13 {strides = array<i32>} : memref<512x320xf32, #tpu.memory_space<vmem>>, vector<20x320xf32>,
    %15 = vector.extract_strided_slice %2 {offsets = [0, 21], sizes = [20, 320], strides = [1, 1]} : vector<20x420xf32> to vector<20x320xf32>
    %c120 = arith.constant 120 : index
    %c0_9 = arith.constant 0 : index
    %16 = vector.load %arg6[%c120, %c0_9] : memref<512x320xf32, #tpu.memory_space<vmem>>, vector<20x320xf32>
    tpu.vector_store %arg6[%c120, %c0_9], %15 {strides = array<i32>} : memref<512x320xf32, #tpu.memory_space<vmem>>, vector<20x320xf32>,
    %17 = vector.extract_strided_slice %2 {offsets = [0, 22], sizes = [20, 320], strides = [1, 1]} : vector<20x420xf32> to vector<20x320xf32>
    %c140 = arith.constant 140 : index
    %c0_10 = arith.constant 0 : index
    %18 = vector.load %arg6[%c140, %c0_10] : memref<512x320xf32, #tpu.memory_space<vmem>>, vector<20x320xf32>
    tpu.vector_store %arg6[%c140, %c0_10], %17 {strides = array<i32>} : memref<512x320xf32, #tpu.memory_space<vmem>>, vector<20x320xf32>,
    %19 = vector.extract_strided_slice %2 {offsets = [0, 23], sizes = [20, 320], strides = [1, 1]} : vector<20x420xf32> to vector<20x320xf32>
    %c160 = arith.constant 160 : index
    %c0_11 = arith.constant 0 : index
    %20 = vector.load %arg6[%c160, %c0_11] : memref<512x320xf32, #tpu.memory_space<vmem>>, vector<20x320xf32>
    tpu.vector_store %arg6[%c160, %c0_11], %19 {strides = array<i32>} : memref<512x320xf32, #tpu.memory_space<vmem>>, vector<20x320xf32>,
    %21 = vector.extract_strided_slice %2 {offsets = [0, 24], sizes = [20, 320], strides = [1, 1]} : vector<20x420xf32> to vector<20x320xf32>
    %c180 = arith.constant 180 : index
    %c0_12 = arith.constant 0 : index
    %22 = vector.load %arg6[%c180, %c0_12] : memref<512x320xf32, #tpu.memory_space<vmem>>, vector<20x320xf32>
    tpu.vector_store %arg6[%c180, %c0_12], %21 {strides = array<i32>} : memref<512x320xf32, #tpu.memory_space<vmem>>, vector<20x320xf32>,
    %23 = vector.extract_strided_slice %2 {offsets = [0, 40], sizes = [20, 320], strides = [1, 1]} : vector<20x420xf32> to vector<20x320xf32>
    %c200 = arith.constant 200 : index
    %c0_13 = arith.constant 0 : index
    %24 = vector.load %arg6[%c200, %c0_13] : memref<512x320xf32, #tpu.memory_space<vmem>>, vector<20x320xf32>
    tpu.vector_store %arg6[%c200, %c0_13], %23 {strides = array<i32>} : memref<512x320xf32, #tpu.memory_space<vmem>>, vector<20x320xf32>,
    %25 = vector.extract_strided_slice %2 {offsets = [0, 41], sizes = [20, 320], strides = [1, 1]} : vector<20x420xf32> to vector<20x320xf32>
    %c220 = arith.constant 220 : index
    %c0_14 = arith.constant 0 : index
    %26 = vector.load %arg6[%c220, %c0_14] : memref<512x320xf32, #tpu.memory_space<vmem>>, vector<20x320xf32>
    tpu.vector_store %arg6[%c220, %c0_14], %25 {strides = array<i32>} : memref<512x320xf32, #tpu.memory_space<vmem>>, vector<20x320xf32>,
    %27 = vector.extract_strided_slice %2 {offsets = [0, 42], sizes = [20, 320], strides = [1, 1]} : vector<20x420xf32> to vector<20x320xf32>
    %c240 = arith.constant 240 : index
    %c0_15 = arith.constant 0 : index
    %28 = vector.load %arg6[%c240, %c0_15] : memref<512x320xf32, #tpu.memory_space<vmem>>, vector<20x320xf32>
    tpu.vector_store %arg6[%c240, %c0_15], %27 {strides = array<i32>} : memref<512x320xf32, #tpu.memory_space<vmem>>, vector<20x320xf32>,
    %29 = vector.extract_strided_slice %2 {offsets = [0, 43], sizes = [20, 320], strides = [1, 1]} : vector<20x420xf32> to vector<20x320xf32>
    %c260 = arith.constant 260 : index
    %c0_16 = arith.constant 0 : index
    %30 = vector.load %arg6[%c260, %c0_16] : memref<512x320xf32, #tpu.memory_space<vmem>>, vector<20x320xf32>
    tpu.vector_store %arg6[%c260, %c0_16], %29 {strides = array<i32>} : memref<512x320xf32, #tpu.memory_space<vmem>>, vector<20x320xf32>,
    %31 = vector.extract_strided_slice %2 {offsets = [0, 44], sizes = [20, 320], strides = [1, 1]} : vector<20x420xf32> to vector<20x320xf32>
    %c280 = arith.constant 280 : index
    %c0_17 = arith.constant 0 : index
    %32 = vector.load %arg6[%c280, %c0_17] : memref<512x320xf32, #tpu.memory_space<vmem>>, vector<20x320xf32>
    tpu.vector_store %arg6[%c280, %c0_17], %31 {strides = array<i32>} : memref<512x320xf32, #tpu.memory_space<vmem>>, vector<20x320xf32>,
    %33 = vector.extract_strided_slice %2 {offsets = [0, 60], sizes = [20, 320], strides = [1, 1]} : vector<20x420xf32> to vector<20x320xf32>
    %c300 = arith.constant 300 : index
    %c0_18 = arith.constant 0 : index
    %34 = vector.load %arg6[%c300, %c0_18] : memref<512x320xf32, #tpu.memory_space<vmem>>, vector<20x320xf32>
    tpu.vector_store %arg6[%c300, %c0_18], %33 {strides = array<i32>} : memref<512x320xf32, #tpu.memory_space<vmem>>, vector<20x320xf32>,
    %35 = vector.extract_strided_slice %2 {offsets = [0, 61], sizes = [20, 320], strides = [1, 1]} : vector<20x420xf32> to vector<20x320xf32>
    %c320 = arith.constant 320 : index
    %c0_19 = arith.constant 0 : index
    %36 = vector.load %arg6[%c320, %c0_19] : memref<512x320xf32, #tpu.memory_space<vmem>>, vector<20x320xf32>
    tpu.vector_store %arg6[%c320, %c0_19], %35 {strides = array<i32>} : memref<512x320xf32, #tpu.memory_space<vmem>>, vector<20x320xf32>,
    %37 = vector.extract_strided_slice %2 {offsets = [0, 62], sizes = [20, 320], strides = [1, 1]} : vector<20x420xf32> to vector<20x320xf32>
    %c340 = arith.constant 340 : index
    %c0_20 = arith.constant 0 : index
    %38 = vector.load %arg6[%c340, %c0_20] : memref<512x320xf32, #tpu.memory_space<vmem>>, vector<20x320xf32>
    tpu.vector_store %arg6[%c340, %c0_20], %37 {strides = array<i32>} : memref<512x320xf32, #tpu.memory_space<vmem>>, vector<20x320xf32>,
    %39 = vector.extract_strided_slice %2 {offsets = [0, 63], sizes = [20, 320], strides = [1, 1]} : vector<20x420xf32> to vector<20x320xf32>
    %c360 = arith.constant 360 : index
    %c0_21 = arith.constant 0 : index
    %40 = vector.load %arg6[%c360, %c0_21] : memref<512x320xf32, #tpu.memory_space<vmem>>, vector<20x320xf32>
    tpu.vector_store %arg6[%c360, %c0_21], %39 {strides = array<i32>} : memref<512x320xf32, #tpu.memory_space<vmem>>, vector<20x320xf32>,
    %41 = vector.extract_strided_slice %2 {offsets = [0, 64], sizes = [20, 320], strides = [1, 1]} : vector<20x420xf32> to vector<20x320xf32>
    %c380 = arith.constant 380 : index
    %c0_22 = arith.constant 0 : index
    %42 = vector.load %arg6[%c380, %c0_22] : memref<512x320xf32, #tpu.memory_space<vmem>>, vector<20x320xf32>
    tpu.vector_store %arg6[%c380, %c0_22], %41 {strides = array<i32>} : memref<512x320xf32, #tpu.memory_space<vmem>>, vector<20x320xf32>,
    %43 = vector.extract_strided_slice %2 {offsets = [0, 80], sizes = [20, 320], strides = [1, 1]} : vector<20x420xf32> to vector<20x320xf32>
    %c400 = arith.constant 400 : index
    %c0_23 = arith.constant 0 : index
    %44 = vector.load %arg6[%c400, %c0_23] : memref<512x320xf32, #tpu.memory_space<vmem>>, vector<20x320xf32>
    tpu.vector_store %arg6[%c400, %c0_23], %43 {strides = array<i32>} : memref<512x320xf32, #tpu.memory_space<vmem>>, vector<20x320xf32>,
    %45 = vector.extract_strided_slice %2 {offsets = [0, 81], sizes = [20, 320], strides = [1, 1]} : vector<20x420xf32> to vector<20x320xf32>
    %c420 = arith.constant 420 : index
    %c0_24 = arith.constant 0 : index
    %46 = vector.load %arg6[%c420, %c0_24] : memref<512x320xf32, #tpu.memory_space<vmem>>, vector<20x320xf32>
    tpu.vector_store %arg6[%c420, %c0_24], %45 {strides = array<i32>} : memref<512x320xf32, #tpu.memory_space<vmem>>, vector<20x320xf32>,
    %47 = vector.extract_strided_slice %2 {offsets = [0, 82], sizes = [20, 320], strides = [1, 1]} : vector<20x420xf32> to vector<20x320xf32>
    %c440 = arith.constant 440 : index
    %c0_25 = arith.constant 0 : index
    %48 = vector.load %arg6[%c440, %c0_25] : memref<512x320xf32, #tpu.memory_space<vmem>>, vector<20x320xf32>
    tpu.vector_store %arg6[%c440, %c0_25], %47 {strides = array<i32>} : memref<512x320xf32, #tpu.memory_space<vmem>>, vector<20x320xf32>,
    %49 = vector.extract_strided_slice %2 {offsets = [0, 83], sizes = [20, 320], strides = [1, 1]} : vector<20x420xf32> to vector<20x320xf32>
    %c460 = arith.constant 460 : index
    %c0_26 = arith.constant 0 : index
    %50 = vector.load %arg6[%c460, %c0_26] : memref<512x320xf32, #tpu.memory_space<vmem>>, vector<20x320xf32>
    tpu.vector_store %arg6[%c460, %c0_26], %49 {strides = array<i32>} : memref<512x320xf32, #tpu.memory_space<vmem>>, vector<20x320xf32>,
    %51 = vector.extract_strided_slice %2 {offsets = [0, 84], sizes = [20, 320], strides = [1, 1]} : vector<20x420xf32> to vector<20x320xf32>
    %c480 = arith.constant 480 : index
    %c0_27 = arith.constant 0 : index
    %52 = vector.load %arg6[%c480, %c0_27] : memref<512x320xf32, #tpu.memory_space<vmem>>, vector<20x320xf32>
    tpu.vector_store %arg6[%c480, %c0_27], %51 {strides = array<i32>} : memref<512x320xf32, #tpu.memory_space<vmem>>, vector<20x320xf32>,
    %cst = arith.constant 0.000000e+00 : f32
    %53 = vector.broadcast %cst : f32 to vector<12x320xf32>
    %c500 = arith.constant 500 : index
    %c0_28 = arith.constant 0 : index
    %54 = vector.load %arg6[%c500, %c0_28] : memref<512x320xf32, #tpu.memory_space<vmem>>, vector<12x320xf32>
    tpu.vector_store %arg6[%c500, %c0_28], %53 {strides = array<i32>} : memref<512x320xf32, #tpu.memory_space<vmem>>, vector<12x320xf32>,
    %c0_29 = arith.constant 0 : index
    %c0_30 = arith.constant 0 : index
    %55 = vector.load %arg1[%c0_29, %c0_30] : memref<16x512xbf16, #tpu.memory_space<vmem>>, vector<16x512xbf16>
    %c0_31 = arith.constant 0 : index
    %c0_32 = arith.constant 0 : index
    %56 = vector.load %arg6[%c0_31, %c0_32] : memref<512x320xf32, #tpu.memory_space<vmem>>, vector<512x320xf32>
    %57 = arith.truncf %56 : vector<512x320xf32> to vector<512x320xbf16>
    %cst_33 = arith.constant dense<0.000000e+00> : vector<16x320xf32>
    %58 = tpu.matmul %55, %57, %cst_33 {dimension_numbers = #tpu.dot_dimension_numbers<[1], [0], [0], [1], [0, 0, 1, 1], [], []>} : vector<16x512xbf16>, vector<512x320xbf16>, vector<16x320xf32> -> vector<16x320xf32>
    %c0_34 = arith.constant 0 : index
    %c0_35 = arith.constant 0 : index
    %c0_36 = arith.constant 0 : index
    %59 = vector.load %arg4[%c0_34, %c0_35, %c0_36] : memref<1x16x320xf32, #tpu.memory_space<vmem>>, vector<1x16x320xf32>
    %60 = vector.shape_cast %59 : vector<1x16x320xf32> to vector<16x320xf32>
    %61 = vector.shape_cast %58 : vector<16x320xf32> to vector<1x16x320xf32>
    tpu.vector_store %arg4[%c0_34, %c0_35, %c0_36], %61 {strides = array<i32>} : memref<1x16x320xf32, #tpu.memory_space<vmem>>, vector<1x16x320xf32>,
    %c0_37 = arith.constant 0 : index
    %c0_38 = arith.constant 0 : index
    %62 = vector.load %arg2[%c0_37, %c0_38] : memref<1x320xf32, #tpu.memory_space<vmem>>, vector<1x320xf32>
    %63 = vector.broadcast %62 : vector<1x320xf32> to vector<16x320xf32>
    %64 = arith.mulf %58, %63 : vector<16x320xf32>
    %cst_39 = arith.constant dense<0.000000e+00> : vector<16xf32>
    %65 = vector.multi_reduction <add>, %64, %cst_39 [1] : vector<16x320xf32> to vector<16xf32>
    %66 = vector.shape_cast %65 : vector<16xf32> to vector<16x1xf32>
    %67 = arith.mulf %64, %64 : vector<16x320xf32>
    %cst_40 = arith.constant dense<0.000000e+00> : vector<16xf32>
    %68 = vector.multi_reduction <add>, %67, %cst_40 [1] : vector<16x320xf32> to vector<16xf32>
    %69 = vector.shape_cast %68 : vector<16xf32> to vector<16x1xf32>
    %70 = tpu.concatenate %66, %69 in 1 : vector<16x1xf32>, vector<16x1xf32> -> vector<16x2xf32>
    %c0_41 = arith.constant 0 : index
    %c0_42 = arith.constant 0 : index
    %c0_43 = arith.constant 0 : index
    %71 = vector.load %arg5[%c0_41, %c0_42, %c0_43] : memref<1x16x2xf32, #tpu.memory_space<vmem>>, vector<1x16x2xf32>
    %72 = vector.shape_cast %71 : vector<1x16x2xf32> to vector<16x2xf32>
    %73 = vector.shape_cast %70 : vector<16x2xf32> to vector<1x16x2xf32>
    tpu.vector_store %arg5[%c0_41, %c0_42, %c0_43], %73 {strides = array<i32>} : memref<1x16x2xf32, #tpu.memory_space<vmem>>, vector<1x16x2xf32>,
    return
  }
  func.func @transform_0(%arg0: i32) -> (i32, i32) {
    %c0_i32 = arith.constant 0 : i32
    %c0_i32_0 = arith.constant 0 : i32
    %c0_i32_1 = arith.constant 0 : i32
    return %c0_i32, %c0_i32_0 : i32, i32
  }
  func.func @transform_1(%arg0: i32) -> (i32, i32) {
    %c0_i32 = arith.constant 0 : i32
    %c0_i32_0 = arith.constant 0 : i32
    %c0_i32_1 = arith.constant 0 : i32
    return %c0_i32, %c0_i32_0 : i32, i32
  }
  func.func @transform_2(%arg0: i32) -> (i32, i32, i32) {
    %c0_i32 = arith.constant 0 : i32
    %c0_i32_0 = arith.constant 0 : i32
    %c0_i32_1 = arith.constant 0 : i32
    return %arg0, %c0_i32, %c0_i32_0 : i32, i32, i32
  }
  func.func @transform_3(%arg0: i32) -> (i32, i32, i32) {
    %c0_i32 = arith.constant 0 : i32
    %c0_i32_0 = arith.constant 0 : i32
    %c0_i32_1 = arith.constant 0 : i32
    return %arg0, %c0_i32, %c0_i32_0 : i32, i32, i32
  }
  func.func @transform_4(%arg0: i32) -> (i32, i32, i32) {
    %c0_i32 = arith.constant 0 : i32
    %c0_i32_0 = arith.constant 0 : i32
    %c0_i32_1 = arith.constant 0 : i32
    return %arg0, %c0_i32, %c0_i32_0 : i32, i32, i32
  }
}

module attributes {stable_mosaic.version = 11 : i64} {
  func.func @bn_res_elu_kernel(%arg0: i32, %arg1: memref<8x16x320xf32, #tpu.memory_space<vmem>>, %arg2: memref<8x4x320xf32, #tpu.memory_space<vmem>>, %arg3: memref<16x1xf32, #tpu.memory_space<vmem>>, %arg4: memref<16x1xf32, #tpu.memory_space<vmem>>, %arg5: memref<8x16x320xf32, #tpu.memory_space<vmem>>) attributes {dimension_semantics = [#tpu.dimension_semantics<parallel>], iteration_bounds = array<i64: 4>, scalar_prefetch = 0 : i64, scratch_operands = 0 : i64, tpu.core_type = #tpu.core_type<tc>, window_params = [{transform_indices = @transform_0, window_bounds = array<i64: 8, 16, 320>}, {transform_indices = @transform_1, window_bounds = array<i64: 8, 4, 320>}, {pipeline_mode = #tpu.pipeline_mode<synchronous>, transform_indices = @transform_2, window_bounds = array<i64: 16, 1>}, {pipeline_mode = #tpu.pipeline_mode<synchronous>, transform_indices = @transform_3, window_bounds = array<i64: 16, 1>}, {transform_indices = @transform_4, window_bounds = array<i64: 8, 16, 320>}]} {
    %c0 = arith.constant 0 : index
    %c0_0 = arith.constant 0 : index
    %c0_1 = arith.constant 0 : index
    %0 = vector.load %arg1[%c0, %c0_0, %c0_1] : memref<8x16x320xf32, #tpu.memory_space<vmem>>, vector<8x16x320xf32>
    %c0_2 = arith.constant 0 : index
    %c0_3 = arith.constant 0 : index
    %1 = vector.load %arg3[%c0_2, %c0_3] : memref<16x1xf32, #tpu.memory_space<vmem>>, vector<16x1xf32>
    %2 = vector.shape_cast %1 : vector<16x1xf32> to vector<1x16x1xf32>
    %3 = vector.broadcast %2 : vector<1x16x1xf32> to vector<8x16x320xf32>
    %4 = arith.mulf %0, %3 : vector<8x16x320xf32>
    %c0_4 = arith.constant 0 : index
    %c0_5 = arith.constant 0 : index
    %5 = vector.load %arg4[%c0_4, %c0_5] : memref<16x1xf32, #tpu.memory_space<vmem>>, vector<16x1xf32>
    %6 = vector.shape_cast %5 : vector<16x1xf32> to vector<1x16x1xf32>
    %7 = vector.broadcast %6 : vector<1x16x1xf32> to vector<8x16x320xf32>
    %8 = arith.addf %4, %7 : vector<8x16x320xf32>
    %c0_6 = arith.constant 0 : index
    %c0_7 = arith.constant 0 : index
    %c0_8 = arith.constant 0 : index
    %9 = vector.load %arg2[%c0_6, %c0_7, %c0_8] : memref<8x4x320xf32, #tpu.memory_space<vmem>>, vector<8x4x320xf32>
    %10 = tpu.concatenate %9, %9, %9, %9 in 1 : vector<8x4x320xf32>, vector<8x4x320xf32>, vector<8x4x320xf32>, vector<8x4x320xf32> -> vector<8x16x320xf32>
    %11 = arith.addf %8, %10 : vector<8x16x320xf32>
    %cst = arith.constant 0.000000e+00 : f32
    %12 = vector.broadcast %cst : f32 to vector<8x16x320xf32>
    %13 = arith.cmpf ogt, %11, %12 : vector<8x16x320xf32>
    %cst_9 = arith.constant 0.000000e+00 : f32
    %14 = vector.broadcast %cst_9 : f32 to vector<8x16x320xf32>
    %15 = arith.minimumf %11, %14 : vector<8x16x320xf32>
    %16 = math.exp %15 : vector<8x16x320xf32>
    %cst_10 = arith.constant 1.000000e+00 : f32
    %17 = vector.broadcast %cst_10 : f32 to vector<8x16x320xf32>
    %18 = arith.subf %16, %17 : vector<8x16x320xf32>
    %19 = arith.select %13, %11, %18 : vector<8x16x320xi1>, vector<8x16x320xf32>
    %c0_11 = arith.constant 0 : index
    %c0_12 = arith.constant 0 : index
    %c0_13 = arith.constant 0 : index
    %20 = vector.load %arg5[%c0_11, %c0_12, %c0_13] : memref<8x16x320xf32, #tpu.memory_space<vmem>>, vector<8x16x320xf32>
    tpu.vector_store %arg5[%c0_11, %c0_12, %c0_13], %19 {strides = array<i32>} : memref<8x16x320xf32, #tpu.memory_space<vmem>>, vector<8x16x320xf32>,
    return
  }
  func.func @transform_0(%arg0: i32) -> (i32, i32, i32) {
    %c0_i32 = arith.constant 0 : i32
    %c0_i32_0 = arith.constant 0 : i32
    %c0_i32_1 = arith.constant 0 : i32
    return %arg0, %c0_i32, %c0_i32_0 : i32, i32, i32
  }
  func.func @transform_1(%arg0: i32) -> (i32, i32, i32) {
    %c0_i32 = arith.constant 0 : i32
    %c0_i32_0 = arith.constant 0 : i32
    %c0_i32_1 = arith.constant 0 : i32
    return %arg0, %c0_i32, %c0_i32_0 : i32, i32, i32
  }
  func.func @transform_2(%arg0: i32) -> (i32, i32) {
    %c0_i32 = arith.constant 0 : i32
    %c0_i32_0 = arith.constant 0 : i32
    %c0_i32_1 = arith.constant 0 : i32
    return %c0_i32, %c0_i32_0 : i32, i32
  }
  func.func @transform_3(%arg0: i32) -> (i32, i32) {
    %c0_i32 = arith.constant 0 : i32
    %c0_i32_0 = arith.constant 0 : i32
    %c0_i32_1 = arith.constant 0 : i32
    return %c0_i32, %c0_i32_0 : i32, i32
  }
  func.func @transform_4(%arg0: i32) -> (i32, i32, i32) {
    %c0_i32 = arith.constant 0 : i32
    %c0_i32_0 = arith.constant 0 : i32
    %c0_i32_1 = arith.constant 0 : i32
    return %arg0, %c0_i32, %c0_i32_0 : i32, i32, i32
  }
}

</mosaic_0001>

<bundles_post_ra>
// kernel: input_transition_forward.2
= control target key start
LH: loop header
LB: loop body
LE: loop exit
PB: predicated region body
PF: predicated region fallthrough
CT: control target
= control target key end

     0   :  { %s2657_s15 = smov 0   ;;  %s3471_s0 = inlined_call_operand.vmem [shape: bf16[16,512], index: 0, kind: input, shape index: {}]   ;;  %s3472_s1 = inlined_call_operand.vmem [shape: f32[1,320], index: 1, kind: input, shape index: {}]   ;;  %s3473_s2 = inlined_call_operand.vmem [shape: bf16[32,20,420], index: 2, kind: input, shape index: {}]   ;;  %s3474_s3 = inlined_call_operand.vmem [shape: f32[32,16,320], index: 3, kind: output, shape index: {0}]   ;;  %s3475_s4 = inlined_call_operand.vmem [shape: f32[32,16,2], index: 4, kind: output, shape index: {1}]  }
   0x1 LB: > { %s1986_s16 = sadd.s32 4294967295, %s2605_s15   ;;  %p1990_p0 = scmp.ge.s32.totalorder %s2605_s15, 1  ;;  %s2605_s15 = sphi %s2657_s15, %s15_s15  }
   0x2   : > { %p165_p1 = scmp.lt.s32.totalorder %s2605_s15, 33 }
   0x4   : > { %p166_p2 = pnand %p1990_p0, %p165_p1 }
   0x5   : > { %p196_p3 = scmp.lt.s32.totalorder (!%p166_p2), %s1986_s16, 31  ;;  %s2607_s21 = smov (!%p166_p2), 126  }
   0x6   : > { %169 = sbr.rel (%p166_p2) target bundleno = 773 (0x305), region = 32  ;;  %s2608_s22 = smov (!%p166_p2), 127  }
   0x7   : > { %s2609_s23 = smov (!%p166_p2), 125   ;;  %s2610_s24 = smov (!%p166_p2), 108  }
   0x8   : > { %s2611_s25 = smov (!%p166_p2), 107   ;;  %s2612_s26 = smov (!%p166_p2), 65  }
   0x9   : > { %s2613_s27 = smov (!%p166_p2), 64   ;;  %s2614_s28 = smov (!%p166_p2), 124  }
   0xa   : > { %s2615_s29 = smov (!%p166_p2), 66   ;;  %s2616_s30 = smov (!%p166_p2), 67  }
   0xb   : > { %s3477_s16 = smov (!%p196_p3, %s1986_s16), 31  ;;  %vm250_vm0 = vcmask 1043456   ;;  %vm232_vm1 = vcmask 523264   ;;  %vm239_vm2 = vcmask 519168   ;;  %s2617_s5 = smov 68   ;;  %vm328_vm3 = vcmask 1031168  }
   0xc   : > { %s2046_s17 = smul.u32 48, %s3477_s16  ;;  %s2618_s6 = smov 84   ;;  %vm284_vm4 = vcmask 1039360   ;;  %vm302_vm5 = vcmask 523268   ;;  %vm457_vm6 = vcmask 883712   ;;  %vm500_vm7 = vcmask 875520  }
   0xd   : > { %s2619_s7 = smov 85   ;;  %s2620_s8 = smov 86   ;;  %vm1016_vm8 = vcmask 531456   ;;  %vm414_vm9 = vcmask 1014784   ;;  %vm973_vm10 = vcmask 539648   ;;  %vm930_vm11 = vcmask 547840  }
   0xe   : > { %s2673_s20 = scalar_lea.vmem %s3473_s2, %s2046_s17  ;;  %s2622_s9 = smov 44   ;;  %vm371_vm12 = vcmask 1022976   ;;  %vm887_vm13 = vcmask 556032   ;;  %vm844_vm14 = vcmask 687104   ;;  %vm801_vm15 = vcmask 695296  }
   0xf   : > { %v213_v0 = vld [vmem:[%s2673_s20 + $0x8] sm:$0xff]  ;;  %v214_v1 = vld [vmem:[%s2673_s20 + $0x10] sm:$0xff]  ;;  %v216_v2 = vld [vmem:[%s2673_s20 + $0x20] sm:$0x33]  ;;  %s2623_s10 = smov 87   ;;  %s2624_s11 = smov 88  }
  0x10   : > { %v2678_v3 = vunpack.c.l.bf16 %v213_v0  ;;  %v2680_v4 = vunpack.c.l.bf16 %v214_v1  ;;  %v2682_v5 = vunpack.c.h.bf16 %v214_v1  ;;  %v2684_v6 = vunpack.c.l.bf16 %v216_v2  ;;  %v212_v7 = vld [vmem:[%s2673_s20] sm:$0xff]  ;;  %v215_v8 = vld [vmem:[%s2673_s20 + $0x18] sm:$0xff]  ;;  %v217_v12 = vld [vmem:[%s2673_s20 + $0x28] sm:$0x33]  ;;  %s2625_s12 = smov 45   ;;  %s2626_s13 = smov 104  }
  0x11   : > { %v227_v9 = vunpack.c.h.bf16 %v216_v2  ;;  %v2688_v10 = vunpack.c.l.bf16 %v212_v7  ;;  %v2690_v11 = vunpack.c.h.bf16 %v212_v7  ;;  %v2698_v14 = vunpack.c.l.bf16 %v215_v8  ;;  %s2627_s14 = smov 46   ;;  %s2628_s18 = smov 105  }
  0x12   : > { %v2085_v13 = vpack.i.bf16 %v2680_v4, %v2678_v3  ;;  %234 = vst [vmem:[#allocation2 + $0x18] sm:$0xff] %v2680_v4  ;;  %235 = vst [vmem:[#allocation2 + $0x20] sm:$0xff] %v2682_v5  ;;  %v2701_v15 = vrot.slane %v2678_v3, 4  ;;  %v256_v16 = vrot.slane %v2682_v5, 4  ;;  %v254_v20 = vrot.slane %v2680_v4, 4  ;;  %s2629_s19 = smov 47  }
  0x13   : > { %237 = vst [vmem:[#allocation2 + $0x30] sm:$0xf] %v2684_v6  ;;  %233 = vst.msk [vmem:[#allocation2 + $0x10] sm:$0xff] %vm232_vm1, %v2678_v3  ;;  %v2080_v17 = vpack.i.bf16 %v2690_v11, %v2688_v10  ;;  %v2711_v18 = vrot.slane %v2688_v10, 4  ;;  %v252_v19 = vrot.slane %v2690_v11, 4  ;;  %v258_v21 = vrot.slane %v2698_v14, 4 }
  0x14   : > { %238 = vst [vmem:[#allocation2 + $0x38] sm:$0xf] %v227_v9  ;;  %230 = vst [vmem:[#allocation2] sm:$0xff] %v2688_v10  ;;  %2086 = vrot.lane.b32.xlu0 %v2085_v13, %s2607_s21  ;;  %v228_v22 = vunpack.c.l.bf16 %v217_v12  ;;  %v2722_v23 = vpack.i.bf16 %v2698_v14, %v2682_v5  ;;  %v260_v28 = vrot.slane %v2684_v6, 4  ;;  %v262_v29 = vrot.slane %v227_v9, 4 }
  0x15   : > { %231 = vst [vmem:[#allocation2 + $0x8] sm:$0xff] %v2690_v11  ;;  %236 = vst.msk [vmem:[#allocation2 + $0x28] sm:$0xff] %vm232_vm1, %v2698_v14  ;;  %2081 = vrot.lane.b32.xlu1 %v2080_v17, %s2607_s21  ;;  %v2095_v24 = vpack.i.bf16 %v252_v19, %v2711_v18  ;;  %v2727_v25 = vsel %vm250_vm0, %v2711_v18, %v254_v20  ;;  %v257_v26 = vsel %vm250_vm0, %v252_v19, %v256_v16  ;;  %v2621_v0 = vmov 0.0  }
  0x16   : > { %v2732_v27 = vsel %vm250_vm0, %v2701_v15, %v258_v21  ;;  %v2100_v30 = vpack.i.bf16 %v2727_v25, %v2701_v15  ;;  %v264_v32 = vrot.slane %v228_v22, 4  ;;  %v2743_v33 = vsel %vm250_vm0, %v254_v20, %v260_v28  ;;  %240 = vst.msk [vmem:[#allocation2 + $0x40] sm:$0xf] %vm239_vm2, %v228_v22  ;;  %1352 = vst [vmem:[#allocation2 + $0x5d8] sm:$0xf0] %v2621_v0 }
  0x17   : > { %v2740_v31 = vpack.i.bf16 %v2732_v27, %v257_v26  ;;  %v263_v34 = vsel %vm250_vm0, %v256_v16, %v262_v29  ;;  %v2115_v37 = vpack.i.bf16 %v227_v9, %v2684_v6  ;;  %v2120_v38 = vpack.i.bf16 %v257_v26, %v2711_v18  ;;  %1355 = vst [vmem:[#allocation2 + $0x5f0] sm:$0xff] %v2621_v0 }
  0x18   : > { %2096 = vrot.lane.b32.xlu0 %v2095_v24, %s2608_s22  ;;  %v2110_v35 = vpack.i.bf16 %v263_v34, %v2743_v33  ;;  %v265_v36 = vsel %vm250_vm0, %v258_v21, %v264_v32  ;;  %v2759_v40 = vpack.i.bf16 %v2678_v3, %v2690_v11  ;;  %v2764_v41 = vpack.i.bf16 %v228_v22, %v227_v9 }
  0x19   : > { %2091 = vrot.lane.b32.xlu1 %v2722_v23, %s2607_s21  ;;  %v2754_v39 = vpack.i.bf16 %v265_v36, %v263_v34  ;;  %v2768_v42 = vpack.i.bf16 %v2701_v15, %v252_v19  ;;  %v2772_v43 = vpack.i.bf16 %v252_v19, %v2743_v33  ;;  %v2779_v44 = vpack.i.bf16 %v2684_v6, %v2680_v4 }
  0x1a   : > { %v2787_v45 = vpack.i.bf16 %v257_v26, %v2701_v15  ;;  %v2792_v46 = vpack.i.bf16 %v2711_v18, %v2732_v27  ;;  %v2799_v47 = vpack.i.bf16 %v2690_v11, %v2684_v6  ;;  %v2807_v48 = vpack.i.bf16 %v2682_v5, %v2678_v3  ;;  %1351 = vst [vmem:[#allocation2 + $0x5d0] sm:$0xf0] %v2621_v0 }
  0x1b   : > { %v2812_v49 = vpack.i.bf16 %v2688_v10, %v2698_v14  ;;  %v2225_v50 = vpack.i.bf16 %v263_v34, %v2732_v27  ;;  %v2230_v51 = vpack.i.bf16 %v2727_v25, %v265_v36  ;;  %v2836_v52 = vpack.i.bf16 %v2743_v33, %v2727_v25  ;;  %1353 = vst.msk [vmem:[#allocation2 + $0x5e0] sm:$0xf0] %vm302_vm5, %v2621_v0 }
  0x1c   : > { %2101 = vrot.lane.b32.xlu0 %v2100_v30, %s2608_s22  ;;  %1356 = vst.msk [vmem:[#allocation2 + $0x5f8] sm:$0xff] %vm232_vm1, %v2621_v0 }
  0x1d   : > { %2106 = vrot.lane.b32.xlu1 %v2740_v31, %s2608_s22 }
  0x20   : > { %282 = vrot.lane.b32.xlu0 %v265_v36, %s2608_s22 }
  0x21   : > { %2111 = vrot.lane.b32.xlu1 %v2110_v35, %s2608_s22  ;;  %s2631_s22 = smov 106  }
  0x24   : > { %2116 = vrot.lane.b32.xlu0 %v2115_v37, %s2607_s21 }
  0x25   : > { %326 = vrot.lane.b32.xlu1 %v228_v22, %s2607_s21  ;;  %s2630_s21 = smov 48  }
  0x28   : > { %2121 = vrot.lane.b32.xlu0 %v2120_v38, %s2609_s23 }
  0x29   : > { %2126 = vrot.lane.b32.xlu1 %v2754_v39, %s2610_s24 }
  0x2c   : > { %2131 = vrot.lane.b32.xlu0 %v2759_v40, %s2611_s25 }
  0x2d   : > { %2136 = vrot.lane.b32.xlu1 %v2722_v23, %s2612_s26 }
  0x30   : > { %2141 = vrot.lane.b32.xlu0 %v2764_v41, %s2612_s26 }
  0x31   : > { %2146 = vrot.lane.b32.xlu1 %v2768_v42, %s2613_s27 }
  0x34   : > { %2151 = vrot.lane.b32.xlu0 %v2772_v43, %s2610_s24 }
  0x35   : > { %482 = vrot.lane.b32.xlu1 %v2688_v10, %s2611_s25 }
  0x38   : > { %2156 = vrot.lane.b32.xlu0 %v2779_v44, %s2612_s26 }
  0x39   : > { %1041 = vrot.lane.b32.xlu1 %v2711_v18, %s2613_s27 }
  0x3c   : > { %2161 = vrot.lane.b32.xlu0 %v2764_v41, %s2614_s28 }
  0x3d   : > { %2166 = vrot.lane.b32.xlu1 %v2787_v45, %s2610_s24 }
  0x40   : > { %2171 = vrot.lane.b32.xlu0 %v2792_v46, %s2610_s24 }
  0x41   : > { %2176 = vrot.lane.b32.xlu1 %v2754_v39, %s2615_s29 }
  0x44   : > { %2181 = vrot.lane.b32.xlu0 %v2759_v40, %s2612_s26 }
  0x45   : > { %2186 = vrot.lane.b32.xlu1 %v2799_v47, %s2614_s28 }
  0x48   : > { %445 = vrot.lane.b32.xlu0 %v2727_v25, %s2610_s24 }
  0x49   : > { %2191 = vrot.lane.b32.xlu1 %v2772_v43, %s2615_s29 }
  0x4c   : > { %998 = vrot.lane.b32.xlu0 %v2688_v10, %s2612_s26 }
  0x4d   : > { %2196 = vrot.lane.b32.xlu1 %v2807_v48, %s2614_s28 }
  0x50   : > { %2201 = vrot.lane.b32.xlu0 %v2812_v49, %s2614_s28 }
  0x51   : > { %2206 = vrot.lane.b32.xlu1 %v2764_v41, %s2616_s30 }
  0x54   : > { %2211 = vrot.lane.b32.xlu0 %v2787_v45, %s2615_s29 }
  0x55   : > { %2216 = vrot.lane.b32.xlu1 %v2792_v46, %s2615_s29 }
  0x58   : > { %402 = vrot.lane.b32.xlu0 %v2680_v4, %s2614_s28 }
  0x59   : > { %2221 = vrot.lane.b32.xlu1 %v2799_v47, %s2616_s30 }
  0x5c   : > { %961 = vrot.lane.b32.xlu0 %v2727_v25, %s2615_s29 }
  0x5d   : > { %2226 = vrot.lane.b32.xlu1 %v2225_v50, %s2609_s23 }
  0x60   : > { %2231 = vrot.lane.b32.xlu0 %v2230_v51, %s2609_s23 }
  0x61   : > { %2236 = vrot.lane.b32.xlu1 %v2807_v48, %s2616_s30 }
  0x64   : > { %2241 = vrot.lane.b32.xlu0 %v2812_v49, %s2616_s30 }
  0x65   : > { %2246 = vrot.lane.b32.xlu1 %v2772_v43, %s2609_s23 }
  0x68   : > { %918 = vrot.lane.b32.xlu0 %v2680_v4, %s2616_s30 }
  0x69   : > { %357 = vrot.lane.b32.xlu1 %v2701_v15, %s2609_s23 }
  0x6c   : > { %2251 = vrot.lane.b32.xlu0 %v2740_v31, %s2617_s5 }
  0x6d   : > { %2256 = vrot.lane.b32.xlu1 %v2754_v39, %s2617_s5 }
  0x70   : > { %2261 = vrot.lane.b32.xlu0 %v2836_v52, %s2617_s5 }
  0x71   : > { %2266 = vrot.lane.b32.xlu1 %v2722_v23, %s2618_s6 }
  0x74   : > { %2271 = vrot.lane.b32.xlu0 %v2764_v41, %s2618_s6 }
  0x75   : > { %2276 = vrot.lane.b32.xlu1 %v2768_v42, %s2617_s5 }
  0x78   : > { %2281 = vrot.lane.b32.xlu0 %v2779_v44, %s2618_s6 }
  0x79   : > { %869 = vrot.lane.b32.xlu1 %v2711_v18, %s2617_s5 }
  0x7c   : > { %2286 = vrot.lane.b32.xlu0 %v2754_v39, %s2619_s7 }
  0x7d   : > { %2291 = vrot.lane.b32.xlu1 %v2759_v40, %s2618_s6 }
  0x80   : > { %2296 = vrot.lane.b32.xlu0 %v2772_v43, %s2619_s7 }
  0x81   : > { %826 = vrot.lane.b32.xlu1 %v2688_v10, %s2618_s6  ;;  %s3447_s6 = scalar_lea.vmem %s3474_s3, %s2046_s17 }
  0x84   : > { %2301 = vrot.lane.b32.xlu0 %v2764_v41, %s2620_s8 }
  0x85   : > { %2306 = vrot.lane.b32.xlu1 %v2787_v45, %s2619_s7 }
  0x86   : > { %v2087_v53 = vpop.permute.xlu0 %2086 }
  0x87   : > { %v2088_v54 = vunpack.i.l.bf16 %v2087_v53  ;;  %v2082_v55 = vpop.permute.xlu1 %2081  ;;  %v2089_v1 = vunpack.i.h.bf16 %v2087_v53 }
  0x88   : > { %v2084_v56 = vunpack.i.h.bf16 %v2082_v55  ;;  %v2083_v57 = vunpack.i.l.bf16 %v2082_v55  ;;  %2311 = vrot.lane.b32.xlu0 %v2792_v46, %s2619_s7 }
  0x89   : > { %346 = vst.msk [vmem:[#allocation2 + $0x88] sm:$0xff] %vm232_vm1, %v2088_v54  ;;  %2316 = vrot.lane.b32.xlu1 %v2799_v47, %s2620_s8 }
  0x8a   : > { %v2861_v58 = vsel %vm328_vm3, %v2084_v56, %v2088_v54  ;;  %v2864_v59 = vsel %vm328_vm3, %v2083_v57, %v2084_v56  ;;  %v2097_v60 = vpop.permute.xlu0 %2096 }
  0x8b   : > { %v2092_v61 = vpop.permute.xlu1 %2091  ;;  %v2099_v62 = vunpack.i.h.bf16 %v2097_v60  ;;  %v2098_v63 = vunpack.i.l.bf16 %v2097_v60 }
  0x8c   : > { %v2094_v2 = vunpack.i.h.bf16 %v2092_v61  ;;  %v2093_v5 = vunpack.i.l.bf16 %v2092_v61  ;;  %789 = vrot.lane.b32.xlu0 %v2727_v25, %s2619_s7 }
  0x8d   : > { %v285_v7 = vsel %vm284_vm4, %v2098_v63, %v2099_v62  ;;  %2321 = vrot.lane.b32.xlu1 %v2807_v48, %s2620_s8 }
  0x8e   : > { %349 = vst.msk [vmem:[#allocation2 + $0xa0] sm:$0xff] %vm232_vm1, %v2094_v2  ;;  %v2875_v8 = vsel %vm328_vm3, %v2089_v1, %v2093_v5  ;;  %v2878_v9 = vsel %vm328_vm3, %v2093_v5, %v2094_v2  ;;  %300 = vst [vmem:[#allocation2 + $0x30] sm:$0xf0] %v285_v7  ;;  %v2102_v11 = vpop.permute.xlu0 %2101 }
  0x8f   : > { %v2107_v12 = vpop.permute.xlu1 %2106  ;;  %v2104_v13 = vunpack.i.h.bf16 %v2102_v11  ;;  %v2103_v15 = vunpack.i.l.bf16 %v2102_v11 }
  0x90   : > { %v2109_v16 = vunpack.i.h.bf16 %v2107_v12  ;;  %v2108_v17 = vunpack.i.l.bf16 %v2107_v12  ;;  %2326 = vrot.lane.b32.xlu0 %v2812_v49, %s2620_s8 }
  0x91   : > { %v286_v19 = vsel %vm284_vm4, %v2099_v62, %v2103_v15  ;;  %303 = vst.msk [vmem:[#allocation2 + $0x40] sm:$0xf0] %vm302_vm5, %v2103_v15  ;;  %2331 = vrot.lane.b32.xlu1 %v2764_v41, %s2622_s9 }
  0x92   : > { %306 = vst.msk [vmem:[#allocation2 + $0x58] sm:$0xff] %vm232_vm1, %v2109_v16  ;;  %v2888_v20 = vsel %vm284_vm4, %v2108_v17, %v2109_v16  ;;  %v2891_v21 = vsel %vm284_vm4, %v2104_v13, %v2108_v17  ;;  %301 = vst [vmem:[#allocation2 + $0x38] sm:$0xf0] %v286_v19  ;;  %v283_v22 = vpop.permute.xlu0 %282 }
  0x93   : > { %v2112_v24 = vpop.permute.xlu1 %2111  ;;  %309 = vst.msk [vmem:[#allocation2 + $0x70] sm:$0xff] %vm232_vm1, %v283_v22 }
  0x94   : > { %v2114_v26 = vunpack.i.h.bf16 %v2112_v24  ;;  %v2113_v27 = vunpack.i.l.bf16 %v2112_v24  ;;  %746 = vrot.lane.b32.xlu0 %v2680_v4, %s2620_s8  ;;  %s2001_s8 = sshll.u32 %s3477_s16, 4 }
  0x95   : > { %2336 = vrot.lane.b32.xlu1 %v2799_v47, %s2622_s9 }
  0x96   : > { %v2899_v28 = vsel %vm284_vm4, %v2113_v27, %v2114_v26  ;;  %v2902_v29 = vsel %vm284_vm4, %v2114_v26, %v283_v22  ;;  %v2117_v30 = vpop.permute.xlu0 %2116  ;;  %vm1323_vm4 = vcmask 359424  }
  0x97   : > { %v327_v32 = vpop.permute.xlu1 %326  ;;  %v2119_v33 = vunpack.i.h.bf16 %v2117_v30  ;;  %v2118_v34 = vunpack.i.l.bf16 %v2117_v30  ;;  %v1560_v35 = vpack.c.bf16 %v2861_v58, %v2902_v29  ;;  %v1559_v36 = vpack.c.bf16 %v2864_v59, %v2899_v28  ;;  %v1367_v58 = vld [vmem:[#allocation2 + $0x30] sm:$0xff] }
  0x98   : > { %352 = vst.msk [vmem:[#allocation2 + $0xb8] sm:$0xf] %vm239_vm2, %v327_v32  ;;  %2341 = vrot.lane.b32.xlu0 %v2740_v31, %s2623_s10 }
  0x99   : > { %v334_v37 = vsel %vm328_vm3, %v2119_v33, %v327_v32  ;;  %v333_v38 = vsel %vm328_vm3, %v2118_v34, %v2119_v33  ;;  %2346 = vrot.lane.b32.xlu1 %v2754_v39, %s2623_s10  ;;  %vm758_vm3 = vcmask 703488  }
  0x9a   : > { %351 = vst [vmem:[#allocation2 + $0xb0] sm:$0xf] %v334_v37  ;;  %350 = vst [vmem:[#allocation2 + $0xa8] sm:$0xf] %v333_v38  ;;  %v2915_v50 = vpop.permute.xlu0 %2121 }
  0x9b   : > { %v2127_v51 = vpop.permute.xlu1 %2126 }
  0x9c   : > { %v2129_v53 = vunpack.i.h.bf16 %v2127_v51  ;;  %v2128_v54 = vunpack.i.l.bf16 %v2127_v51  ;;  %2351 = vrot.lane.b32.xlu0 %v2807_v48, %s2622_s9 }
  0x9d   : > { %2356 = vrot.lane.b32.xlu1 %v2812_v49, %s2622_s9 }
  0x9e   : > { %481 = vst.msk [vmem:[#allocation2 + $0x160] sm:$0xff] %vm232_vm1, %v2129_v53  ;;  %v463_v55 = vsel %vm457_vm6, %v2128_v54, %v2129_v53  ;;  %v2132_v56 = vpop.permute.xlu0 %2131 }
  0x9f   : > { %v2137_v57 = vpop.permute.xlu1 %2136  ;;  %v2134_v60 = vunpack.i.h.bf16 %v2132_v56  ;;  %v2133_v61 = vunpack.i.l.bf16 %v2132_v56 }
  0xa0   : > { %v2139_v62 = vunpack.i.h.bf16 %v2137_v57  ;;  %v2138_v63 = vunpack.i.l.bf16 %v2137_v57  ;;  %2361 = vrot.lane.b32.xlu0 %v2836_v52, %s2623_s10 }
  0xa1   : > { %518 = vst.msk [vmem:[#allocation2 + $0x178] sm:$0xff] %vm232_vm1, %v2134_v60  ;;  %v502_v0 = vsel %vm500_vm7, %v2133_v61, %v2134_v60  ;;  %1307 = vrot.lane.b32.xlu1 %v2680_v4, %s2622_s9 }
  0xa2   : > { %1037 = vst.msk [vmem:[#allocation2 + $0x460] sm:$0xff] %vm232_vm1, %v2139_v62  ;;  %v1020_v1 = vsel %vm1016_vm8, %v2138_v63, %v2139_v62  ;;  %v2142_v2 = vpop.permute.xlu0 %2141  ;;  %v1575_v5 = vpack.c.bf16 %v502_v0, %v463_v55 }
  0xa3   : > { %v2147_v7 = vpop.permute.xlu1 %2146  ;;  %v2144_v11 = vunpack.i.h.bf16 %v2142_v2  ;;  %v2143_v12 = vunpack.i.l.bf16 %v2142_v2 }
  0xa4   : > { %v2149_v13 = vunpack.i.h.bf16 %v2147_v7  ;;  %v2148_v15 = vunpack.i.l.bf16 %v2147_v7  ;;  %2366 = vrot.lane.b32.xlu0 %v2722_v23, %s2624_s11  ;;  %1669 = vmatprep.subr.bf16.mxu0 %v1575_v5 }
  0xa5   : > { %1040 = vst.msk [vmem:[#allocation2 + $0x478] sm:$0xf] %vm239_vm2, %v2144_v11  ;;  %v1022_v4 = vsel %vm1016_vm8, %v2143_v12, %v2144_v11  ;;  %2371 = vrot.lane.b32.xlu1 %v2764_v41, %s2624_s11 }
  0xa6   : > { %1076 = vst.msk [vmem:[#allocation2 + $0x478] sm:$0xf0] %vm302_vm5, %v2149_v13  ;;  %v1060_v16 = vsel %vm232_vm1, %v2148_v15, %v2149_v13  ;;  %1039 = vst [vmem:[#allocation2 + $0x470] sm:$0xf] %v1022_v4  ;;  %v2152_v17 = vpop.permute.xlu0 %2151 }
  0xa7   : > { %1075 = vst [vmem:[#allocation2 + $0x470] sm:$0xf0] %v1060_v16  ;;  %v483_v19 = vpop.permute.xlu1 %482  ;;  %v2153_v22 = vunpack.i.l.bf16 %v2152_v17 }
  0xa8   : > { %v501_v24 = vsel %vm500_vm7, %v483_v19, %v2133_v61  ;;  %2376 = vrot.lane.b32.xlu0 %v2768_v42, %s2623_s10  ;;  %v2154_v61 = vunpack.i.h.bf16 %v2152_v17 }
  0xa9   : > { %v462_v26 = vsel %vm457_vm6, %v2153_v22, %v2128_v54  ;;  %2381 = vrot.lane.b32.xlu1 %v2740_v31, %s2625_s12 }
  0xaa   : > { %v2157_v27 = vpop.permute.xlu0 %2156  ;;  %v1574_v30 = vpack.c.bf16 %v501_v24, %v462_v26 }
  0xab   : > { %v1042_v32 = vpop.permute.xlu1 %1041  ;;  %v2159_v33 = vunpack.i.h.bf16 %v2157_v27  ;;  %v2158_v34 = vunpack.i.l.bf16 %v2157_v27 }
  0xac   : > { %v1059_v37 = vsel %vm232_vm1, %v1042_v32, %v2148_v15  ;;  %2386 = vrot.lane.b32.xlu0 %v2754_v39, %s2625_s12  ;;  %1670 = vmatpush1.bf16.msra.mxu0 %v1574_v30 }
  0xad   : > { %1074 = vst [vmem:[#allocation2 + $0x468] sm:$0xf0] %v1059_v37  ;;  %v1019_v38 = vsel %vm1016_vm8, %v2158_v34, %v2138_v63  ;;  %v1021_v51 = vsel %vm1016_vm8, %v2159_v33, %v2143_v12  ;;  %2391 = vrot.lane.b32.xlu1 %v2779_v44, %s2624_s11 }
  0xae   : > { %1038 = vst [vmem:[#allocation2 + $0x468] sm:$0xf] %v1021_v51  ;;  %v2162_v53 = vpop.permute.xlu0 %2161  ;;  %v1503_v54 = vld [vmem:[#allocation2 + $0x470] sm:$0xff] }
  0xaf   : > { %v2167_v55 = vpop.permute.xlu1 %2166  ;;  %v2164_v56 = vunpack.i.h.bf16 %v2162_v53  ;;  %v2163_v57 = vunpack.i.l.bf16 %v2162_v53  ;;  %v1623_v60 = vpack.c.bf16 %v1503_v54, %v1020_v1 }
  0xb0   : > { %v2168_v62 = vunpack.i.l.bf16 %v2167_v55  ;;  %697 = vrot.lane.b32.xlu0 %v2711_v18, %s2623_s10  ;;  %v2169_v0 = vunpack.i.h.bf16 %v2167_v55 }
  0xb1   : > { %438 = vst.msk [vmem:[#allocation2 + $0x130] sm:$0xf] %vm239_vm2, %v2164_v56  ;;  %v420_v63 = vsel %vm414_vm9, %v2163_v57, %v2164_v56  ;;  %2396 = vrot.lane.b32.xlu1 %v2836_v52, %s2625_s12  ;;  %1712 = vmatprep.subr.bf16.mxu1 %v1623_v60 }
  0xb2   : > { %v459_v2 = vsel %vm457_vm6, %v2154_v61, %v2168_v62  ;;  %475 = vst.msk [vmem:[#allocation2 + $0x130] sm:$0xf0] %vm302_vm5, %v2168_v62  ;;  %437 = vst [vmem:[#allocation2 + $0x128] sm:$0xf] %v420_v63  ;;  %v2172_v1 = vpop.permute.xlu0 %2171 }
  0xb3   : > { %474 = vst [vmem:[#allocation2 + $0x128] sm:$0xf0] %v459_v2  ;;  %v2177_v5 = vpop.permute.xlu1 %2176  ;;  %v2174_v7 = vunpack.i.h.bf16 %v2172_v1  ;;  %v2173_v11 = vunpack.i.l.bf16 %v2172_v1 }
  0xb4   : > { %v2179_v12 = vunpack.i.h.bf16 %v2177_v5  ;;  %v2178_v13 = vunpack.i.l.bf16 %v2177_v5  ;;  %2401 = vrot.lane.b32.xlu0 %v2754_v39, %s2626_s13 }
  0xb5   : > { %v458_v15 = vsel %vm457_vm6, %v2174_v7, %v2154_v61  ;;  %v461_v4 = vsel %vm457_vm6, %v2169_v0, %v2173_v11  ;;  %478 = vst.msk [vmem:[#allocation2 + $0x148] sm:$0xff] %vm232_vm1, %v2173_v11  ;;  %2406 = vrot.lane.b32.xlu1 %v2759_v40, %s2624_s11  ;;  %v1502_v16 = vld [vmem:[#allocation2 + $0x468] sm:$0xff] }
  0xb6   : > { %997 = vst.msk [vmem:[#allocation2 + $0x430] sm:$0xff] %vm232_vm1, %v2179_v12  ;;  %v979_v17 = vsel %vm973_vm10, %v2178_v13, %v2179_v12  ;;  %473 = vst [vmem:[#allocation2 + $0x120] sm:$0xf0] %v458_v15  ;;  %v2182_v19 = vpop.permute.xlu0 %2181  ;;  %v1622_v22 = vpack.c.bf16 %v1502_v16, %v1019_v38 }
  0xb7   : > { %v2187_v24 = vpop.permute.xlu1 %2186  ;;  %v2184_v26 = vunpack.i.h.bf16 %v2182_v19  ;;  %v2183_v27 = vunpack.i.l.bf16 %v2182_v19 }
  0xb8   : > { %v2188_v30 = vunpack.i.l.bf16 %v2187_v24  ;;  %2411 = vrot.lane.b32.xlu0 %v2722_v23, %s2627_s14  ;;  %1713 = vmatpush1.bf16.msra.mxu1 %v1622_v22  ;;  %v2189_v61 = vunpack.i.h.bf16 %v2187_v24 }
  0xb9   : > { %1034 = vst.msk [vmem:[#allocation2 + $0x448] sm:$0xff] %vm232_vm1, %v2184_v26  ;;  %v1018_v32 = vsel %vm1016_vm8, %v2183_v27, %v2184_v26  ;;  %2416 = vrot.lane.b32.xlu1 %v2764_v41, %s2627_s14 }
  0xba   : > { %v419_v33 = vsel %vm414_vm9, %v2188_v30, %v2163_v57  ;;  %v446_v34 = vpop.permute.xlu0 %445  ;;  %v1398_v37 = vld [vmem:[#allocation2 + $0x128] sm:$0xff]  ;;  %v1620_v38 = vpack.c.bf16 %v1018_v32, %v979_v17 }
  0xbb   : > { %436 = vst [vmem:[#allocation2 + $0x120] sm:$0xf] %v419_v33  ;;  %v2192_v51 = vpop.permute.xlu1 %2191  ;;  %v460_v53 = vsel %vm457_vm6, %v446_v34, %v2169_v0  ;;  %v1572_v54 = vpack.c.bf16 %v461_v4, %v1398_v37  ;;  %vm672_vm6 = vcmask 719872  }
  0xbc   : > { %v2193_v55 = vunpack.i.l.bf16 %v2192_v51  ;;  %2421 = vrot.lane.b32.xlu0 %v2768_v42, %s2625_s12  ;;  %1714 = vmatprep.subr.bf16.mxu1 %v1620_v38  ;;  %v2194_v24 = vunpack.i.h.bf16 %v2192_v51 }
  0xbd   : > { %2426 = vrot.lane.b32.xlu1 %v2772_v43, %s2626_s13  ;;  %1671 = vmatprep.subr.bf16.mxu0 %v1572_v54 }
  0xbe   : > { %v978_v23 = vsel %vm973_vm10, %v2193_v55, %v2178_v13  ;;  %v999_v56 = vpop.permute.xlu0 %998 }
  0xbf   : > { %v2197_v57 = vpop.permute.xlu1 %2196  ;;  %v1017_v60 = vsel %vm1016_vm8, %v999_v56, %v2183_v27  ;;  %vm1271_vm8 = vcmask 367616  }
  0xc0   : > { %v2198_v62 = vunpack.i.l.bf16 %v2197_v57  ;;  %654 = vrot.lane.b32.xlu0 %v2688_v10, %s2624_s11  ;;  %v1619_v0 = vpack.c.bf16 %v1017_v60, %v978_v23  ;;  %v2199_v63 = vunpack.i.h.bf16 %v2197_v57  ;;  %s210_s11 = scalar_lea.vmem %s3475_s4, %s2001_s8 }
  0xc1   : > { %2431 = vrot.lane.b32.xlu1 %v2779_v44, %s2627_s14 }
  0xc2   : > { %v416_v2 = vsel %vm414_vm9, %v2189_v61, %v2198_v62  ;;  %432 = vst.msk [vmem:[#allocation2 + $0x100] sm:$0xff] %vm232_vm1, %v2198_v62  ;;  %v2202_v1 = vpop.permute.xlu0 %2201  ;;  %v1397_v5 = vld [vmem:[#allocation2 + $0x120] sm:$0xff]  ;;  %1715 = vmatpush1.bf16.msra.mxu1 %v1619_v0  ;;  %v2124_v62 = vunpack.i.h.bf16 %v2915_v50 }
  0xc3   : > { %v2207_v7 = vpop.permute.xlu1 %2206  ;;  %v2204_v11 = vunpack.i.h.bf16 %v2202_v1  ;;  %v2203_v12 = vunpack.i.l.bf16 %v2202_v1  ;;  %v1571_v13 = vpack.c.bf16 %v460_v53, %v1397_v5 }
  0xc4   : > { %v2209_v15 = vunpack.i.h.bf16 %v2207_v7  ;;  %v2208_v4 = vunpack.i.l.bf16 %v2207_v7  ;;  %1247 = vrot.lane.b32.xlu0 %v2711_v18, %s2625_s12 }
  0xc5   : > { %v415_v16 = vsel %vm414_vm9, %v2204_v11, %v2189_v61  ;;  %v418_v44 = vsel %vm414_vm9, %v2199_v63, %v2203_v12  ;;  %435 = vst.msk [vmem:[#allocation2 + $0x118] sm:$0xff] %vm232_vm1, %v2203_v12  ;;  %2436 = vrot.lane.b32.xlu1 %v2764_v41, %s2628_s18  ;;  %1672 = vmatpush1.bf16.msra.mxu0 %v1571_v13 }
  0xc6   : > { %954 = vst.msk [vmem:[#allocation2 + $0x400] sm:$0xf] %vm239_vm2, %v2209_v15  ;;  %v936_v17 = vsel %vm930_vm11, %v2208_v4, %v2209_v15  ;;  %v2212_v19 = vpop.permute.xlu0 %2211  ;;  %v1569_v22 = vpack.c.bf16 %v418_v44, %v416_v2 }
  0xc7   : > { %953 = vst [vmem:[#allocation2 + $0x3f8] sm:$0xf] %v936_v17  ;;  %v2217_v26 = vpop.permute.xlu1 %2216  ;;  %v2214_v27 = vunpack.i.h.bf16 %v2212_v19  ;;  %v2213_v30 = vunpack.i.l.bf16 %v2212_v19 }
  0xc8   : > { %v2219_v32 = vunpack.i.h.bf16 %v2217_v26  ;;  %v2218_v33 = vunpack.i.l.bf16 %v2217_v26  ;;  %2441 = vrot.lane.b32.xlu0 %v2787_v45, %s2626_s13  ;;  %1673 = vmatprep.subr.bf16.mxu0 %v1569_v22 }
  0xc9   : > { %v975_v34 = vsel %vm973_vm10, %v2194_v24, %v2213_v30  ;;  %991 = vst.msk [vmem:[#allocation2 + $0x400] sm:$0xf0] %vm302_vm5, %v2213_v30  ;;  %2446 = vrot.lane.b32.xlu1 %v2792_v46, %s2626_s13  ;;  %v2123_v30 = vunpack.i.l.bf16 %v2915_v50 }
  0xca   : > { %v974_v37 = vsel %vm973_vm10, %v2219_v32, %v2194_v24  ;;  %994 = vst.msk [vmem:[#allocation2 + $0x418] sm:$0xff] %vm232_vm1, %v2218_v33  ;;  %v977_v38 = vsel %vm973_vm10, %v2214_v27, %v2218_v33  ;;  %990 = vst [vmem:[#allocation2 + $0x3f8] sm:$0xf0] %v975_v34  ;;  %v403_v51 = vpop.permute.xlu0 %402 }
  0xcb   : > { %989 = vst [vmem:[#allocation2 + $0x3f0] sm:$0xf0] %v974_v37  ;;  %v2222_v53 = vpop.permute.xlu1 %2221  ;;  %v417_v54 = vsel %vm414_vm9, %v403_v51, %v2199_v63  ;;  %vm629_vm9 = vcmask 850944  }
  0xcc   : > { %v2223_v55 = vunpack.i.l.bf16 %v2222_v53  ;;  %2451 = vrot.lane.b32.xlu0 %v2754_v39, %s2629_s19  ;;  %v1568_v23 = vpack.c.bf16 %v417_v54, %v415_v16  ;;  %v2224_v13 = vunpack.i.h.bf16 %v2222_v53 }
  0xcd   : > { %2456 = vrot.lane.b32.xlu1 %v2759_v40, %s2627_s14 }
  0xce   : > { %v935_v56 = vsel %vm930_vm11, %v2223_v55, %v2208_v4  ;;  %v962_v57 = vpop.permute.xlu0 %961  ;;  %1674 = vmatpush1.bf16.msra.mxu0 %v1568_v23 }
  0xcf   : > { %952 = vst [vmem:[#allocation2 + $0x3f0] sm:$0xf] %v935_v56  ;;  %v2227_v60 = vpop.permute.xlu1 %2226  ;;  %v976_v61 = vsel %vm973_vm10, %v962_v57, %v2214_v27  ;;  %vm1219_vm10 = vcmask 375808  }
  0xd0   : > { %v2228_v0 = vunpack.i.l.bf16 %v2227_v60  ;;  %2461 = vrot.lane.b32.xlu0 %v2799_v47, %s2628_s18  ;;  %v2229_v63 = vunpack.i.h.bf16 %v2227_v60 }
  0xd1   : > { %617 = vrot.lane.b32.xlu1 %v2727_v25, %s2626_s13  ;;  %v1488_v40 = vld [vmem:[#allocation2 + $0x3f8] sm:$0xff] }
  0xd2   : > { %v375_v2 = vsel %vm371_vm12, %v2124_v62, %v2228_v0  ;;  %392 = vst.msk [vmem:[#allocation2 + $0xd0] sm:$0xff] %vm232_vm1, %v2228_v0  ;;  %v2232_v1 = vpop.permute.xlu0 %2231  ;;  %v1617_v5 = vpack.c.bf16 %v977_v38, %v1488_v40  ;;  %v2591_v0 = vld [vmem:[#allocation2 + $0x8] sm:$0xff] }
  0xd3   : > { %v2237_v7 = vpop.permute.xlu1 %2236  ;;  %v2234_v11 = vunpack.i.h.bf16 %v2232_v1  ;;  %v2233_v12 = vunpack.i.l.bf16 %v2232_v1 }
  0xd4   : > { %v2238_v15 = vunpack.i.l.bf16 %v2237_v7  ;;  %2466 = vrot.lane.b32.xlu0 %v2772_v43, %s2629_s19  ;;  %1716 = vmatprep.subr.bf16.mxu1 %v1617_v5  ;;  %v2239_v47 = vunpack.i.h.bf16 %v2237_v7 }
  0xd5   : > { %v374_v4 = vsel %vm371_vm12, %v2234_v11, %v2124_v62  ;;  %v377_v16 = vsel %vm371_vm12, %v2229_v63, %v2233_v12  ;;  %395 = vst.msk [vmem:[#allocation2 + $0xe8] sm:$0xff] %vm232_vm1, %v2233_v12  ;;  %1195 = vrot.lane.b32.xlu1 %v2688_v10, %s2627_s14 }
  0xd6   : > { %v932_v44 = vsel %vm930_vm11, %v2224_v13, %v2238_v15  ;;  %948 = vst.msk [vmem:[#allocation2 + $0x3d0] sm:$0xff] %vm232_vm1, %v2238_v15  ;;  %v2242_v17 = vpop.permute.xlu0 %2241  ;;  %v1487_v19 = vld [vmem:[#allocation2 + $0x3f0] sm:$0xff]  ;;  %v1566_v22 = vpack.c.bf16 %v377_v16, %v375_v2 }
  0xd7   : > { %v2247_v24 = vpop.permute.xlu1 %2246  ;;  %v2244_v43 = vunpack.i.h.bf16 %v2242_v17  ;;  %v2243_v26 = vunpack.i.l.bf16 %v2242_v17  ;;  %v1616_v27 = vpack.c.bf16 %v976_v61, %v1487_v19 }
  0xd8   : > { %v2249_v32 = vunpack.i.h.bf16 %v2247_v24  ;;  %v2248_v33 = vunpack.i.l.bf16 %v2247_v24  ;;  %2471 = vrot.lane.b32.xlu0 %v2807_v48, %s2628_s18  ;;  %1675 = vmatprep.subr.bf16.mxu0 %v1566_v22 }
  0xd9   : > { %v931_v10 = vsel %vm930_vm11, %v2244_v43, %v2224_v13  ;;  %v934_v34 = vsel %vm930_vm11, %v2239_v47, %v2243_v26  ;;  %951 = vst.msk [vmem:[#allocation2 + $0x3e8] sm:$0xff] %vm232_vm1, %v2243_v26  ;;  %2476 = vrot.lane.b32.xlu1 %v2812_v49, %s2628_s18  ;;  %1717 = vmatpush1.bf16.msra.mxu1 %v1616_v27 }
  0xda   : > { %v372_v37 = vsel %vm371_vm12, %v2123_v30, %v2249_v32  ;;  %v376_v50 = vsel %vm371_vm12, %v2248_v33, %v2229_v63  ;;  %v919_v38 = vpop.permute.xlu0 %918  ;;  %v1614_v51 = vpack.c.bf16 %v934_v34, %v932_v44  ;;  %v2495_v63 = vpack.i.bf16 %v2591_v0, %v2684_v6  ;;  %v1368_v33 = vld [vmem:[#allocation2 + $0x38] sm:$0xff] }
  0xdb   : > { %387 = vst [vmem:[#allocation2 + $0xa8] sm:$0xf0] %v372_v37  ;;  %v358_v53 = vpop.permute.xlu1 %357  ;;  %v933_v48 = vsel %vm930_vm11, %v919_v38, %v2239_v47  ;;  %v1565_v54 = vpack.c.bf16 %v376_v50, %v374_v4  ;;  %v1362_v50 = vld [vmem:[#allocation2 + $0x8] sm:$0xff]  ;;  %v1365_v38 = vld [vmem:[#allocation2 + $0x20] sm:$0xff]  ;;  %vm586_vm11 = vcmask 859136  }
  0xdc   : > { %v373_v55 = vsel %vm371_vm12, %v2249_v32, %v358_v53  ;;  %389 = vst.msk [vmem:[#allocation2 + $0xb8] sm:$0xf0] %vm302_vm5, %v358_v53  ;;  %2481 = vrot.lane.b32.xlu0 %v2764_v41, %s2630_s21  ;;  %1718 = vmatprep.subr.bf16.mxu1 %v1614_v51  ;;  %v1613_v49 = vpack.c.bf16 %v933_v48, %v931_v10  ;;  %v2594_v10 = vld [vmem:[#allocation2] sm:$0xff]  ;;  %vm1167_vm12 = vcmask 384000  }
  0xdd   : > { %388 = vst [vmem:[#allocation2 + $0xb0] sm:$0xf0] %v373_v55  ;;  %2486 = vrot.lane.b32.xlu1 %v2787_v45, %s2629_s19  ;;  %1676 = vmatpush1.bf16.msra.mxu0 %v1565_v54  ;;  %v3052_v45 = vld [vmem:[#allocation2 + $0x18] sm:$0xff]  ;;  %v2515_v34 = vpack.i.bf16 %v2594_v10, %v2698_v14  ;;  %v1557_v54 = vpack.c.bf16 %v2888_v20, %v1368_v33 }
  0xde   : > { %v2252_v23 = vpop.permute.xlu0 %2251  ;;  %1719 = vmatpush1.bf16.msra.mxu1 %v1613_v49  ;;  %v1554_v49 = vpack.c.bf16 %v1365_v38, %v1362_v50  ;;  %v1364_v20 = vld [vmem:[#allocation2 + $0x18] sm:$0xff] }
  0xdf   : > { %v2257_v56 = vpop.permute.xlu1 %2256  ;;  %v2254_v57 = vunpack.i.h.bf16 %v2252_v23  ;;  %v2253_v60 = vunpack.i.l.bf16 %v2252_v23  ;;  %v1361_v23 = vld [vmem:[#allocation2] sm:$0xff] }
  0xe0   : > { %v2259_v61 = vunpack.i.h.bf16 %v2257_v56  ;;  %v2258_v62 = vunpack.i.l.bf16 %v2257_v56  ;;  %2491 = vrot.lane.b32.xlu0 %v2792_v46, %s2629_s19  ;;  %v1553_v0 = vpack.c.bf16 %v1364_v20, %v1361_v23 }
  0xe1   : > { %908 = vst.msk [vmem:[#allocation2 + $0x3a0] sm:$0xff] %vm232_vm1, %v2254_v57  ;;  %v891_v40 = vsel %vm887_vm13, %v2253_v60, %v2254_v57  ;;  %574 = vrot.lane.b32.xlu1 %v3052_v45, %s2628_s18  ;;  %v1556_v57 = vpack.c.bf16 %v2891_v21, %v1367_v58 }
  0xe2   : > { %911 = vst.msk [vmem:[#allocation2 + $0x3b8] sm:$0xff] %vm232_vm1, %v2259_v61  ;;  %v893_v2 = vsel %vm887_vm13, %v2258_v62, %v2259_v61  ;;  %v2262_v1 = vpop.permute.xlu0 %2261  ;;  %v1382_v11 = vld [vmem:[#allocation2 + $0xa8] sm:$0xff] }
  0xe3   : > { %v2267_v5 = vpop.permute.xlu1 %2266  ;;  %v2264_v46 = vunpack.i.h.bf16 %v2262_v1  ;;  %v2263_v7 = vunpack.i.l.bf16 %v2262_v1  ;;  %v1611_v12 = vpack.c.bf16 %v893_v2, %v891_v40  ;;  %v1562_v22 = vpack.c.bf16 %v1382_v11, %v2875_v8 }
  0xe4   : > { %v2269_v13 = vunpack.i.h.bf16 %v2267_v5  ;;  %v2268_v15 = vunpack.i.l.bf16 %v2267_v5  ;;  %2496 = vrot.lane.b32.xlu0 %v2495_v63, %s2630_s21  ;;  %v1383_v47 = vld [vmem:[#allocation2 + $0xb0] sm:$0xff] }
  0xe5   : > { %v892_v4 = vsel %vm887_vm13, %v2264_v46, %v2258_v62  ;;  %v890_v16 = vsel %vm887_vm13, %v2263_v7, %v2253_v60  ;;  %1151 = vrot.lane.b32.xlu1 %v2727_v25, %s2629_s19  ;;  %v1563_v44 = vpack.c.bf16 %v1383_v47, %v2878_v9  ;;  %1720 = vmatprep.subr.bf16.mxu1 %v1611_v12  ;;  %v2593_v25 = vld [vmem:[#allocation2 + $0x20] sm:$0xff] }
  0xe6   : > { %865 = vst.msk [vmem:[#allocation2 + $0x370] sm:$0xff] %vm232_vm1, %v2269_v13  ;;  %v3066_v17 = vsel %vm844_vm14, %v2268_v15, %v2269_v13  ;;  %v2272_v19 = vpop.permute.xlu0 %2271  ;;  %v1610_v24 = vpack.c.bf16 %v892_v4, %v890_v16  ;;  %v2510_v9 = vpack.i.bf16 %v2593_v25, %v2678_v3  ;;  %v2525_v62 = vpack.i.bf16 %v2698_v14, %v2593_v25 }
  0xe7   : > { %v2277_v43 = vpop.permute.xlu1 %2276  ;;  %v2274_v26 = vunpack.i.h.bf16 %v2272_v19  ;;  %v2273_v27 = vunpack.i.l.bf16 %v2272_v19  ;;  %1677 = vmatprep.subr.bf16.mxu0 %v1563_v44  ;;  %v2550_v16 = vpack.i.bf16 %v2684_v6, %v3052_v45  ;;  %v2596_v6 = vld [vmem:[%s2673_s20 + $0x18] sm:$0xff] }
  0xe8   : > { %v2279_v30 = vunpack.i.h.bf16 %v2277_v43  ;;  %v2278_v32 = vunpack.i.l.bf16 %v2277_v43  ;;  %2501 = vrot.lane.b32.xlu0 %v2740_v31, %s2631_s22  ;;  %1678 = vmatpush1.bf16.msra.mxu0 %v1562_v22 }
  0xe9   : > { %868 = vst.msk [vmem:[#allocation2 + $0x388] sm:$0xf] %vm239_vm2, %v2274_v26  ;;  %v850_v8 = vsel %vm844_vm14, %v2273_v27, %v2274_v26  ;;  %2506 = vrot.lane.b32.xlu1 %v2754_v39, %s2631_s22  ;;  %1679 = vmatprep.subr.bf16.mxu0 %v1560_v35  ;;  %v2597_v26 = vld [vmem:[%s2673_s20 + $0x28] sm:$0x33] }
  0xea   : > { %905 = vst.msk [vmem:[#allocation2 + $0x388] sm:$0xf0] %vm302_vm5, %v2279_v30  ;;  %v889_v37 = vsel %vm887_vm13, %v2278_v32, %v2279_v30  ;;  %867 = vst [vmem:[#allocation2 + $0x380] sm:$0xf] %v850_v8  ;;  %v2282_v3 = vpop.permute.xlu0 %2281  ;;  %1721 = vmatpush1.bf16.msra.mxu1 %v1610_v24 }
  0xeb   : > { %904 = vst [vmem:[#allocation2 + $0x380] sm:$0xf0] %v889_v37  ;;  %v870_v51 = vpop.permute.xlu1 %869  ;;  %v2284_v53 = vunpack.i.h.bf16 %v2282_v3  ;;  %v2283_v48 = vunpack.i.l.bf16 %v2282_v3 }
  0xec   : > { %v888_v29 = vsel %vm887_vm13, %v870_v51, %v2278_v32  ;;  %2511 = vrot.lane.b32.xlu0 %v2510_v9, %s2630_s21  ;;  %1680 = vmatpush1.bf16.msra.mxu0 %v1559_v36  ;;  %v3141_v51 = vld [vmem:[%s3471_s0 + $0xc] ss:$16 sps:$4 sm:$0xff]   ;;  %vm1110_vm13 = vcmask 392192  }
  0xed   : > { %903 = vst [vmem:[#allocation2 + $0x378] sm:$0xf0] %v888_v29  ;;  %v847_v35 = vsel %vm844_vm14, %v2283_v48, %v2268_v15  ;;  %v849_v55 = vsel %vm844_vm14, %v2284_v53, %v2273_v27  ;;  %2516 = vrot.lane.b32.xlu1 %v2515_v34, %s2630_s21  ;;  %1681 = vmatprep.subr.bf16.mxu0 %v1557_v54  ;;  %v3122_v27 = vunpack.c.h.bf16 %v2597_v26  ;;  %v3151_v29 = vld [vmem:[%s3471_s0 + $0x4] ss:$16 sps:$4 sm:$0xff]  }
  0xee   : > { %866 = vst [vmem:[#allocation2 + $0x378] sm:$0xf] %v849_v55  ;;  %v2287_v56 = vpop.permute.xlu0 %2286  ;;  %1744 = vmatprep.mubr.bf16.mxu1 %v3141_v51  ;;  %1701 = vmatprep.mubr.bf16.mxu0 %v3151_v29 }
  0xef   : > { %v2292_v60 = vpop.permute.xlu1 %2291  ;;  %v2289_v61 = vunpack.i.h.bf16 %v2287_v56  ;;  %v2288_v59 = vunpack.i.l.bf16 %v2287_v56  ;;  %v1141_v3 = vrot.slane %v3122_v27, 4 }
  0xf0   : > { %v2294_v28 = vunpack.i.h.bf16 %v2292_v60  ;;  %v2293_v36 = vunpack.i.l.bf16 %v2292_v60  ;;  %2521 = vrot.lane.b32.xlu0 %v2836_v52, %s2631_s22  ;;  %1682 = vmatpush1.bf16.msra.mxu0 %v1556_v57 }
  0xf1   : > { %825 = vst.msk [vmem:[#allocation2 + $0x340] sm:$0xff] %vm232_vm1, %v2289_v61  ;;  %v807_v63 = vsel %vm801_vm15, %v2288_v59, %v2289_v61  ;;  %1094 = vrot.lane.b32.xlu1 %v3052_v45, %s2630_s21  ;;  %1683 = vmatprep.subr.bf16.mxu0 %v1554_v49  ;;  %v3119_v45 = vunpack.c.h.bf16 %v2596_v6 }
  0xf2   : > { %862 = vst.msk [vmem:[#allocation2 + $0x358] sm:$0xff] %vm232_vm1, %v2294_v28  ;;  %v846_v21 = vsel %vm844_vm14, %v2293_v36, %v2294_v28  ;;  %v2297_v40 = vpop.permute.xlu0 %2296  ;;  %v1473_v2 = vld [vmem:[#allocation2 + $0x380] sm:$0xff] }
  0xf3   : > { %v827_v1 = vpop.permute.xlu1 %826  ;;  %v2298_v5 = vunpack.i.l.bf16 %v2297_v40  ;;  %v1608_v46 = vpack.c.bf16 %v1473_v2, %v3066_v17  ;;  %v1605_v44 = vpack.c.bf16 %v846_v21, %v807_v63  ;;  %v2299_v17 = vunpack.i.h.bf16 %v2297_v40 }
  0xf4   : > { %v845_v14 = vsel %vm844_vm14, %v827_v1, %v2293_v36  ;;  %2526 = vrot.lane.b32.xlu0 %v2525_v62, %s2611_s25  ;;  %1684 = vmatpush1.bf16.msra.mxu0 %v1553_v0  ;;  %v1139_v37 = vrot.slane %v3119_v45, 4  ;;  %v2570_v0 = vpack.i.bf16 %v3122_v27, %v3119_v45  ;;  %vm543_vm14 = vcmask 867328  }
  0xf5   : > { %v806_v7 = vsel %vm801_vm15, %v2298_v5, %v2288_v59  ;;  %2531 = vrot.lane.b32.xlu1 %v2764_v41, %s2611_s25  ;;  %1722 = vmatprep.subr.bf16.mxu1 %v1608_v46  ;;  %v1472_v11 = vld [vmem:[#allocation2 + $0x378] sm:$0xff]  ;;  %v2595_v41 = vld [vmem:[%s2673_s20 + $0x8] sm:$0xff] }
  0xf6   : > { %v2302_v12 = vpop.permute.xlu0 %2301  ;;  %v1607_v13 = vpack.c.bf16 %v1472_v11, %v847_v35  ;;  %v3112_v22 = vunpack.c.h.bf16 %v2595_v41  ;;  %v1604_v32 = vpack.c.bf16 %v845_v14, %v806_v7 }
  0xf7   : > { %v2307_v15 = vpop.permute.xlu1 %2306  ;;  %v2304_v47 = vunpack.i.h.bf16 %v2302_v12  ;;  %v2303_v4 = vunpack.i.l.bf16 %v2302_v12 }
  0xf8   : > { %v2308_v19 = vunpack.i.l.bf16 %v2307_v15  ;;  %2536 = vrot.lane.b32.xlu0 %v2768_v42, %s2631_s22  ;;  %1723 = vmatpush1.bf16.msra.mxu1 %v1607_v13  ;;  %v2309_v24 = vunpack.i.h.bf16 %v2307_v15  ;;  %v2560_v58 = vpack.i.bf16 %v3112_v22, %v3122_v27 }
  0xf9   : > { %782 = vst.msk [vmem:[#allocation2 + $0x310] sm:$0xf] %vm239_vm2, %v2304_v47  ;;  %v764_v43 = vsel %vm758_vm3, %v2303_v4, %v2304_v47  ;;  %2541 = vrot.lane.b32.xlu1 %v2740_v31, %s2613_s27  ;;  %1724 = vmatprep.subr.bf16.mxu1 %v1605_v44  ;;  %v3129_v31 = vrot.slane %v3112_v22, 4 }
  0xfa   : > { %v803_v42 = vsel %vm801_vm15, %v2299_v17, %v2308_v19  ;;  %819 = vst.msk [vmem:[#allocation2 + $0x310] sm:$0xf0] %vm302_vm5, %v2308_v19  ;;  %781 = vst [vmem:[#allocation2 + $0x308] sm:$0xf] %v764_v43  ;;  %v2312_v30 = vpop.permute.xlu0 %2311 }
  0xfb   : > { %818 = vst [vmem:[#allocation2 + $0x308] sm:$0xf0] %v803_v42  ;;  %v2317_v25 = vpop.permute.xlu1 %2316  ;;  %v2314_v9 = vunpack.i.h.bf16 %v2312_v30  ;;  %v2313_v33 = vunpack.i.l.bf16 %v2312_v30  ;;  %v3158_v55 = vsel %vm250_vm0, %v3129_v31, %v1139_v37  ;;  %v2598_v42 = vld [vmem:[#allocation2 + $0x5f0] sm:$0xff] }
  0xfc   : > { %v2318_v8 = vunpack.i.l.bf16 %v2317_v25  ;;  %2546 = vrot.lane.b32.xlu0 %v2754_v39, %s2613_s27  ;;  %1725 = vmatpush1.bf16.msra.mxu1 %v1604_v32  ;;  %v2319_v50 = vunpack.i.h.bf16 %v2317_v25 }
  0xfd   : > { %v802_v10 = vsel %vm801_vm15, %v2314_v9, %v2299_v17  ;;  %v805_v34 = vsel %vm801_vm15, %v2309_v24, %v2313_v33  ;;  %822 = vst.msk [vmem:[#allocation2 + $0x328] sm:$0xff] %vm232_vm1, %v2313_v33  ;;  %2551 = vrot.lane.b32.xlu1 %v2550_v16, %s2611_s25  ;;  %v2575_v33 = vpack.i.bf16 %v3158_v55, %v3129_v31 }
  0xfe   : > { %v763_v38 = vsel %vm758_vm3, %v2318_v8, %v2303_v4  ;;  %817 = vst [vmem:[#allocation2 + $0x300] sm:$0xf0] %v802_v10  ;;  %v790_v39 = vpop.permute.xlu0 %789  ;;  %v2580_v10 = vpack.i.bf16 %v3119_v45, %v3112_v22 }
  0xff   : > { %780 = vst [vmem:[#allocation2 + $0x300] sm:$0xf] %v763_v38  ;;  %v2322_v53 = vpop.permute.xlu1 %2321  ;;  %v804_v48 = vsel %vm801_vm15, %v790_v39, %v2309_v24 }
 0x100   : > { %v2323_v54 = vunpack.i.l.bf16 %v2322_v53  ;;  %525 = vrot.lane.b32.xlu0 %v2711_v18, %s2631_s22  ;;  %v2324_v35 = vunpack.i.h.bf16 %v2322_v53  ;;  %v1142_v18 = vsel %vm250_vm0, %v1139_v37, %v1141_v3  ;;  %vm715_vm0 = vcmask 711680  }
 0x101   : > { %2556 = vrot.lane.b32.xlu1 %v2836_v52, %s2613_s27  ;;  %v2565_v28 = vpack.i.bf16 %v1142_v18, %v3158_v55 }
 0x102   : > { %v760_v49 = vsel %vm758_vm3, %v2319_v50, %v2323_v54  ;;  %776 = vst.msk [vmem:[#allocation2 + $0x2e0] sm:$0xff] %vm232_vm1, %v2323_v54  ;;  %v2327_v23 = vpop.permute.xlu0 %2326  ;;  %v1458_v20 = vld [vmem:[#allocation2 + $0x308] sm:$0xff] }
 0x103   : > { %v3164_v56 = vpop.permute.xlu1 %2331  ;;  %v2329_v57 = vunpack.i.h.bf16 %v2327_v23  ;;  %v2328_v60 = vunpack.i.l.bf16 %v2327_v23  ;;  %v1602_v52 = vpack.c.bf16 %v805_v34, %v1458_v20 }
 0x104   : > { %v2334_v61 = vunpack.i.h.bf16 %v3164_v56  ;;  %v2333_v59 = vunpack.i.l.bf16 %v3164_v56  ;;  %2561 = vrot.lane.b32.xlu0 %v2560_v58, %s2622_s9 }
 0x105   : > { %v759_v36 = vsel %vm758_vm3, %v2329_v57, %v2319_v50  ;;  %v762_v62 = vsel %vm758_vm3, %v2324_v35, %v2328_v60  ;;  %779 = vst.msk [vmem:[#allocation2 + $0x2f8] sm:$0xff] %vm232_vm1, %v2328_v60  ;;  %1313 = vrot.lane.b32.xlu1 %v3119_v45, %s2622_s9  ;;  %1726 = vmatprep.subr.bf16.mxu1 %v1602_v52 }
 0x106   : > { %v1331_v63 = vsel %vm1323_vm4, %v2333_v59, %v2334_v61  ;;  %v747_v21 = vpop.permute.xlu0 %746  ;;  %v1457_v40 = vld [vmem:[#allocation2 + $0x300] sm:$0xff]  ;;  %v1599_v2 = vpack.c.bf16 %v762_v62, %v760_v49 }
 0x107   : > { %1349 = vst [vmem:[#allocation2 + $0x5d8] sm:$0xf] %v1331_v63  ;;  %v2337_v1 = vpop.permute.xlu1 %2336  ;;  %v761_v5 = vsel %vm758_vm3, %v747_v21, %v2324_v35  ;;  %v1601_v46 = vpack.c.bf16 %v804_v48, %v1457_v40 }
 0x108   : > { %v2338_v14 = vunpack.i.l.bf16 %v2337_v1  ;;  %2566 = vrot.lane.b32.xlu0 %v2565_v28, %s2625_s12  ;;  %1685 = vmatprep.subr.bf16.mxu0 %v1599_v2  ;;  %v1598_v7 = vpack.c.bf16 %v761_v5, %v759_v36  ;;  %v2339_v17 = vunpack.i.h.bf16 %v2337_v1 }
 0x109   : > { %2571 = vrot.lane.b32.xlu1 %v2570_v0, %s2627_s14  ;;  %1727 = vmatpush1.bf16.msra.mxu1 %v1601_v46 }
 0x10a   : > { %v1330_v11 = vsel %vm1323_vm4, %v2338_v14, %v2333_v59  ;;  %v2342_v12 = vpop.permute.xlu0 %2341  ;;  %1686 = vmatpush2.bf16.msra.mxu0 %v1598_v7 }
 0x10b   : > { %1348 = vst [vmem:[#allocation2 + $0x5d0] sm:$0xf] %v1330_v11  ;;  %v2347_v13 = vpop.permute.xlu1 %2346  ;;  %v2344_v15 = vunpack.i.h.bf16 %v2342_v12  ;;  %v2343_v47 = vunpack.i.l.bf16 %v2342_v12 }
 0x10c   : > { %v2349_v4 = vunpack.i.h.bf16 %v2347_v13  ;;  %v2348_v16 = vunpack.i.l.bf16 %v2347_v13  ;;  %1253 = vrot.lane.b32.xlu0 %v3129_v31, %s2625_s12 }
 0x10d   : > { %736 = vst.msk [vmem:[#allocation2 + $0x2b0] sm:$0xff] %vm232_vm1, %v2344_v15  ;;  %v719_v44 = vsel %vm715_vm0, %v2343_v47, %v2344_v15  ;;  %1165 = vrot.lane.b32.xlu1 %v1142_v18, %s2629_s19 }
 0x10e   : > { %739 = vst.msk [vmem:[#allocation2 + $0x2c8] sm:$0xff] %vm232_vm1, %v2349_v4  ;;  %v721_v19 = vsel %vm715_vm0, %v2348_v16, %v2349_v4  ;;  %v3191_v41 = vpop.permute.xlu0 %2351  ;;  %v1548_v24 = vld [vmem:[#allocation2 + $0x5d8] sm:$0xff] }
 0x10f   : > { %v3193_v43 = vpop.permute.xlu1 %2356  ;;  %v2354_v6 = vunpack.i.h.bf16 %v3191_v41  ;;  %v2353_v26 = vunpack.i.l.bf16 %v3191_v41  ;;  %v1647_v30 = vpack.c.bf16 %v2598_v42, %v1548_v24  ;;  %v1596_v32 = vpack.c.bf16 %v721_v19, %v719_v44 }
 0x110   : > { %v2359_v25 = vunpack.i.h.bf16 %v3193_v43  ;;  %v2358_v9 = vunpack.i.l.bf16 %v3193_v43  ;;  %1201 = vrot.lane.b32.xlu0 %v3112_v22, %s2627_s14 }
 0x111   : > { %v1325_v8 = vsel %vm1323_vm4, %v2339_v17, %v2353_v26  ;;  %1108 = vrot.lane.b32.xlu1 %v3122_v27, %s2630_s21  ;;  %1728 = vmatprep.subr.bf16.mxu1 %v1647_v30 }
 0x112   : > { %v1324_v34 = vsel %vm1323_vm4, %v2359_v25, %v2339_v17  ;;  %v1328_v37 = vsel %vm1323_vm4, %v2354_v6, %v2358_v9  ;;  %v2362_v3 = vpop.permute.xlu0 %2361  ;;  %v1547_v50 = vld [vmem:[#allocation2 + $0x5d0] sm:$0xff]  ;;  %1687 = vmatprep.subr.bf16.mxu0 %v1596_v32 }
 0x113   : > { %v1308_v31 = vpop.permute.xlu1 %1307  ;;  %v2364_v38 = vunpack.i.h.bf16 %v2362_v3  ;;  %v2363_v39 = vunpack.i.l.bf16 %v2362_v3  ;;  %v1646_v53 = vpack.c.bf16 %v2598_v42, %v1547_v50  ;;  %v1644_v48 = vpack.c.bf16 %v1328_v37, %v1325_v8 }
 0x114   : > { %v1327_v27 = vsel %vm1323_vm4, %v1308_v31, %v2354_v6  ;;  %2576 = vrot.lane.b32.xlu0 %v2575_v33, %s2629_s19 }
 0x115   : > { %v720_v22 = vsel %vm715_vm0, %v2364_v38, %v2348_v16  ;;  %v718_v45 = vsel %vm715_vm0, %v2363_v39, %v2343_v47  ;;  %2581 = vrot.lane.b32.xlu1 %v2580_v10, %s2630_s21  ;;  %1729 = vmatpush2.bf16.msra.mxu1 %v1646_v53  ;;  %v1643_v49 = vpack.c.bf16 %v1327_v27, %v1324_v34 }
 0x116   : > { %v2367_v54 = vpop.permute.xlu0 %2366  ;;  %1730 = vmatprep.subr.bf16.mxu1 %v1644_v48  ;;  %v1595_v58 = vpack.c.bf16 %v720_v22, %v718_v45 }
 0x117   : > { %v2372_v35 = vpop.permute.xlu1 %2371  ;;  %v2369_v55 = vunpack.i.h.bf16 %v2367_v54  ;;  %v2368_v18 = vunpack.i.l.bf16 %v2367_v54 }
 0x118   : > { %v2374_v23 = vunpack.i.h.bf16 %v2372_v35  ;;  %v2373_v20 = vunpack.i.l.bf16 %v2372_v35  ;;  %1688 = vmatpush2.bf16.msra.mxu0 %v1595_v58 }
 0x119   : > { %693 = vst.msk [vmem:[#allocation2 + $0x280] sm:$0xff] %vm232_vm1, %v2369_v55  ;;  %v676_v57 = vsel %vm672_vm6, %v2368_v18, %v2369_v55  ;;  %1731 = vmatpush2.bf16.msra.mxu1 %v1643_v49 }
 0x11a   : > { %696 = vst.msk [vmem:[#allocation2 + $0x298] sm:$0xf] %vm239_vm2, %v2374_v23  ;;  %v678_v60 = vsel %vm672_vm6, %v2373_v20, %v2374_v23  ;;  %v2377_v52 = vpop.permute.xlu0 %2376 }
 0x11b   : > { %695 = vst [vmem:[#allocation2 + $0x290] sm:$0xf] %v678_v60  ;;  %v3223_v59 = vpop.permute.xlu1 %2381  ;;  %v2379_v28 = vunpack.i.h.bf16 %v2377_v52  ;;  %v2378_v36 = vunpack.i.l.bf16 %v2377_v52 }
 0x11c   : > { %v2384_v62 = vunpack.i.h.bf16 %v3223_v59  ;;  %v2383_v0 = vunpack.i.l.bf16 %v3223_v59 }
 0x11d   : > { %733 = vst.msk [vmem:[#allocation2 + $0x298] sm:$0xf0] %vm302_vm5, %v2379_v28  ;;  %v717_v63 = vsel %vm715_vm0, %v2378_v36, %v2379_v28 }
 0x11e   : > { %v1276_v21 = vsel %vm1271_vm8, %v2383_v0, %v2384_v62  ;;  %732 = vst [vmem:[#allocation2 + $0x290] sm:$0xf0] %v717_v63  ;;  %v3232_v40 = vpop.permute.xlu0 %2386 }
 0x11f   : > { %v2392_v2 = vpop.permute.xlu1 %2391  ;;  %v2389_v1 = vunpack.i.h.bf16 %v3232_v40  ;;  %v2388_v5 = vunpack.i.l.bf16 %v3232_v40 }
 0x120   : > { %v2394_v46 = vunpack.i.h.bf16 %v2392_v2  ;;  %v2393_v14 = vunpack.i.l.bf16 %v2392_v2 }
 0x121   : > { %v1279_v7 = vsel %vm1271_vm8, %v2388_v5, %v2389_v1 }
 0x122   : > { %v675_v11 = vsel %vm672_vm6, %v2393_v14, %v2368_v18  ;;  %v677_v12 = vsel %vm672_vm6, %v2394_v46, %v2373_v20  ;;  %v698_v13 = vpop.permute.xlu0 %697  ;;  %v1641_v15 = vpack.c.bf16 %v1279_v7, %v1276_v21 }
 0x123   : > { %694 = vst [vmem:[#allocation2 + $0x288] sm:$0xf] %v677_v12  ;;  %v2397_v47 = vpop.permute.xlu1 %2396  ;;  %v716_v4 = vsel %vm715_vm0, %v698_v13, %v2378_v36 }
 0x124   : > { %v2399_v16 = vunpack.i.h.bf16 %v2397_v47  ;;  %v2398_v44 = vunpack.i.l.bf16 %v2397_v47  ;;  %731 = vst [vmem:[#allocation2 + $0x288] sm:$0xf0] %v716_v4  ;;  %1732 = vmatprep.subr.bf16.mxu1 %v1641_v15 }
 0x125   : > { %v1443_v17 = vld [vmem:[#allocation2 + $0x290] sm:$0xff] }
 0x126   : > { %v1275_v19 = vsel %vm1271_vm8, %v2398_v44, %v2383_v0  ;;  %v1278_v24 = vsel %vm1271_vm8, %v2399_v16, %v2388_v5  ;;  %v2402_v6 = vpop.permute.xlu0 %2401  ;;  %v1593_v42 = vpack.c.bf16 %v1443_v17, %v676_v57 }
 0x127   : > { %v2407_v30 = vpop.permute.xlu1 %2406  ;;  %v2404_v32 = vunpack.i.h.bf16 %v2402_v6  ;;  %v2403_v25 = vunpack.i.l.bf16 %v2402_v6  ;;  %v1640_v33 = vpack.c.bf16 %v1278_v24, %v1275_v19 }
 0x128   : > { %v2409_v8 = vunpack.i.h.bf16 %v2407_v30  ;;  %v2408_v10 = vunpack.i.l.bf16 %v2407_v30  ;;  %1689 = vmatprep.subr.bf16.mxu0 %v1593_v42 }
 0x129   : > { %653 = vst.msk [vmem:[#allocation2 + $0x250] sm:$0xff] %vm232_vm1, %v2404_v32  ;;  %v635_v34 = vsel %vm629_vm9, %v2403_v25, %v2404_v32  ;;  %1733 = vmatpush2.bf16.msra.mxu1 %v1640_v33 }
 0x12a   : > { %690 = vst.msk [vmem:[#allocation2 + $0x268] sm:$0xff] %vm232_vm1, %v2409_v8  ;;  %v674_v37 = vsel %vm672_vm6, %v2408_v10, %v2409_v8  ;;  %v3248_v3 = vpop.permute.xlu0 %2411 }
 0x12b   : > { %v3250_v50 = vpop.permute.xlu1 %2416  ;;  %v2414_v31 = vunpack.i.h.bf16 %v3248_v3  ;;  %v2413_v38 = vunpack.i.l.bf16 %v3248_v3  ;;  %v1442_v39 = vld [vmem:[#allocation2 + $0x288] sm:$0xff]  ;;  %v1590_v45 = vpack.c.bf16 %v674_v37, %v635_v34 }
 0x12c   : > { %v2419_v53 = vunpack.i.h.bf16 %v3250_v50  ;;  %v2418_v48 = vunpack.i.l.bf16 %v3250_v50  ;;  %v1592_v27 = vpack.c.bf16 %v1442_v39, %v675_v11  ;;  %v1552_v50 = vld [vmem:[#allocation2 + $0x5f8] sm:$0xff] }
 0x12d   : > { %v1224_v22 = vsel %vm1219_vm10, %v2413_v38, %v2414_v31 }
 0x12e   : > { %v1227_v54 = vsel %vm1219_vm10, %v2418_v48, %v2419_v53  ;;  %v3262_v58 = vpop.permute.xlu0 %2421  ;;  %1690 = vmatpush2.bf16.msra.mxu0 %v1592_v27 }
 0x12f   : > { %1245 = vst [vmem:[#allocation2 + $0x560] sm:$0xf] %v1227_v54  ;;  %v2427_v35 = vpop.permute.xlu1 %2426  ;;  %v2424_v55 = vunpack.i.h.bf16 %v3262_v58  ;;  %v2423_v18 = vunpack.i.l.bf16 %v3262_v58  ;;  %1691 = vmatprep.subr.bf16.mxu0 %v1590_v45  ;;  %v1402_v58 = vld [vmem:[#allocation2 + $0x148] sm:$0xff] }
 0x130   : > { %v2428_v49 = vunpack.i.l.bf16 %v2427_v35  ;;  %v2429_v47 = vunpack.i.h.bf16 %v2427_v35 }
 0x131   : > { %v1273_v23 = vsel %vm1271_vm8, %v2423_v18, %v2424_v55 }
 0x132   : > { %v634_v20 = vsel %vm629_vm9, %v2428_v49, %v2403_v25  ;;  %1291 = vst [vmem:[#allocation2 + $0x560] sm:$0xf0] %v1273_v23  ;;  %v655_v57 = vpop.permute.xlu0 %654 }
 0x133   : > { %v2432_v60 = vpop.permute.xlu1 %2431  ;;  %v673_v52 = vsel %vm672_vm6, %v655_v57, %v2408_v10 }
 0x134   : > { %v2434_v28 = vunpack.i.h.bf16 %v2432_v60  ;;  %v2433_v36 = vunpack.i.l.bf16 %v2432_v60  ;;  %v1589_v0 = vpack.c.bf16 %v673_v52, %v634_v20 }
 0x136   : > { %v1223_v63 = vsel %vm1219_vm10, %v2433_v36, %v2413_v38  ;;  %v1226_v21 = vsel %vm1219_vm10, %v2434_v28, %v2418_v48  ;;  %v1248_v2 = vpop.permute.xlu0 %1247  ;;  %1692 = vmatpush2.bf16.msra.mxu0 %v1589_v0 }
 0x137   : > { %1244 = vst [vmem:[#allocation2 + $0x558] sm:$0xf] %v1226_v21  ;;  %v2437_v5 = vpop.permute.xlu1 %2436  ;;  %v1272_v46 = vsel %vm1271_vm8, %v1248_v2, %v2423_v18 }
 0x138   : > { %v2439_v14 = vunpack.i.h.bf16 %v2437_v5  ;;  %v2438_v7 = vunpack.i.l.bf16 %v2437_v5  ;;  %1290 = vst [vmem:[#allocation2 + $0x558] sm:$0xf0] %v1272_v46 }
 0x139   : > { %v1533_v11 = vld [vmem:[#allocation2 + $0x560] sm:$0xff] }
 0x13a   : > { %610 = vst.msk [vmem:[#allocation2 + $0x220] sm:$0xf] %vm239_vm2, %v2439_v14  ;;  %v592_v12 = vsel %vm586_vm11, %v2438_v7, %v2439_v14  ;;  %v2442_v13 = vpop.permute.xlu0 %2441  ;;  %v1638_v15 = vpack.c.bf16 %v1533_v11, %v1224_v22 }
 0x13b   : > { %609 = vst [vmem:[#allocation2 + $0x218] sm:$0xf] %v592_v12  ;;  %v2447_v4 = vpop.permute.xlu1 %2446  ;;  %v2444_v16 = vunpack.i.h.bf16 %v2442_v13  ;;  %v2443_v44 = vunpack.i.l.bf16 %v2442_v13 }
 0x13c   : > { %v2449_v17 = vunpack.i.h.bf16 %v2447_v4  ;;  %v2448_v19 = vunpack.i.l.bf16 %v2447_v4  ;;  %1734 = vmatprep.subr.bf16.mxu1 %v1638_v15 }
 0x13d   : > { %v631_v24 = vsel %vm629_vm9, %v2429_v47, %v2443_v44  ;;  %647 = vst.msk [vmem:[#allocation2 + $0x220] sm:$0xf0] %vm302_vm5, %v2443_v44 }
 0x13e   : > { %v630_v6 = vsel %vm629_vm9, %v2449_v17, %v2429_v47  ;;  %650 = vst.msk [vmem:[#allocation2 + $0x238] sm:$0xff] %vm232_vm1, %v2448_v19  ;;  %v633_v42 = vsel %vm629_vm9, %v2444_v16, %v2448_v19  ;;  %646 = vst [vmem:[#allocation2 + $0x218] sm:$0xf0] %v631_v24  ;;  %v3281_v30 = vpop.permute.xlu0 %2451 }
 0x13f   : > { %645 = vst [vmem:[#allocation2 + $0x210] sm:$0xf0] %v630_v6  ;;  %v3283_v32 = vpop.permute.xlu1 %2456  ;;  %v2454_v25 = vunpack.i.h.bf16 %v3281_v30  ;;  %v2453_v33 = vunpack.i.l.bf16 %v3281_v30  ;;  %v1532_v8 = vld [vmem:[#allocation2 + $0x558] sm:$0xff] }
 0x140   : > { %v2459_v10 = vunpack.i.h.bf16 %v3283_v32  ;;  %v2458_v34 = vunpack.i.l.bf16 %v3283_v32  ;;  %v1637_v37 = vpack.c.bf16 %v1532_v8, %v1223_v63 }
 0x141   : > { %v1175_v38 = vsel %vm1167_vm12, %v2453_v33, %v2454_v25 }
 0x142   : > { %v1221_v39 = vsel %vm1219_vm10, %v2458_v34, %v2459_v10  ;;  %v2462_v48 = vpop.permute.xlu0 %2461  ;;  %1735 = vmatpush2.bf16.msra.mxu1 %v1637_v37 }
 0x143   : > { %v618_v27 = vpop.permute.xlu1 %617  ;;  %v2463_v22 = vunpack.i.l.bf16 %v2462_v48  ;;  %v1635_v45 = vpack.c.bf16 %v1221_v39, %v1175_v38  ;;  %v2464_v0 = vunpack.i.h.bf16 %v2462_v48 }
 0x144   : > { %v632_v54 = vsel %vm629_vm9, %v618_v27, %v2444_v16 }
 0x145   : > { %v591_v35 = vsel %vm586_vm11, %v2463_v22, %v2438_v7  ;;  %v1428_v18 = vld [vmem:[#allocation2 + $0x218] sm:$0xff]  ;;  %1736 = vmatprep.subr.bf16.mxu1 %v1635_v45 }
 0x146   : > { %608 = vst [vmem:[#allocation2 + $0x210] sm:$0xf] %v591_v35  ;;  %v2467_v49 = vpop.permute.xlu0 %2466  ;;  %v1587_v23 = vpack.c.bf16 %v633_v42, %v1428_v18 }
 0x147   : > { %v1196_v20 = vpop.permute.xlu1 %1195  ;;  %v2468_v57 = vunpack.i.l.bf16 %v2467_v49  ;;  %v2469_v17 = vunpack.i.h.bf16 %v2467_v49 }
 0x148   : > { %v1220_v60 = vsel %vm1219_vm10, %v1196_v20, %v2458_v34  ;;  %1693 = vmatprep.subr.bf16.mxu0 %v1587_v23 }
 0x149   : > { %v1174_v52 = vsel %vm1167_vm12, %v2468_v57, %v2453_v33 }
 0x14a   : > { %v2472_v28 = vpop.permute.xlu0 %2471  ;;  %v1634_v36 = vpack.c.bf16 %v1220_v60, %v1174_v52 }
 0x14b   : > { %v2477_v63 = vpop.permute.xlu1 %2476  ;;  %v2474_v21 = vunpack.i.h.bf16 %v2472_v28  ;;  %v2473_v2 = vunpack.i.l.bf16 %v2472_v28 }
 0x14c   : > { %v2479_v5 = vunpack.i.h.bf16 %v2477_v63  ;;  %v2478_v46 = vunpack.i.l.bf16 %v2477_v63  ;;  %1737 = vmatpush2.bf16.msra.mxu1 %v1634_v36 }
 0x14d   : > { %v588_v14 = vsel %vm586_vm11, %v2464_v0, %v2473_v2  ;;  %604 = vst.msk [vmem:[#allocation2 + $0x1f0] sm:$0xff] %vm232_vm1, %v2473_v2  ;;  %v1427_v7 = vld [vmem:[#allocation2 + $0x210] sm:$0xff] }
 0x14e   : > { %v587_v11 = vsel %vm586_vm11, %v2479_v5, %v2464_v0  ;;  %607 = vst.msk [vmem:[#allocation2 + $0x208] sm:$0xff] %vm232_vm1, %v2478_v46  ;;  %v590_v12 = vsel %vm586_vm11, %v2474_v21, %v2478_v46  ;;  %v3304_v13 = vpop.permute.xlu0 %2481  ;;  %v1586_v15 = vpack.c.bf16 %v632_v54, %v1427_v7 }
 0x14f   : > { %v3306_v47 = vpop.permute.xlu1 %2486  ;;  %v2484_v4 = vunpack.i.h.bf16 %v3304_v13  ;;  %v2483_v16 = vunpack.i.l.bf16 %v3304_v13  ;;  %v1584_v44 = vpack.c.bf16 %v590_v12, %v588_v14  ;;  %v1435_v13 = vld [vmem:[#allocation2 + $0x250] sm:$0xff] }
 0x150   : > { %v2488_v19 = vunpack.i.l.bf16 %v3306_v47  ;;  %1694 = vmatpush2.bf16.msra.mxu0 %v1586_v15  ;;  %v2489_v24 = vunpack.i.h.bf16 %v3306_v47  ;;  %v1429_v47 = vld [vmem:[#allocation2 + $0x220] sm:$0xff] }
 0x151   : > { %v1118_v6 = vsel %vm1110_vm13, %v2483_v16, %v2484_v4  ;;  %1695 = vmatprep.subr.bf16.mxu0 %v1584_v44 }
 0x152   : > { %v1169_v42 = vsel %vm1167_vm12, %v2469_v17, %v2488_v19  ;;  %1136 = vst [vmem:[#allocation2 + $0x4e8] sm:$0xf] %v1118_v6  ;;  %v3318_v33 = vpop.permute.xlu0 %2491 }
 0x153   : > { %1187 = vst [vmem:[#allocation2 + $0x4e8] sm:$0xf0] %v1169_v42  ;;  %v575_v8 = vpop.permute.xlu1 %574  ;;  %v2494_v34 = vunpack.i.h.bf16 %v3318_v33  ;;  %v2493_v37 = vunpack.i.l.bf16 %v3318_v33 }
 0x154   : > { %v589_v38 = vsel %vm586_vm11, %v575_v8, %v2474_v21 }
 0x155   : > { %v1168_v39 = vsel %vm1167_vm12, %v2494_v34, %v2469_v17  ;;  %v1172_v48 = vsel %vm1167_vm12, %v2489_v24, %v2493_v37  ;;  %v1583_v27 = vpack.c.bf16 %v589_v38, %v587_v11 }
 0x156   : > { %1186 = vst [vmem:[#allocation2 + $0x4e0] sm:$0xf0] %v1168_v39  ;;  %v2497_v22 = vpop.permute.xlu0 %2496 }
 0x157   : > { %v1152_v45 = vpop.permute.xlu1 %1151  ;;  %v2498_v54 = vunpack.i.l.bf16 %v2497_v22  ;;  %1696 = vmatpush2.bf16.msra.mxu0 %v1583_v27  ;;  %v2499_v2 = vunpack.i.h.bf16 %v2497_v22 }
 0x158   : > { %v1171_v35 = vsel %vm1167_vm12, %v1152_v45, %v2489_v24 }
 0x159   : > { %v1117_v18 = vsel %vm1110_vm13, %v2498_v54, %v2483_v16 }
 0x15a   : > { %1135 = vst [vmem:[#allocation2 + $0x4e0] sm:$0xf] %v1117_v18  ;;  %v2502_v49 = vpop.permute.xlu0 %2501  ;;  %v1518_v23 = vld [vmem:[#allocation2 + $0x4e8] sm:$0xff] }
 0x15b   : > { %v2507_v20 = vpop.permute.xlu1 %2506  ;;  %v2504_v57 = vunpack.i.h.bf16 %v2502_v49  ;;  %v2503_v60 = vunpack.i.l.bf16 %v2502_v49  ;;  %v1632_v52 = vpack.c.bf16 %v1172_v48, %v1518_v23 }
 0x15c   : > { %v2509_v28 = vunpack.i.h.bf16 %v2507_v20  ;;  %v2508_v36 = vunpack.i.l.bf16 %v2507_v20 }
 0x15d   : > { %564 = vst.msk [vmem:[#allocation2 + $0x1c0] sm:$0xff] %vm232_vm1, %v2504_v57  ;;  %v547_v0 = vsel %vm543_vm14, %v2503_v60, %v2504_v57  ;;  %1738 = vmatprep.subr.bf16.mxu1 %v1632_v52 }
 0x15e   : > { %567 = vst.msk [vmem:[#allocation2 + $0x1d8] sm:$0xff] %vm232_vm1, %v2509_v28  ;;  %v549_v63 = vsel %vm543_vm14, %v2508_v36, %v2509_v28  ;;  %v3333_v21 = vpop.permute.xlu0 %2511 }
 0x15f   : > { %v3335_v5 = vpop.permute.xlu1 %2516  ;;  %v2514_v46 = vunpack.i.h.bf16 %v3333_v21  ;;  %v2513_v14 = vunpack.i.l.bf16 %v3333_v21  ;;  %v1581_v7 = vpack.c.bf16 %v549_v63, %v547_v0 }
 0x160   : > { %v2519_v11 = vunpack.i.h.bf16 %v3335_v5  ;;  %v2518_v12 = vunpack.i.l.bf16 %v3335_v5  ;;  %v1483_v5 = vld [vmem:[#allocation2 + $0x3d0] sm:$0xff] }
 0x161   : > { %v1112_v15 = vsel %vm1110_vm13, %v2499_v2, %v2513_v14  ;;  %v1517_v16 = vld [vmem:[#allocation2 + $0x4e0] sm:$0xff]  ;;  %1697 = vmatprep.subr.bf16.mxu0 %v1581_v7 }
 0x162   : > { %v1111_v44 = vsel %vm1110_vm13, %v2519_v11, %v2499_v2  ;;  %v1115_v17 = vsel %vm1110_vm13, %v2514_v46, %v2518_v12  ;;  %v2522_v24 = vpop.permute.xlu0 %2521  ;;  %v1631_v6 = vpack.c.bf16 %v1171_v35, %v1517_v16 }
 0x163   : > { %v1095_v42 = vpop.permute.xlu1 %1094  ;;  %v2524_v8 = vunpack.i.h.bf16 %v2522_v24  ;;  %v2523_v34 = vunpack.i.l.bf16 %v2522_v24  ;;  %v1629_v38 = vpack.c.bf16 %v1115_v17, %v1112_v15 }
 0x164   : > { %v1114_v39 = vsel %vm1110_vm13, %v1095_v42, %v2514_v46  ;;  %1739 = vmatpush2.bf16.msra.mxu1 %v1631_v6 }
 0x165   : > { %v548_v48 = vsel %vm543_vm14, %v2524_v8, %v2508_v36  ;;  %v546_v27 = vsel %vm543_vm14, %v2523_v34, %v2503_v60  ;;  %1740 = vmatprep.subr.bf16.mxu1 %v1629_v38  ;;  %v1628_v45 = vpack.c.bf16 %v1114_v39, %v1111_v44 }
 0x166   : > { %v2527_v22 = vpop.permute.xlu0 %2526  ;;  %v1580_v54 = vpack.c.bf16 %v548_v48, %v546_v27 }
 0x167   : > { %v2532_v18 = vpop.permute.xlu1 %2531  ;;  %v2529_v49 = vunpack.i.h.bf16 %v2527_v22  ;;  %v2528_v23 = vunpack.i.l.bf16 %v2527_v22 }
 0x168   : > { %v2534_v20 = vunpack.i.h.bf16 %v2532_v18  ;;  %v2533_v35 = vunpack.i.l.bf16 %v2532_v18  ;;  %1741 = vmatpush2.bf16.msra.mxu1 %v1628_v45  ;;  %1698 = vmatpush2.bf16.msra.mxu0 %v1580_v54 }
 0x169   : > { %521 = vst.msk [vmem:[#allocation2 + $0x190] sm:$0xff] %vm232_vm1, %v2529_v49  ;;  %v504_v57 = vsel %vm500_vm7, %v2528_v23, %v2529_v49 }
 0x16a   : > { %524 = vst.msk [vmem:[#allocation2 + $0x1a8] sm:$0xf] %vm239_vm2, %v2534_v20  ;;  %v506_v52 = vsel %vm500_vm7, %v2533_v35, %v2534_v20  ;;  %v2537_v60 = vpop.permute.xlu0 %2536 }
 0x16b   : > { %523 = vst [vmem:[#allocation2 + $0x1a0] sm:$0xf] %v506_v52  ;;  %v2542_v28 = vpop.permute.xlu1 %2541  ;;  %v2539_v36 = vunpack.i.h.bf16 %v2537_v60  ;;  %v2538_v0 = vunpack.i.l.bf16 %v2537_v60 }
 0x16c   : > { %v2544_v63 = vunpack.i.h.bf16 %v2542_v28  ;;  %v2543_v2 = vunpack.i.l.bf16 %v2542_v28 }
 0x16d   : > { %561 = vst.msk [vmem:[#allocation2 + $0x1a8] sm:$0xf0] %vm302_vm5, %v2539_v36  ;;  %v545_v46 = vsel %vm543_vm14, %v2538_v0, %v2539_v36  ;;  %v3372_v36 = vld [vmem:[%s3471_s0 + $0x8] ss:$16 sps:$4 sm:$0xff]  }
 0x16e   : > { %1079 = vst.msk [vmem:[#allocation2 + $0x490] sm:$0xff] %vm232_vm1, %v2544_v63  ;;  %v1062_v7 = vsel %vm232_vm1, %v2543_v2, %v2544_v63  ;;  %560 = vst [vmem:[#allocation2 + $0x1a0] sm:$0xf0] %v545_v46  ;;  %v2547_v11 = vpop.permute.xlu0 %2546  ;;  %v1456_v63 = vld [vmem:[#allocation2 + $0x2f8] sm:$0xff] }
 0x16f   : > { %v2552_v15 = vpop.permute.xlu1 %2551  ;;  %v2549_v16 = vunpack.i.h.bf16 %v2547_v11  ;;  %v2548_v44 = vunpack.i.l.bf16 %v2547_v11 }
 0x170   : > { %v2554_v17 = vunpack.i.h.bf16 %v2552_v15  ;;  %v2553_v24 = vunpack.i.l.bf16 %v2552_v15 }
 0x171   : > { %1082 = vst.msk [vmem:[#allocation2 + $0x4a8] sm:$0xff] %vm232_vm1, %v2549_v16  ;;  %v1064_v6 = vsel %vm232_vm1, %v2548_v44, %v2549_v16 }
 0x172   : > { %v503_v42 = vsel %vm500_vm7, %v2553_v24, %v2528_v23  ;;  %v505_v8 = vsel %vm500_vm7, %v2554_v17, %v2533_v35  ;;  %v526_v34 = vpop.permute.xlu0 %525  ;;  %v1626_v38 = vpack.c.bf16 %v1064_v6, %v1062_v7  ;;  %v1405_v17 = vld [vmem:[#allocation2 + $0x160] sm:$0xff]  ;;  %v1408_v24 = vld [vmem:[#allocation2 + $0x178] sm:$0xff]  ;;  %v1450_v6 = vld [vmem:[#allocation2 + $0x2c8] sm:$0xff] }
 0x173   : > { %522 = vst [vmem:[#allocation2 + $0x198] sm:$0xf] %v505_v8  ;;  %v2557_v39 = vpop.permute.xlu1 %2556  ;;  %v544_v48 = vsel %vm543_vm14, %v526_v34, %v2538_v0  ;;  %v1504_v8 = vld [vmem:[#allocation2 + $0x478] sm:$0xff] }
 0x174   : > { %v2559_v27 = vunpack.i.h.bf16 %v2557_v39  ;;  %v2558_v22 = vunpack.i.l.bf16 %v2557_v39  ;;  %559 = vst [vmem:[#allocation2 + $0x198] sm:$0xf0] %v544_v48  ;;  %1742 = vmatprep.subr.bf16.mxu1 %v1626_v38 }
 0x175   : > { %v1413_v45 = vld [vmem:[#allocation2 + $0x1a0] sm:$0xff] }
 0x176   : > { %v1061_v54 = vsel %vm232_vm1, %v2558_v22, %v2543_v2  ;;  %v1063_v18 = vsel %vm232_vm1, %v2559_v27, %v2548_v44  ;;  %v2562_v49 = vpop.permute.xlu0 %2561  ;;  %v1578_v20 = vpack.c.bf16 %v1413_v45, %v504_v57  ;;  %v3393_v44 = vld [vmem:[%s3471_s0] ss:$16 sps:$4 sm:$0xff]   ;;  %v1444_v27 = vld [vmem:[#allocation2 + $0x298] sm:$0xff] }
 0x177   : > { %v1314_v23 = vpop.permute.xlu1 %1313  ;;  %v2564_v52 = vunpack.i.h.bf16 %v2562_v49  ;;  %v2563_v35 = vunpack.i.l.bf16 %v2562_v49  ;;  %v1625_v60 = vpack.c.bf16 %v1063_v18, %v1061_v54  ;;  %v1399_v45 = vld [vmem:[#allocation2 + $0x130] sm:$0xff] }
 0x178   : > { %v1329_v28 = vsel %vm1323_vm4, %v2358_v9, %v1314_v23  ;;  %1699 = vmatprep.subr.bf16.mxu0 %v1578_v20  ;;  %v1453_v9 = vld [vmem:[#allocation2 + $0x2e0] sm:$0xff]  ;;  %v1495_v18 = vld [vmem:[#allocation2 + $0x430] sm:$0xff]  ;;  %v1573_v20 = vpack.c.bf16 %v1402_v58, %v1399_v45 }
 0x179   : > { %1347 = vst.msk [vmem:[#allocation2 + $0x5c8] sm:$0xff] %vm232_vm1, %v1329_v28  ;;  %v1326_v57 = vsel %vm1323_vm4, %v2353_v26, %v2564_v52  ;;  %v1332_v0 = vsel %vm1323_vm4, %v2334_v61, %v2563_v35  ;;  %1743 = vmatpush2.bf16.msra.mxu1 %v1625_v60  ;;  %v1600_v26 = vpack.c.bf16 %v1456_v63, %v1453_v9  ;;  %v1498_v52 = vld [vmem:[#allocation2 + $0x448] sm:$0xff]  ;;  %v1393_v35 = vld [vmem:[#allocation2 + $0x100] sm:$0xff] }
 0x17a   : > { %1344 = vst.msk [vmem:[#allocation2 + $0x5b0] sm:$0xff] %vm232_vm1, %v1326_v57  ;;  %v2567_v43 = vpop.permute.xlu0 %2566  ;;  %v1621_v63 = vpack.c.bf16 %v1498_v52, %v1495_v18  ;;  %v1471_v18 = vld [vmem:[#allocation2 + $0x370] sm:$0xff] }
 0x17b   : > { %1350 = vst.msk [vmem:[#allocation2 + $0x5e0] sm:$0xf] %vm239_vm2, %v1332_v0  ;;  %v2572_v2 = vpop.permute.xlu1 %2571  ;;  %v2569_v46 = vunpack.i.h.bf16 %v2567_v43  ;;  %v2568_v7 = vunpack.i.l.bf16 %v2567_v43  ;;  %v1412_v11 = vld [vmem:[#allocation2 + $0x198] sm:$0xff] }
 0x17c   : > { %v2574_v15 = vunpack.i.h.bf16 %v2572_v2  ;;  %v2573_v41 = vunpack.i.l.bf16 %v2572_v2  ;;  %v1577_v16 = vpack.c.bf16 %v1412_v11, %v503_v42  ;;  %1745 = vmatmul.mubr.bf16.vlgmr.msra.gmra.mxu1 %v3372_v36  ;;  %v1501_v42 = vld [vmem:[#allocation2 + $0x460] sm:$0xff] }
 0x17d   : > { %v1277_v56 = vsel %vm1271_vm8, %v2384_v62, %v2568_v7  ;;  %v1280_v61 = vsel %vm1271_vm8, %v2389_v1, %v2569_v46  ;;  %1828 = vmatprep.mubr.bf16.mxu1 %v3141_v51  ;;  %v1447_v1 = vld [vmem:[#allocation2 + $0x2b0] sm:$0xff]  ;;  %v1624_v22 = vpack.c.bf16 %v1504_v8, %v1501_v42 }
 0x17e   : > { %v1225_v59 = vsel %vm1219_vm10, %v2414_v31, %v2573_v41  ;;  %v1228_v62 = vsel %vm1219_vm10, %v2419_v53, %v2574_v15  ;;  %1295 = vst.msk [vmem:[#allocation2 + $0x580] sm:$0xff] %vm232_vm1, %v1277_v56  ;;  %1298 = vst.msk [vmem:[#allocation2 + $0x598] sm:$0xff] %vm232_vm1, %v1280_v61  ;;  %v1254_v40 = vpop.permute.xlu0 %1253  ;;  %1700 = vmatpush2.bf16.msra.mxu0 %v1577_v16  ;;  %v1576_v53 = vpack.c.bf16 %v1408_v24, %v1405_v17  ;;  %v1489_v15 = vld [vmem:[#allocation2 + $0x400] sm:$0xff]  ;;  %v1492_v41 = vld [vmem:[#allocation2 + $0x418] sm:$0xff] }
 0x17f   : > { %1243 = vst.msk [vmem:[#allocation2 + $0x550] sm:$0xff] %vm232_vm1, %v1225_v59  ;;  %v1166_v51 = vpop.permute.xlu1 %1165  ;;  %v1274_v3 = vsel %vm1271_vm8, %v2424_v55, %v1254_v40  ;;  %2002 = vmatprep.subr.bf16.mxu0 %v1600_v26  ;;  %v1597_v34 = vpack.c.bf16 %v1450_v6, %v1447_v1  ;;  %v1387_v26 = vld [vmem:[#allocation2 + $0xd0] sm:$0xff]  ;;  %v1390_v17 = vld [vmem:[#allocation2 + $0xe8] sm:$0xff]  ;;  %v1618_v33 = vpack.c.bf16 %v1492_v41, %v1489_v15  ;;  %v1384_v1 = vld [vmem:[#allocation2 + $0xb8] sm:$0xff] }
 0x180   : > { %1246 = vst.msk [vmem:[#allocation2 + $0x568] sm:$0xf] %vm239_vm2, %v1228_v62  ;;  %v1176_v31 = vsel %vm1167_vm12, %v2454_v25, %v1166_v51  ;;  %v1546_v54 = vld [vmem:[#allocation2 + $0x5c8] sm:$0xff]  ;;  %v1567_v21 = vpack.c.bf16 %v1390_v17, %v1387_v26  ;;  %v1423_v51 = vld [vmem:[#allocation2 + $0x1f0] sm:$0xff] }
 0x181   : > { %1292 = vst.msk [vmem:[#allocation2 + $0x568] sm:$0xf0] %vm302_vm5, %v1274_v3  ;;  %1702 = vmatmul.mubr.bf16.vlgmr.msra.gmra.mxu0 %v3393_v44  ;;  %v1543_v39 = vld [vmem:[#allocation2 + $0x5b0] sm:$0xff]  ;;  %v1486_v40 = vld [vmem:[#allocation2 + $0x3e8] sm:$0xff] }
 0x182   : > { %1194 = vst.msk [vmem:[#allocation2 + $0x520] sm:$0xff] %vm232_vm1, %v1176_v31  ;;  %v1549_v38 = vld [vmem:[#allocation2 + $0x5e0] sm:$0xff]  ;;  %v1202_v55 = vpop.permute.xlu0 %1201  ;;  %2003 = vmatpush3.bf16.msra.mxu0 %v1576_v53  ;;  %1787 = vmatprep.mubr.bf16.mxu0 %v3151_v29  ;;  %v1645_v23 = vpack.c.bf16 %v1546_v54, %v1543_v39  ;;  %v1426_v3 = vld [vmem:[#allocation2 + $0x208] sm:$0xff]  ;;  %v1375_v39 = vld [vmem:[#allocation2 + $0x70] sm:$0xff] }
 0x183   : > { %v1648_v48 = vpack.c.bf16 %v1552_v50, %v1549_v38  ;;  %v1109_v30 = vpop.permute.xlu1 %1108  ;;  %v1222_v25 = vsel %vm1219_vm10, %v2459_v10, %v1202_v55  ;;  %2004 = vmatprep.subr.bf16.mxu0 %v1597_v34  ;;  %v1441_v29 = vld [vmem:[#allocation2 + $0x280] sm:$0xff]  ;;  %v1396_v10 = vld [vmem:[#allocation2 + $0x118] sm:$0xff]  ;;  %v1615_v50 = vpack.c.bf16 %v1486_v40, %v1483_v5  ;;  %v1585_v58 = vpack.c.bf16 %v1426_v3, %v1423_v51  ;;  %v1462_v15 = vld [vmem:[#allocation2 + $0x328] sm:$0xff] }
 0x184   : > { %v1119_v49 = vsel %vm1110_vm13, %v2484_v4, %v1109_v30  ;;  %1240 = vst.msk [vmem:[#allocation2 + $0x538] sm:$0xff] %vm232_vm1, %v1222_v25  ;;  %v1594_v32 = vpack.c.bf16 %v1444_v27, %v1441_v29  ;;  %v1438_v4 = vld [vmem:[#allocation2 + $0x268] sm:$0xff]  ;;  %v1570_v7 = vpack.c.bf16 %v1396_v10, %v1393_v35  ;;  %v1381_v31 = vld [vmem:[#allocation2 + $0xa0] sm:$0xff]  ;;  %v1480_v38 = vld [vmem:[#allocation2 + $0x3b8] sm:$0xff] }
 0x185   : > { %2024 = vmatprep.subr.bf16.mxu1 %v1648_v48  ;;  %1137 = vst.msk [vmem:[#allocation2 + $0x4f0] sm:$0xf] %vm239_vm2, %v1119_v49  ;;  %v1537_v60 = vld [vmem:[#allocation2 + $0x580] sm:$0xff]  ;;  %v1540_v28 = vld [vmem:[#allocation2 + $0x598] sm:$0xff]  ;;  %v1591_v61 = vpack.c.bf16 %v1438_v4, %v1435_v13  ;;  %v1564_v42 = vpack.c.bf16 %v1384_v1, %v1381_v31  ;;  %v1474_v49 = vld [vmem:[#allocation2 + $0x388] sm:$0xff]  ;;  %vm1892_vm2 = vcmask 7168  }
 0x186   : > { %2025 = vmatpush3.bf16.msra.mxu1 %v1624_v22  ;;  %v2577_v57 = vpop.permute.xlu0 %2576  ;;  %2005 = vmatpush3.bf16.msra.mxu0 %v1573_v20  ;;  %v1642_v11 = vpack.c.bf16 %v1540_v28, %v1537_v60  ;;  %v1477_v34 = vld [vmem:[#allocation2 + $0x3a0] sm:$0xff]  ;;  %v1420_v30 = vld [vmem:[#allocation2 + $0x1d8] sm:$0xff]  ;;  %v1378_v22 = vld [vmem:[#allocation2 + $0x88] sm:$0xff]  ;;  %v1609_v10 = vpack.c.bf16 %v1474_v49, %v1471_v18 }
 0x187   : > { %2026 = vmatprep.subr.bf16.mxu1 %v1645_v23  ;;  %v2582_v0 = vpop.permute.xlu1 %2581  ;;  %v2579_v43 = vunpack.i.h.bf16 %v2577_v57  ;;  %v2578_v9 = vunpack.i.l.bf16 %v2577_v57  ;;  %2006 = vmatprep.subr.bf16.mxu0 %v1594_v32  ;;  %v1417_v27 = vld [vmem:[#allocation2 + $0x1c0] sm:$0xff]  ;;  %v1612_v25 = vpack.c.bf16 %v1480_v38, %v1477_v34  ;;  %v1561_v45 = vpack.c.bf16 %v1378_v22, %v1375_v39  ;;  %v1372_v29 = vld [vmem:[#allocation2 + $0x58] sm:$0xff]  ;;  %v1414_v32 = vld [vmem:[#allocation2 + $0x1a8] sm:$0xff] }
 0x188   : > { %v2584_v2 = vunpack.i.h.bf16 %v2582_v0  ;;  %v2583_v46 = vunpack.i.l.bf16 %v2582_v0  ;;  %v1534_v24 = vld [vmem:[#allocation2 + $0x568] sm:$0xff]  ;;  %v1369_v20 = vld [vmem:[#allocation2 + $0x40] sm:$0xff]  ;;  %v1582_v23 = vpack.c.bf16 %v1420_v30, %v1417_v27  ;;  %v1363_v60 = vld [vmem:[#allocation2 + $0x10] sm:$0xff] }
 0x189   : > { %v1170_v16 = vsel %vm1167_vm12, %v2488_v19, %v2578_v9  ;;  %v1173_v56 = vsel %vm1167_vm12, %v2493_v37, %v2579_v43  ;;  %v1432_v19 = vld [vmem:[#allocation2 + $0x238] sm:$0xff]  ;;  %v1531_v37 = vld [vmem:[#allocation2 + $0x550] sm:$0xff]  ;;  %v1525_v53 = vld [vmem:[#allocation2 + $0x520] sm:$0xff]  ;;  %v1558_v57 = vpack.c.bf16 %v1372_v29, %v1369_v20 }
 0x18a   : > { %2027 = vmatpush3.bf16.msra.mxu1 %v1621_v63  ;;  %v1113_v59 = vsel %vm1110_vm13, %v2513_v14, %v2583_v46  ;;  %v1116_v62 = vsel %vm1110_vm13, %v2518_v12, %v2584_v2  ;;  %1188 = vst.msk [vmem:[#allocation2 + $0x4f0] sm:$0xf0] %vm302_vm5, %v1170_v16  ;;  %2007 = vmatpush3.bf16.msra.mxu0 %v1570_v7  ;;  %v1366_v28 = vld [vmem:[#allocation2 + $0x28] sm:$0xff]  ;;  %v1411_v4 = vld [vmem:[#allocation2 + $0x190] sm:$0xff]  ;;  %v1465_v0 = vld [vmem:[#allocation2 + $0x340] sm:$0xff]  ;;  %vm1895_vm5 = vcmask 15360  }
 0x18b   : > { %1191 = vst.msk [vmem:[#allocation2 + $0x508] sm:$0xff] %vm232_vm1, %v1173_v56  ;;  %2028 = vmatprep.subr.bf16.mxu1 %v1642_v11  ;;  %1131 = vst.msk [vmem:[#allocation2 + $0x4c0] sm:$0xff] %vm232_vm1, %v1113_v59  ;;  %2008 = vmatprep.subr.bf16.mxu0 %v1591_v61  ;;  %v1639_v14 = vpack.c.bf16 %v1534_v24, %v1531_v37  ;;  %v1588_v12 = vpack.c.bf16 %v1432_v19, %v1429_v47  ;;  %v1528_v6 = vld [vmem:[#allocation2 + $0x538] sm:$0xff]  ;;  %v1507_v63 = vld [vmem:[#allocation2 + $0x490] sm:$0xff]  ;;  %v1845_v37 = vlaneseq }
 0x18c   : > { %1134 = vst.msk [vmem:[#allocation2 + $0x4d8] sm:$0xff] %vm232_vm1, %v1116_v62  ;;  %v1636_v8 = vpack.c.bf16 %v1528_v6, %v1525_v53  ;;  %v1468_v43 = vld [vmem:[#allocation2 + $0x358] sm:$0xff]  ;;  %v1579_v9 = vpack.c.bf16 %v1414_v32, %v1411_v4  ;;  %v1510_v2 = vld [vmem:[#allocation2 + $0x4a8] sm:$0xff]  ;;  %v1555_v46 = vpack.c.bf16 %v1366_v28, %v1363_v60  ;;  %v1459_v41 = vld [vmem:[#allocation2 + $0x310] sm:$0xff] }
 0x18d   : > { %v1606_v7 = vpack.c.bf16 %v1468_v43, %v1465_v0  ;;  %v1627_v11 = vpack.c.bf16 %v1510_v2, %v1507_v63  ;;  %v1603_v16 = vpack.c.bf16 %v1462_v15, %v1459_v41  ;;  %v1843_v40 = vld [vmem:[%s3472_s1] sm:$0x7] }
 0x18e   : > { %2029 = vmatpush3.bf16.msra.mxu1 %v1618_v33  ;;  %2009 = vmatpush3.bf16.msra.mxu0 %v1567_v21  ;;  %v1846_v21 = vshrl.u32 %v1845_v37, 7 }
 0x18f   : > { %2030 = vmatprep.subr.bf16.mxu1 %v1639_v14  ;;  %2010 = vmatprep.subr.bf16.mxu0 %v1588_v12 }
 0x190   : > { %v1847_v14 = vsub.s32 0, %v1846_v21  ;;  %v1851_v5 = vsub.s32 1, %v1846_v21  ;;  %v1855_v6 = vsub.s32 2, %v1846_v21 }
 0x191   : > { %v1519_v55 = vld [vmem:[#allocation2 + $0x4f0] sm:$0xff] }
 0x192   : > { %2031 = vmatpush3.bf16.msra.mxu1 %v1615_v50  ;;  %v1522_v48 = vld [vmem:[#allocation2 + $0x508] sm:$0xff]  ;;  %2011 = vmatpush3.bf16.msra.mxu0 %v1564_v42  ;;  %v1513_v52 = vld [vmem:[#allocation2 + $0x4c0] sm:$0xff]  ;;  %v1848_v51 = vrot.slane %v1843_v40, %v1847_v14  ;;  %v1852_v3 = vrot.slane %v1843_v40, %v1851_v5  ;;  %v1856_v34 = vrot.slane %v1843_v40, %v1855_v6 }
 0x193   : > { %2032 = vmatprep.subr.bf16.mxu1 %v1636_v8  ;;  %2012 = vmatprep.subr.bf16.mxu0 %v1585_v58  ;;  %v1633_v54 = vpack.c.bf16 %v1522_v48, %v1519_v55  ;;  %v1516_v35 = vld [vmem:[#allocation2 + $0x4d8] sm:$0xff] }
 0x194   : > { %v1630_v13 = vpack.c.bf16 %v1516_v35, %v1513_v52 }
 0x196   : > { %2033 = vmatpush3.bf16.msra.mxu1 %v1612_v25  ;;  %2013 = vmatpush3.bf16.msra.mxu0 %v1561_v45 }
 0x197   : > { %2034 = vmatprep.subr.bf16.mxu1 %v1633_v54  ;;  %2014 = vmatprep.subr.bf16.mxu0 %v1582_v23 }
 0x19a   : > { %2035 = vmatpush3.bf16.msra.mxu1 %v1609_v10  ;;  %2015 = vmatpush3.bf16.msra.mxu0 %v1558_v57 }
 0x19b   : > { %2036 = vmatprep.subr.bf16.mxu1 %v1630_v13  ;;  %2016 = vmatprep.subr.bf16.mxu0 %v1579_v9 }
 0x19e   : > { %2037 = vmatpush3.bf16.msra.mxu1 %v1606_v7  ;;  %2017 = vmatpush3.bf16.msra.mxu0 %v1555_v46 }
 0x19f   : > { %2038 = vmatprep.subr.bf16.mxu1 %v1627_v11 }
 0x1a1   : > { %1788 = vmatmul.mubr.bf16.vlgmr.msra.gmra.mxu0 %v3393_v44 }
 0x1a2   : > { %2039 = vmatpush3.bf16.msra.mxu1 %v1603_v16 }
 0x1a5   : > { %1829 = vmatmul.mubr.bf16.vlgmr.msra.gmra.mxu1 %v3372_v36 }
 0x23c   : > { %v1746_v56 = vpop.f32.mrf.mxu1 }
 0x23e   : > { %v1748_v61 = vpop.f32.mrf.mxu1 }
 0x240   : > { %v1750_v59 = vpop.f32.mrf.mxu1 }
 0x241   : > { %v1703_v26 = vpop.f32.mrf.mxu0 }
 0x242   : > { %v1747_v17 = vadd.f32 %v1746_v56, %v1703_v26  ;;  %v1752_v19 = vpop.f32.mrf.mxu1 }
 0x243   : > { %v1705_v24 = vpop.f32.mrf.mxu0 }
 0x244   : > { %1837 = vst [vmem:[%s3447_s6] sm:$0xff] %v1747_v17  ;;  %v1749_v44 = vadd.f32 %v1748_v61, %v1705_v24  ;;  %v1860_v38 = vmul.f32 %v1848_v51, %v1747_v17 }
 0x245   : > { %v1707_v62 = vpop.f32.mrf.mxu0 }
 0x246   : > { %1838 = vst [vmem:[%s3447_s6 + $0x8] sm:$0xff] %v1749_v44  ;;  %v1751_v36 = vadd.f32 %v1750_v59, %v1707_v62  ;;  %v1861_v58 = vmul.f32 %v1852_v3, %v1749_v44  ;;  %v1876_v45 = vmul.f32 %v1860_v38, %v1860_v38 }
 0x247   : > { %v1709_v47 = vpop.f32.mrf.mxu0 }
 0x248   : > { %1840 = vst [vmem:[%s3447_s6 + $0x18] sm:$0xff] %v1751_v36  ;;  %v1753_v33 = vadd.f32 %v1752_v19, %v1709_v47  ;;  %v1866_v54 = vadd.f32 %v1861_v58, %v1860_v38  ;;  %v1877_v18 = vmul.f32 %v1861_v58, %v1861_v58  ;;  %v1863_v52 = vmul.f32 %v1848_v51, %v1751_v36 }
 0x24a   : > { %1841 = vst [vmem:[%s3447_s6 + $0x20] sm:$0xff] %v1753_v33  ;;  %v1864_v49 = vmul.f32 %v1852_v3, %v1753_v33  ;;  %v1882_v57 = vadd.f32 %v1877_v18, %v1876_v45  ;;  %v1879_v0 = vmul.f32 %v1863_v52, %v1863_v52 }
 0x24c   : > { %v1871_v60 = vadd.f32 %v1864_v49, %v1863_v52  ;;  %v1880_v28 = vmul.f32 %v1864_v49, %v1864_v49 }
 0x24e   : > { %v1887_v2 = vadd.f32 %v1880_v28, %v1879_v0 }
 0x261   : > { %v2018_v12 = vpop.f32.mrf.mxu0 }
 0x263   : > { %v2019_v1 = vpop.f32.mrf.mxu0 }
 0x264   : > { %v2020_v42 = vadd.f32 %v2019_v1, %v2018_v12 }
 0x265   : > { %v2040_v50 = vpop.f32.mrf.mxu1  ;;  %v2021_v31 = vpop.f32.mrf.mxu0 }
 0x267   : > { %v2041_v53 = vpop.f32.mrf.mxu1  ;;  %v2022_v39 = vpop.f32.mrf.mxu0 }
 0x268   : > { %v2042_v8 = vadd.f32 %v2041_v53, %v2040_v50  ;;  %v2023_v25 = vadd.f32 %v2022_v39, %v2021_v31 }
 0x269   : > { %v2043_v55 = vpop.f32.mrf.mxu1 }
 0x26a   : > { %v1831_v48 = vadd.f32 %v2042_v8, %v2020_v42 }
 0x26b   : > { %v2044_v27 = vpop.f32.mrf.mxu1 }
 0x26c   : > { %1839 = vst.msk [vmem:[%s3447_s6 + $0x10] sm:$0xff] %vm232_vm1, %v1831_v48  ;;  %v1862_v30 = vmul.f32 %v1856_v34, %v1831_v48  ;;  %v2045_v22 = vadd.f32 %v2044_v27, %v2043_v55 }
 0x26e   : > { %v1878_v20 = vmul.f32 %v1862_v30, %v1862_v30  ;;  %v1834_v23 = vadd.f32 %v2045_v22, %v2023_v25  ;;  %v1867_v29 = vsel %vm232_vm1, %v1862_v30, 0.0 }
 0x26f   : > { %v1868_v35 = vadd.f32 %v1867_v29, %v1866_v54 }
 0x270   : > { %1842 = vst.msk [vmem:[%s3447_s6 + $0x28] sm:$0xff] %vm232_vm1, %v1834_v23  ;;  %v1865_v32 = vmul.f32 %v1856_v34, %v1834_v23  ;;  %v1883_v10 = vsel %vm232_vm1, %v1878_v20, 0.0 }
 0x271   : > { %1869 = vadd.xlane.f32.xlu0 %v1868_v35  ;;  %v1884_v43 = vadd.f32 %v1883_v10, %v1882_v57 }
 0x272   : > { %v1881_v13 = vmul.f32 %v1865_v32, %v1865_v32  ;;  %v1872_v4 = vsel %vm232_vm1, %v1865_v32, 0.0 }
 0x273   : > { %v1873_v9 = vadd.f32 %v1872_v4, %v1871_v60 }
 0x274   : > { %v1888_v63 = vsel %vm232_vm1, %v1881_v13, 0.0 }
 0x275   : > { %1885 = vadd.xlane.f32.xlu0 %v1884_v43  ;;  %1874 = vadd.xlane.f32.xlu1 %v1873_v9  ;;  %v1889_v46 = vadd.f32 %v1888_v63, %v1887_v2 }
 0x279   : > { %1890 = vadd.xlane.f32.xlu0 %v1889_v46 }
 0x2fa   : > { %v1870_v7 = vpop.xlane.xlu0 %1869 }
 0x2fe   : > { %v1886_v11 = vpop.xlane.xlu0 %1885  ;;  %v1875_v41 = vpop.xlane.xlu1 %1874 }
 0x2ff   : > { %v1893_v15 = vsel %vm1892_vm2, %v1870_v7, %v1886_v11 }
 0x300   : > { %1896 = vst.msk [vmem:[%s210_s11] sm:$0xff] %vm1895_vm5, %v1893_v15 }
 0x302   : > { %v1891_v16 = vpop.xlane.xlu0 %1890 }
 0x303   : > { %v1894_v56 = vsel %vm1892_vm2, %v1875_v41, %v1891_v16 }
 0x304   : > { %1897 = vst.msk [vmem:[%s210_s11 + $0x8] sm:$0xff] %vm1895_vm5, %v1894_v56 }
 0x305 PF: > { %s15_s15 = sadd.s32 1, %s2605_s15  }
 0x306   : > { %p12_p4 = scmp.ge.s32.totalorder %s15_s15, 34  }
 0x308   :  { %14 = sbr.rel (!%p12_p4) target bundleno = 1 (0x1), region = 74 }

// kernel: input_transition_forward.3
= control target key start
LH: loop header
LB: loop body
LE: loop exit
PB: predicated region body
PF: predicated region fallthrough
CT: control target
= control target key end

     0   :  { %s1187_s15 = smov 0   ;;  %s1965_s0 = inlined_call_operand.vmem [shape: f32[32,16,320], index: 0, kind: input, shape index: {}]   ;;  %s1966_s1 = inlined_call_operand.vmem [shape: f32[32,4,320], index: 1, kind: input, shape index: {}]   ;;  %s1967_s2 = inlined_call_operand.vmem [shape: f32[16,1], index: 2, kind: input, shape index: {}]   ;;  %s1968_s3 = inlined_call_operand.vmem [shape: f32[16,1], index: 3, kind: input, shape index: {}]   ;;  %s1969_s4 = inlined_call_operand.vmem [shape: f32[32,16,320], index: 4, kind: output, shape index: {}]  }
   0x1 LB: > { %s959_s16 = sadd.s32 4294967295, %s1159_s15   ;;  %p963_p0 = scmp.ge.s32.totalorder %s1159_s15, 1  ;;  %s1159_s15 = sphi %s1187_s15, %s14_s15  }
   0x2   : > { %p176_p1 = scmp.lt.s32.totalorder %s1159_s15, 5 }
   0x4   : > { %p177_p2 = pnand %p963_p0, %p176_p1 }
   0x6   : > { %180 = sbr.rel (%p177_p2) target bundleno = 253 (0xfd), region = 36 }
   0xb   : > { %v339_v0 = vld [vmem:[%s1968_s3] sm:$0xff]  ;;  %v1161_v2 = vmov 0   ;;  %v340_v3 = vld [vmem:[%s1968_s3 + $0x8] sm:$0xff]  ;;  %s964_s25 = sshll.u32 %s959_s16, 3  ;;  %vm479_vm0 = vcmask 1043456   ;;  %vm842_vm2 = vcmask 523264  }
   0xc   : > { %v279_v1 = vld [vmem:[%s1967_s2] sm:$0xff]  ;;  %1032 = vset.pattern.permute.xlu1 %v1161_v2  ;;  %1031 = vset.pattern.permute.xlu0 %v1161_v2  ;;  %v280_v4 = vld [vmem:[%s1967_s2 + $0x8] sm:$0xff]  ;;  %p211_p3 = scmp.lt.s32.totalorder %s964_s25, 31 }
   0xd   : > { %343 = vperm.xlu1 %1032, %v339_v0   ;;  %283 = vperm.xlu0 %1031, %v279_v1  }
   0xe   : > { %s2113_s25 = smov (!%p211_p3, %s964_s25), 31 }
   0xf   : > { %s1021_s26 = smul.u32 12, %s2113_s25 }
  0x10   : > { %s1020_s30 = smul.u32 48, %s2113_s25 }
  0x11   : > { %348 = vperm.xlu1 %1032, %v340_v3   ;;  %288 = vperm.xlu0 %1031, %v280_v4   ;;  %s222_s29 = scalar_lea.vmem %s1966_s1, %s1021_s26 }
  0x12   : > { %v399_v5 = vld [vmem:[%s222_s29] sm:$0xff]  ;;  %v401_v6 = vld [vmem:[%s222_s29 + $0xc] sm:$0xff]  ;;  %v400_v7 = vld [vmem:[%s222_s29 + $0x8] sm:$0xf]  ;;  %s1225_s7 = scalar_lea.vmem %s1965_s0, %s1020_s30  ;;  %s1687_s10 = scalar_lea.vmem %s1969_s4, %s1020_s30 }
  0x13   : > { %v403_v8 = vld [vmem:[%s222_s29 + $0x18] sm:$0xff]  ;;  %v402_v9 = vld [vmem:[%s222_s29 + $0x14] sm:$0xf]  ;;  %v405_v10 = vld [vmem:[%s222_s29 + $0x24] sm:$0xff]  ;;  %v431_v15 = vcombine.high %v399_v5, %v399_v5  ;;  %v432_v16 = vcombine.high %v401_v6, %v401_v6  ;;  %v447_v21 = vcombine.low %v399_v5, %v399_v5  ;;  %v448_v22 = vcombine.low %v400_v7, %v400_v7 }
  0x14   : > { %v407_v11 = vld [vmem:[%s222_s29 + $0x30] sm:$0xff]  ;;  %v404_v12 = vld [vmem:[%s222_s29 + $0x20] sm:$0xf]  ;;  %v406_v13 = vld [vmem:[%s222_s29 + $0x2c] sm:$0xf]  ;;  %v433_v20 = vcombine.high %v403_v8, %v403_v8  ;;  %v449_v23 = vcombine.low %v401_v6, %v401_v6  ;;  %v434_v26 = vcombine.high %v405_v10, %v405_v10  ;;  %v450_v28 = vcombine.low %v402_v9, %v402_v9 }
  0x15   : > { %v409_v14 = vld [vmem:[%s222_s29 + $0x3c] sm:$0xff]  ;;  %v408_v17 = vld [vmem:[%s222_s29 + $0x38] sm:$0xf]  ;;  %v411_v18 = vld [vmem:[%s222_s29 + $0x48] sm:$0xff]  ;;  %v435_v27 = vcombine.high %v407_v11, %v407_v11  ;;  %v451_v29 = vcombine.low %v403_v8, %v403_v8  ;;  %v452_v32 = vcombine.low %v404_v12, %v404_v12  ;;  %v453_v33 = vcombine.low %v405_v10, %v405_v10 }
  0x16   : > { %v1214_v19 = vld [vmem:[%s222_s29 + $0x54] sm:$0xff]  ;;  %v410_v24 = vld [vmem:[%s222_s29 + $0x44] sm:$0xf]  ;;  %v412_v25 = vld [vmem:[%s222_s29 + $0x50] sm:$0xf]  ;;  %v436_v31 = vcombine.high %v409_v14, %v409_v14  ;;  %v454_v34 = vcombine.low %v406_v13, %v406_v13  ;;  %v437_v35 = vcombine.high %v411_v18, %v411_v18  ;;  %v455_v37 = vcombine.low %v407_v11, %v407_v11 }
  0x17   : > { %v1216_v30 = vld [vmem:[%s222_s29 + $0x5c] sm:$0xf]  ;;  %v438_v36 = vcombine.high %v1214_v19, %v1214_v19  ;;  %v456_v38 = vcombine.low %v408_v17, %v408_v17  ;;  %v457_v39 = vcombine.low %v409_v14, %v409_v14  ;;  %v458_v40 = vcombine.low %v410_v24, %v410_v24  ;;  %v231_v52 = vld [vmem:[%s1225_s7] sm:$0xff]  ;;  %v232_v53 = vld [vmem:[%s1225_s7 + $0x8] sm:$0xff] }
  0x18   : > { %v459_v41 = vcombine.low %v411_v18, %v411_v18  ;;  %v460_v42 = vcombine.low %v412_v25, %v412_v25  ;;  %v461_v43 = vcombine.low %v1214_v19, %v1214_v19  ;;  %v462_v44 = vcombine.low %v1216_v30, %v1216_v30  ;;  %v233_v58 = vld [vmem:[%s1225_s7 + $0x10] sm:$0xff]  ;;  %v238_v60 = vld [vmem:[%s1225_s7 + $0x38] sm:$0xff]  ;;  %v239_v1 = vld [vmem:[%s1225_s7 + $0x40] sm:$0xff] }
  0x19   : > { %v1232_v45 = vsel %vm479_vm0, %v399_v5, %v447_v21  ;;  %v1235_v46 = vsel %vm479_vm0, %v431_v15, %v399_v5  ;;  %v1240_v48 = vsel %vm479_vm0, %v400_v7, %v448_v22  ;;  %v1243_v49 = vsel %vm479_vm0, %v401_v6, %v449_v23  ;;  %v237_v59 = vld [vmem:[%s1225_s7 + $0x30] sm:$0xff]  ;;  %v243_v2 = vld [vmem:[%s1225_s7 + $0x60] sm:$0xff]  ;;  %v244_v3 = vld [vmem:[%s1225_s7 + $0x68] sm:$0xff] }
  0x1a   : > { %2015 = vst [vmem:[#allocation2_spill] sm:$0xff] %v1232_v45  ;;  %2016 = vst [vmem:[#allocation3_spill] sm:$0xff] %v1235_v46  ;;  %v1246_v50 = vsel %vm479_vm0, %v432_v16, %v401_v6  ;;  %v1249_v51 = vsel %vm479_vm0, %v402_v9, %v450_v28  ;;  %v1254_v54 = vsel %vm479_vm0, %v403_v8, %v451_v29  ;;  %v235_v9 = vld [vmem:[%s1225_s7 + $0x20] sm:$0xff]  ;;  %v241_v21 = vld [vmem:[%s1225_s7 + $0x50] sm:$0xff] }
  0x1b   : > { %2017 = vst [vmem:[#allocation4_spill] sm:$0xff] %v1240_v48  ;;  %2018 = vst [vmem:[#allocation5_spill] sm:$0xff] %v1243_v49  ;;  %v1257_v55 = vsel %vm479_vm0, %v433_v20, %v403_v8  ;;  %v1260_v56 = vsel %vm479_vm0, %v404_v12, %v452_v32  ;;  %v1263_v57 = vsel %vm479_vm0, %v405_v10, %v453_v33  ;;  %v234_v8 = vld [vmem:[%s1225_s7 + $0x18] sm:$0xff]  ;;  %v240_v20 = vld [vmem:[%s1225_s7 + $0x48] sm:$0xff] }
  0x1c   : > { %2019 = vst [vmem:[#allocation6_spill] sm:$0xff] %v1246_v50  ;;  %2020 = vst [vmem:[#allocation7_spill] sm:$0xff] %v1249_v51  ;;  %v1269_v61 = vsel %vm479_vm0, %v434_v26, %v405_v10  ;;  %v1272_v62 = vsel %vm479_vm0, %v406_v13, %v454_v34  ;;  %v1275_v63 = vsel %vm479_vm0, %v407_v11, %v455_v37  ;;  %v245_v10 = vld [vmem:[%s1225_s7 + $0x70] sm:$0xff]  ;;  %v250_v12 = vld [vmem:[%s1225_s7 + $0x98] sm:$0xff] }
  0x1d   : > { %2021 = vst [vmem:[#allocation8_spill] sm:$0xff] %v1254_v54  ;;  %2022 = vst [vmem:[#allocation9_spill] sm:$0xff] %v1257_v55  ;;  %v1278_v0 = vsel %vm479_vm0, %v435_v27, %v407_v11  ;;  %v1284_v4 = vsel %vm479_vm0, %v408_v17, %v456_v38  ;;  %v1287_v5 = vsel %vm479_vm0, %v409_v14, %v457_v39  ;;  %v249_v11 = vld [vmem:[%s1225_s7 + $0x90] sm:$0xff]  ;;  %v236_v17 = vld [vmem:[%s1225_s7 + $0x28] sm:$0xff] }
  0x1e   : > { %2023 = vst [vmem:[#allocation10_spill] sm:$0xff] %v1260_v56  ;;  %2024 = vst [vmem:[#allocation11_spill] sm:$0xff] %v1263_v57  ;;  %v1290_v6 = vsel %vm479_vm0, %v436_v31, %v409_v14  ;;  %v1293_v7 = vsel %vm479_vm0, %v410_v24, %v458_v40  ;;  %v1301_v13 = vsel %vm479_vm0, %v411_v18, %v459_v41  ;;  %v242_v22 = vld [vmem:[%s1225_s7 + $0x58] sm:$0xff]  ;;  %v251_v23 = vld [vmem:[%s1225_s7 + $0xa0] sm:$0xff] }
  0x1f   : > { %2025 = vst [vmem:[#allocation12_spill] sm:$0xff] %v1269_v61  ;;  %2026 = vst [vmem:[#allocation13_spill] sm:$0xff] %v1272_v62  ;;  %v1304_v15 = vsel %vm479_vm0, %v437_v35, %v411_v18  ;;  %v1307_v14 = vsel %vm479_vm0, %v412_v25, %v460_v42  ;;  %v1311_v16 = vsel %vm479_vm0, %v1214_v19, %v461_v43  ;;  %v255_v24 = vld [vmem:[%s1225_s7 + $0xc0] sm:$0xff]  ;;  %v256_v18 = vld [vmem:[%s1225_s7 + $0xc8] sm:$0xff] }
  0x20   : > { %2027 = vst [vmem:[#allocation14_spill] sm:$0xff] %v1275_v63  ;;  %2028 = vst [vmem:[#allocation15_spill] sm:$0xff] %v1278_v0  ;;  %v1328_v27 = vsel %vm479_vm0, %v438_v36, %v1214_v19  ;;  %v1332_v28 = vsel %vm479_vm0, %v1216_v30, %v462_v44  ;;  %v246_v31 = vld [vmem:[%s1225_s7 + $0x78] sm:$0xff]  ;;  %v247_v32 = vld [vmem:[%s1225_s7 + $0x80] sm:$0xff] }
  0x21   : > { %2029 = vst [vmem:[#allocation16_spill] sm:$0xff] %v1284_v4  ;;  %2030 = vst [vmem:[#allocation17_spill] sm:$0xff] %v1287_v5  ;;  %v248_v33 = vld [vmem:[%s1225_s7 + $0x88] sm:$0xff]  ;;  %v257_v34 = vld [vmem:[%s1225_s7 + $0xd0] sm:$0xff] }
  0x22   : > { %2031 = vst [vmem:[#allocation18_spill] sm:$0xff] %v1290_v6  ;;  %2032 = vst [vmem:[#allocation19_spill] sm:$0xff] %v1293_v7  ;;  %v261_v35 = vld [vmem:[%s1225_s7 + $0xf0] sm:$0xff]  ;;  %v252_v38 = vld [vmem:[%s1225_s7 + $0xa8] sm:$0xff] }
  0x23   : > { %2033 = vst [vmem:[#allocation20_spill] sm:$0xff] %v1301_v13  ;;  %2034 = vst [vmem:[#allocation21_spill] sm:$0xff] %v1304_v15  ;;  %v253_v39 = vld [vmem:[%s1225_s7 + $0xb0] sm:$0xff]  ;;  %v254_v40 = vld [vmem:[%s1225_s7 + $0xb8] sm:$0xff] }
  0x24   : > { %2035 = vst [vmem:[#allocation22_spill] sm:$0xff] %v1307_v14  ;;  %2036 = vst [vmem:[#allocation23_spill] sm:$0xff] %v1311_v16  ;;  %v267_v16 = vld [vmem:[%s1225_s7 + $0x120] sm:$0xff]  ;;  %v269_v13 = vld [vmem:[%s1225_s7 + $0x130] sm:$0xff] }
  0x25   : > { %2037 = vst [vmem:[#allocation24_spill] sm:$0xff] %v1328_v27  ;;  %2038 = vst [vmem:[#allocation25_spill] sm:$0xff] %v1332_v28  ;;  %v270_v7 = vld [vmem:[%s1225_s7 + $0x138] sm:$0xff]  ;;  %v273_v4 = vld [vmem:[%s1225_s7 + $0x150] sm:$0xff] }
  0x26   : > { %v275_v57 = vld [vmem:[%s1225_s7 + $0x160] sm:$0xff]  ;;  %v277_v54 = vld [vmem:[%s1225_s7 + $0x170] sm:$0xff]  ;;  %v278_v51 = vld [vmem:[%s1225_s7 + $0x178] sm:$0xff] }
  0x88   : > { %v1237_v47 = vpop.permute.xlu0 %283 }
  0x89   : > { %v1321_v26 = vmul.f32 %v1237_v47, %v231_v52  ;;  %v1324_v25 = vmul.f32 %v1237_v47, %v232_v53  ;;  %v1342_v37 = vmul.f32 %v1237_v47, %v233_v58  ;;  %v1345_v19 = vmul.f32 %v1237_v47, %v237_v59  ;;  %v258_v52 = vld [vmem:[%s1225_s7 + $0xd8] sm:$0xff]  ;;  %v259_v53 = vld [vmem:[%s1225_s7 + $0xe0] sm:$0xff]  ;;  %v260_v58 = vld [vmem:[%s1225_s7 + $0xe8] sm:$0xff] }
  0x8a   : > { %v1348_v36 = vmul.f32 %v1237_v47, %v238_v60  ;;  %v1351_v30 = vmul.f32 %v1237_v47, %v239_v1  ;;  %v1357_v41 = vmul.f32 %v1237_v47, %v243_v2  ;;  %v1360_v42 = vmul.f32 %v1237_v47, %v244_v3  ;;  %v262_v3 = vld [vmem:[%s1225_s7 + $0xf8] sm:$0xff] }
  0x8b   : > { %v1363_v43 = vmul.f32 %v1237_v47, %v245_v10  ;;  %v1366_v44 = vmul.f32 %v1237_v47, %v249_v11  ;;  %v1372_v59 = vmul.f32 %v1237_v47, %v250_v12  ;;  %v1375_v60 = vmul.f32 %v1237_v47, %v251_v23  ;;  %v263_v10 = vld [vmem:[%s1225_s7 + $0x100] sm:$0xff]  ;;  %v264_v11 = vld [vmem:[%s1225_s7 + $0x108] sm:$0xff] }
  0x8c   : > { %v1334_v29 = vpop.permute.xlu0 %288  ;;  %v1378_v1 = vmul.f32 %v1237_v47, %v255_v24  ;;  %v1381_v2 = vmul.f32 %v1237_v47, %v256_v18  ;;  %v1389_v27 = vmul.f32 %v1237_v47, %v257_v34  ;;  %v1392_v23 = vmul.f32 %v1237_v47, %v261_v35  ;;  %v265_v24 = vld [vmem:[%s1225_s7 + $0x110] sm:$0xff]  ;;  %v266_v18 = vld [vmem:[%s1225_s7 + $0x118] sm:$0xff]  ;;  %v1401_v34 = vpop.permute.xlu1 %343  ;;  %v268_v35 = vld [vmem:[%s1225_s7 + $0x128] sm:$0xff] }
  0x8d   : > { %v294_v28 = vmul.f32 %v1334_v29, %v234_v8  ;;  %v295_v12 = vmul.f32 %v1334_v29, %v235_v9  ;;  %v296_v14 = vmul.f32 %v1334_v29, %v236_v17  ;;  %v300_v15 = vmul.f32 %v1334_v29, %v240_v20 }
  0x8e   : > { %v301_v8 = vmul.f32 %v1334_v29, %v241_v21  ;;  %v302_v9 = vmul.f32 %v1334_v29, %v242_v22  ;;  %v306_v6 = vmul.f32 %v1334_v29, %v246_v31  ;;  %v307_v5 = vmul.f32 %v1334_v29, %v247_v32  ;;  %v271_v21 = vld [vmem:[%s1225_s7 + $0x140] sm:$0xff]  ;;  %v272_v22 = vld [vmem:[%s1225_s7 + $0x148] sm:$0xff]  ;;  %v274_v31 = vld [vmem:[%s1225_s7 + $0x158] sm:$0xff] }
  0x8f   : > { %v308_v17 = vmul.f32 %v1334_v29, %v248_v33  ;;  %v312_v20 = vmul.f32 %v1334_v29, %v252_v38  ;;  %v313_v0 = vmul.f32 %v1334_v29, %v253_v39  ;;  %v314_v63 = vmul.f32 %v1334_v29, %v254_v40  ;;  %v276_v32 = vld [vmem:[%s1225_s7 + $0x168] sm:$0xff] }
  0x90   : > { %v318_v62 = vmul.f32 %v1334_v29, %v258_v52  ;;  %v319_v61 = vmul.f32 %v1334_v29, %v259_v53  ;;  %v320_v33 = vmul.f32 %v1334_v29, %v260_v58  ;;  %v322_v56 = vmul.f32 %v1237_v47, %v262_v3  ;;  %v349_v48 = vpop.permute.xlu1 %348 }
  0x91   : > { %v323_v38 = vmul.f32 %v1237_v47, %v263_v10  ;;  %v324_v55 = vmul.f32 %v1334_v29, %v264_v11  ;;  %v325_v39 = vmul.f32 %v1334_v29, %v265_v24  ;;  %v326_v40 = vmul.f32 %v1334_v29, %v266_v18 }
  0x92   : > { %v327_v52 = vmul.f32 %v1237_v47, %v267_v16  ;;  %v328_v53 = vmul.f32 %v1237_v47, %v268_v35  ;;  %v329_v50 = vmul.f32 %v1237_v47, %v269_v13  ;;  %v330_v58 = vmul.f32 %v1334_v29, %v270_v7 }
  0x93   : > { %v331_v3 = vmul.f32 %v1334_v29, %v271_v21  ;;  %v332_v10 = vmul.f32 %v1334_v29, %v272_v22  ;;  %v333_v11 = vmul.f32 %v1237_v47, %v273_v4  ;;  %v334_v49 = vmul.f32 %v1237_v47, %v274_v31 }
  0x94   : > { %v335_v24 = vmul.f32 %v1237_v47, %v275_v57  ;;  %v336_v18 = vmul.f32 %v1334_v29, %v276_v32  ;;  %v337_v16 = vmul.f32 %v1334_v29, %v277_v54  ;;  %v338_v35 = vmul.f32 %v1334_v29, %v278_v51 }
  0x95   : > { %v351_v7 = vadd.f32 %v1401_v34, %v1321_v26  ;;  %v352_v13 = vadd.f32 %v1401_v34, %v1324_v25  ;;  %v353_v4 = vadd.f32 %v1401_v34, %v1342_v37  ;;  %v354_v21 = vadd.f32 %v349_v48, %v294_v28 }
  0x96   : > { %v355_v22 = vadd.f32 %v349_v48, %v295_v12  ;;  %v356_v31 = vadd.f32 %v349_v48, %v296_v14  ;;  %v357_v47 = vadd.f32 %v1401_v34, %v1345_v19  ;;  %v358_v54 = vadd.f32 %v1401_v34, %v1348_v36 }
  0x97   : > { %v359_v51 = vadd.f32 %v1401_v34, %v1351_v30  ;;  %v360_v57 = vadd.f32 %v349_v48, %v300_v15  ;;  %v361_v26 = vadd.f32 %v349_v48, %v301_v8  ;;  %v362_v29 = vadd.f32 %v349_v48, %v302_v9 }
  0x98   : > { %v363_v25 = vadd.f32 %v1401_v34, %v1357_v41  ;;  %v364_v28 = vadd.f32 %v1401_v34, %v1360_v42  ;;  %v365_v14 = vadd.f32 %v1401_v34, %v1363_v43  ;;  %v366_v37 = vadd.f32 %v349_v48, %v306_v6 }
  0x99   : > { %v367_v19 = vadd.f32 %v349_v48, %v307_v5  ;;  %v368_v12 = vadd.f32 %v349_v48, %v308_v17  ;;  %v369_v36 = vadd.f32 %v1401_v34, %v1366_v44  ;;  %v370_v15 = vadd.f32 %v1401_v34, %v1372_v59 }
  0x9a   : > { %v371_v30 = vadd.f32 %v1401_v34, %v1375_v60  ;;  %v372_v8 = vadd.f32 %v349_v48, %v312_v20  ;;  %v373_v41 = vadd.f32 %v349_v48, %v313_v0  ;;  %v374_v9 = vadd.f32 %v349_v48, %v314_v63 }
  0x9b   : > { %v375_v42 = vadd.f32 %v1401_v34, %v1378_v1  ;;  %v376_v6 = vadd.f32 %v1401_v34, %v1381_v2  ;;  %v377_v5 = vadd.f32 %v1401_v34, %v1389_v27  ;;  %v378_v43 = vadd.f32 %v349_v48, %v318_v62 }
  0x9c   : > { %v379_v44 = vadd.f32 %v349_v48, %v319_v61  ;;  %v380_v17 = vadd.f32 %v349_v48, %v320_v33  ;;  %v381_v59 = vadd.f32 %v1401_v34, %v1392_v23  ;;  %v382_v60 = vadd.f32 %v1401_v34, %v322_v56 }
  0x9d   : > { %v383_v0 = vadd.f32 %v1401_v34, %v323_v38  ;;  %v384_v63 = vadd.f32 %v349_v48, %v324_v55  ;;  %v385_v20 = vadd.f32 %v349_v48, %v325_v39  ;;  %v386_v32 = vadd.f32 %v349_v48, %v326_v40  ;;  %v2039_v39 = vld [vmem:[#allocation2_spill] sm:$0xff] }
  0x9e   : > { %v387_v1 = vadd.f32 %v1401_v34, %v327_v52  ;;  %v388_v2 = vadd.f32 %v1401_v34, %v328_v53  ;;  %v389_v46 = vadd.f32 %v1401_v34, %v329_v50  ;;  %v390_v27 = vadd.f32 %v349_v48, %v330_v58  ;;  %v2040_v52 = vld [vmem:[#allocation3_spill] sm:$0xff]  ;;  %v2041_v50 = vld [vmem:[#allocation4_spill] sm:$0xff] }
  0x9f   : > { %v391_v62 = vadd.f32 %v349_v48, %v331_v3  ;;  %v392_v61 = vadd.f32 %v349_v48, %v332_v10  ;;  %v393_v33 = vadd.f32 %v1401_v34, %v333_v11  ;;  %v394_v23 = vadd.f32 %v1401_v34, %v334_v49  ;;  %v2044_v11 = vld [vmem:[#allocation6_spill] sm:$0xff] }
  0xa0   : > { %v395_v56 = vadd.f32 %v1401_v34, %v335_v24  ;;  %v396_v45 = vadd.f32 %v349_v48, %v336_v18  ;;  %v397_v38 = vadd.f32 %v349_v48, %v337_v16  ;;  %v1480_v55 = vadd.f32 %v349_v48, %v338_v35  ;;  %v2042_v48 = vld [vmem:[#allocation5_spill] sm:$0xff]  ;;  %v2046_v18 = vld [vmem:[#allocation7_spill] sm:$0xff] }
  0xa1   : > { %v1483_v40 = vadd.f32 %v2039_v39, %v351_v7  ;;  %v1486_v53 = vadd.f32 %v2040_v52, %v352_v13  ;;  %v1489_v58 = vadd.f32 %v2041_v50, %v353_v4  ;;  %v1492_v3 = vadd.f32 %v2039_v39, %v354_v21  ;;  %v2051_v4 = vld [vmem:[#allocation8_spill] sm:$0xff] }
  0xa2   : > { %v1495_v49 = vadd.f32 %v2040_v52, %v355_v22  ;;  %v1498_v34 = vadd.f32 %v2041_v50, %v356_v31  ;;  %v1501_v10 = vadd.f32 %v2042_v48, %v357_v47  ;;  %v1504_v24 = vadd.f32 %v2044_v11, %v358_v54  ;;  %v2053_v22 = vld [vmem:[#allocation9_spill] sm:$0xff]  ;;  %v2055_v47 = vld [vmem:[#allocation10_spill] sm:$0xff] }
  0xa3   : > { %v1507_v16 = vadd.f32 %v2046_v18, %v359_v51  ;;  %v1510_v35 = vadd.f32 %v2042_v48, %v360_v57  ;;  %v1513_v7 = vadd.f32 %v2044_v11, %v361_v26  ;;  %v1516_v13 = vadd.f32 %v2046_v18, %v362_v29  ;;  %v2057_v29 = vld [vmem:[#allocation11_spill] sm:$0xff] }
  0xa4   : > { %2043 = vst [vmem:[#allocation2_spill] sm:$0xff] %v1501_v10  ;;  %2045 = vst [vmem:[#allocation3_spill] sm:$0xff] %v1504_v24  ;;  %v1519_v21 = vadd.f32 %v2051_v4, %v363_v25  ;;  %v1522_v31 = vadd.f32 %v2053_v22, %v364_v28  ;;  %v1525_v54 = vadd.f32 %v2055_v47, %v365_v14  ;;  %v2058_v25 = vld [vmem:[#allocation12_spill] sm:$0xff]  ;;  %v2059_v28 = vld [vmem:[#allocation13_spill] sm:$0xff]  ;;  %vm552_vm1 = vcmp.gt.f32.partialorder %v1483_v40, 0.0 }
  0xa5   : > { %2047 = vst [vmem:[#allocation4_spill] sm:$0xff] %v1507_v16  ;;  %2048 = vst [vmem:[#allocation5_spill] sm:$0xff] %v1510_v35  ;;  %v1528_v51 = vadd.f32 %v2051_v4, %v366_v37  ;;  %v1531_v57 = vadd.f32 %v2053_v22, %v367_v19  ;;  %v1534_v26 = vadd.f32 %v2055_v47, %v368_v12  ;;  %v2060_v12 = vld [vmem:[#allocation14_spill] sm:$0xff]  ;;  %vm553_vm3 = vcmp.gt.f32.partialorder %v1486_v53, 0.0 }
  0xa6   : > { %2049 = vst [vmem:[#allocation6_spill] sm:$0xff] %v1513_v7  ;;  %2050 = vst [vmem:[#allocation7_spill] sm:$0xff] %v1516_v13  ;;  %v1537_v39 = vadd.f32 %v2057_v29, %v369_v36  ;;  %v1540_v52 = vadd.f32 %v2058_v25, %v370_v15  ;;  %v1543_v50 = vadd.f32 %v2059_v28, %v371_v30  ;;  %v2061_v36 = vld [vmem:[#allocation15_spill] sm:$0xff]  ;;  %v2062_v15 = vld [vmem:[#allocation16_spill] sm:$0xff]  ;;  %vm554_vm4 = vcmp.gt.f32.partialorder %v1489_v58, 0.0 }
  0xa7   : > { %2052 = vst [vmem:[#allocation8_spill] sm:$0xff] %v1519_v21  ;;  %2054 = vst [vmem:[#allocation9_spill] sm:$0xff] %v1522_v31  ;;  %v1546_v14 = vadd.f32 %v2057_v29, %v372_v8  ;;  %v1549_v37 = vadd.f32 %v2058_v25, %v373_v41  ;;  %v1552_v19 = vadd.f32 %v2059_v28, %v374_v9  ;;  %v2063_v9 = vld [vmem:[#allocation17_spill] sm:$0xff]  ;;  %vm555_vm5 = vcmp.gt.f32.partialorder %v1492_v3, 0.0 }
  0xa8   : > { %2056 = vst [vmem:[#allocation10_spill] sm:$0xff] %v1525_v54  ;;  %v1555_v48 = vadd.f32 %v2060_v12, %v375_v42  ;;  %v1558_v11 = vadd.f32 %v2061_v36, %v376_v6  ;;  %v1561_v18 = vadd.f32 %v2062_v15, %v377_v5  ;;  %v1564_v30 = vadd.f32 %v2060_v12, %v378_v43  ;;  %v2064_v42 = vld [vmem:[#allocation18_spill] sm:$0xff]  ;;  %v2065_v6 = vld [vmem:[#allocation19_spill] sm:$0xff] }
  0xa9   : > { %v1567_v8 = vadd.f32 %v2061_v36, %v379_v44  ;;  %v1570_v41 = vadd.f32 %v2062_v15, %v380_v17  ;;  %v1573_v4 = vadd.f32 %v2063_v9, %v381_v59  ;;  %v1576_v22 = vadd.f32 %v2064_v42, %v382_v60  ;;  %v2066_v17 = vld [vmem:[#allocation20_spill] sm:$0xff]  ;;  %v2067_v59 = vld [vmem:[#allocation21_spill] sm:$0xff]  ;;  %v2068_v60 = vld [vmem:[#allocation22_spill] sm:$0xff] }
  0xaa   : > { %v1579_v47 = vadd.f32 %v2065_v6, %v383_v0  ;;  %v1582_v5 = vadd.f32 %v2063_v9, %v384_v63  ;;  %v1585_v43 = vadd.f32 %v2064_v42, %v385_v20  ;;  %v1588_v44 = vadd.f32 %v2065_v6, %v386_v32  ;;  %v2069_v32 = vld [vmem:[#allocation23_spill] sm:$0xff] }
  0xab   : > { %v1591_v29 = vadd.f32 %v2066_v17, %v387_v1  ;;  %v1594_v25 = vadd.f32 %v2067_v59, %v388_v2  ;;  %v1597_v28 = vadd.f32 %v2068_v60, %v389_v46  ;;  %v1600_v0 = vadd.f32 %v2066_v17, %v390_v27  ;;  %v2070_v1 = vld [vmem:[#allocation24_spill] sm:$0xff]  ;;  %v2071_v2 = vld [vmem:[#allocation25_spill] sm:$0xff] }
  0xac   : > { %v1603_v63 = vadd.f32 %v2067_v59, %v391_v62  ;;  %v1606_v20 = vadd.f32 %v2068_v60, %v392_v61  ;;  %v1609_v12 = vadd.f32 %v2069_v32, %v393_v33  ;;  %v1612_v36 = vadd.f32 %v2070_v1, %v394_v23 }
  0xad   : > { %v1615_v15 = vadd.f32 %v2071_v2, %v395_v56  ;;  %v1618_v46 = vadd.f32 %v2069_v32, %v396_v45  ;;  %v1621_v27 = vadd.f32 %v2070_v1, %v397_v38  ;;  %v600_v62 = vmin.f32 %v1483_v40, 0.0 }
  0xae   : > { %v601_v61 = vmin.f32 %v1486_v53, 0.0  ;;  %v602_v9 = vmin.f32 %v1489_v58, 0.0  ;;  %v603_v33 = vmin.f32 %v1492_v3, 0.0  ;;  %v604_v23 = vmin.f32 %v1495_v49, 0.0 }
  0xaf   : > { %2072 = vst [vmem:[#allocation11_spill] sm:$0xff] %v1615_v15  ;;  %2073 = vst [vmem:[#allocation12_spill] sm:$0xff] %v1618_v46  ;;  %v605_v42 = vmin.f32 %v1498_v34, 0.0  ;;  %v606_v56 = vmin.f32 %v1501_v10, 0.0  ;;  %v607_v45 = vmin.f32 %v1504_v24, 0.0  ;;  %v608_v6 = vmin.f32 %v1507_v16, 0.0 }
  0xb0   : > { %2074 = vst [vmem:[#allocation13_spill] sm:$0xff] %v1621_v27  ;;  %v609_v38 = vmin.f32 %v1510_v35, 0.0  ;;  %v610_v17 = vmin.f32 %v1513_v7, 0.0  ;;  %v611_v59 = vmin.f32 %v1516_v13, 0.0  ;;  %v612_v60 = vmin.f32 %v1519_v21, 0.0 }
  0xb1   : > { %v613_v32 = vmin.f32 %v1522_v31, 0.0  ;;  %v614_v1 = vmin.f32 %v1525_v54, 0.0  ;;  %v1640_v27 = vadd.f32 %v2071_v2, %v1480_v55  ;;  %v648_v46 = vmul.f32 1.442695, %v600_v62 }
  0xb2   : > { %v650_v24 = vmul.f32 1.442695, %v601_v61  ;;  %v652_v15 = vmul.f32 1.442695, %v602_v9  ;;  %v615_v16 = vmin.f32 %v1528_v51, 0.0  ;;  %v616_v35 = vmin.f32 %v1531_v57, 0.0 }
  0xb3   : > { %v617_v7 = vmin.f32 %v1534_v26, 0.0  ;;  %v654_v13 = vmul.f32 1.442695, %v603_v33  ;;  %1057 = vpow2.f32 %v648_v46  ;;  %v656_v54 = vmul.f32 1.442695, %v604_v23 }
  0xb4   : > { %v620_v10 = vmin.f32 %v1543_v50, 0.0  ;;  %1059 = vpow2.f32 %v650_v24  ;;  %v658_v2 = vmul.f32 1.442695, %v605_v42  ;;  %v622_v62 = vmin.f32 %v1549_v37, 0.0  ;;  %v2083_v24 = vld [vmem:[#allocation5_spill] sm:$0xff] }
  0xb5   : > { %1061 = vpow2.f32 %v652_v15  ;;  %v660_v9 = vmul.f32 1.442695, %v606_v56  ;;  %v624_v33 = vmin.f32 %v1555_v48, 0.0  ;;  %v662_v31 = vmul.f32 1.442695, %v607_v45 }
  0xb6   : > { %1063 = vpow2.f32 %v654_v13  ;;  %v626_v46 = vmin.f32 %v1561_v18, 0.0  ;;  %v627_v23 = vmin.f32 %v1564_v30, 0.0  ;;  %v664_v55 = vmul.f32 1.442695, %v608_v6 }
  0xb7   : > { %1065 = vpow2.f32 %v656_v54  ;;  %v666_v61 = vmul.f32 1.442695, %v609_v38  ;;  %v668_v21 = vmul.f32 1.442695, %v610_v17  ;;  %v670_v54 = vmul.f32 1.442695, %v611_v59 }
  0xb8   : > { %1067 = vpow2.f32 %v658_v2  ;;  %v672_v2 = vmul.f32 1.442695, %v612_v60  ;;  %v674_v13 = vmul.f32 1.442695, %v613_v32  ;;  %v676_v6 = vmul.f32 1.442695, %v614_v1 }
  0xb9   : > { %1069 = vpow2.f32 %v660_v9  ;;  %vm556_vm6 = vcmp.gt.f32.partialorder %v1495_v49, 0.0  ;;  %v678_v17 = vmul.f32 1.442695, %v615_v16  ;;  %vm557_vm7 = vcmp.gt.f32.partialorder %v1498_v34, 0.0  ;;  %v2076_v1 = vld [vmem:[#allocation11_spill] sm:$0xff]  ;;  %v2077_v38 = vld [vmem:[#allocation12_spill] sm:$0xff] }
  0xba   : > { %1071 = vpow2.f32 %v662_v31  ;;  %v680_v31 = vmul.f32 1.442695, %v616_v35  ;;  %v2079_v35 = vld [vmem:[#allocation13_spill] sm:$0xff]  ;;  %v2080_v9 = vmin.f32 %v1537_v39, 0.0  ;;  %v2082_v45 = vmin.f32 %v1540_v52, 0.0 }
  0xbb   : > { %1073 = vpow2.f32 %v664_v55  ;;  %v2081_v55 = vld [vmem:[#allocation4_spill] sm:$0xff]  ;;  %vm561_vm11 = vcmp.gt.f32.partialorder %v2083_v24, 0.0 }
  0xbc   : > { %1075 = vpow2.f32 %v666_v61  ;;  %v684_v32 = vmul.f32 1.442695, %v2080_v9  ;;  %vm560_vm10 = vcmp.gt.f32.partialorder %v2081_v55, 0.0  ;;  %v686_v56 = vmul.f32 1.442695, %v2082_v45  ;;  %v2084_v61 = vld [vmem:[#allocation6_spill] sm:$0xff] }
  0xbd   : > { %1077 = vpow2.f32 %v668_v21  ;;  %v2075_v21 = vld [vmem:[#allocation2_spill] sm:$0xff]  ;;  %vm562_vm12 = vcmp.gt.f32.partialorder %v2084_v61, 0.0  ;;  %v2085_v45 = vmin.f32 %v1546_v14, 0.0 }
  0xbe   : > { %1079 = vpow2.f32 %v670_v54  ;;  %vm558_vm8 = vcmp.gt.f32.partialorder %v2075_v21, 0.0  ;;  %v682_v54 = vmul.f32 1.442695, %v617_v7 }
  0xbf   : > { %1081 = vpow2.f32 %v672_v2  ;;  %v2078_v2 = vld [vmem:[#allocation3_spill] sm:$0xff] }
  0xc0   : > { %v1058_v59 = vpop.eup %1057  ;;  %1083 = vpow2.f32 %v674_v13  ;;  %vm559_vm9 = vcmp.gt.f32.partialorder %v2078_v2, 0.0 }
  0xc1   : > { %v1060_v16 = vpop.eup %1059  ;;  %1085 = vpow2.f32 %v676_v6  ;;  %v970_v60 = vadd.f32 -1.0, %v1058_v59  ;;  %v688_v6 = vmul.f32 1.442695, %v620_v10 }
  0xc2   : > { %v1062_v13 = vpop.eup %1061  ;;  %1087 = vpow2.f32 %v678_v17  ;;  %v971_v15 = vadd.f32 -1.0, %v1060_v16  ;;  %v690_v17 = vmul.f32 1.442695, %v2085_v45  ;;  %v2087_v45 = vld [vmem:[#allocation8_spill] sm:$0xff] }
  0xc3   : > { %v1064_v42 = vpop.eup %1063  ;;  %1089 = vpow2.f32 %v680_v31  ;;  %v972_v9 = vadd.f32 -1.0, %v1062_v13  ;;  %v792_v59 = vsel %vm552_vm1, %v1483_v40, %v970_v60  ;;  %v2086_v13 = vld [vmem:[#allocation7_spill] sm:$0xff]  ;;  %v692_v40 = vmul.f32 1.442695, %v622_v62 }
  0xc4   : > { %v1066_v7 = vpop.eup %1065  ;;  %1091 = vpow2.f32 %v682_v54  ;;  %v973_v16 = vadd.f32 -1.0, %v1064_v42  ;;  %v793_v31 = vsel %vm553_vm3, %v1486_v53, %v971_v15  ;;  %840 = vst [vmem:[%s1687_s10] sm:$0xff] %v792_v59  ;;  %vm563_vm13 = vcmp.gt.f32.partialorder %v2086_v13, 0.0 }
  0xc5   : > { %v1068_v10 = vpop.eup %1067  ;;  %1093 = vpow2.f32 %v684_v32  ;;  %v974_v60 = vadd.f32 -1.0, %v1066_v7  ;;  %v794_v54 = vsel %vm554_vm4, %v1489_v58, %v972_v9  ;;  %841 = vst [vmem:[%s1687_s10 + $0x8] sm:$0xff] %v793_v31  ;;  %vm564_vm14 = vcmp.gt.f32.partialorder %v2087_v45, 0.0  ;;  %v2089_v7 = vld [vmem:[#allocation9_spill] sm:$0xff] }
  0xc6   : > { %v1070_v42 = vpop.eup %1069  ;;  %1095 = vpow2.f32 %v686_v56  ;;  %v2088_v53 = vmin.f32 %v1552_v19, 0.0  ;;  %v975_v59 = vadd.f32 -1.0, %v1068_v10  ;;  %v795_v62 = vsel %vm555_vm5, %v1492_v3, %v973_v16  ;;  %843 = vst.msk [vmem:[%s1687_s10 + $0x10] sm:$0xff] %vm842_vm2, %v794_v54  ;;  %v2090_v10 = vld [vmem:[#allocation10_spill] sm:$0xff] }
  0xc7   : > { %v1072_v32 = vpop.eup %1071  ;;  %vm565_vm15 = vcmp.gt.f32.partialorder %v2089_v7, 0.0  ;;  %1097 = vpow2.f32 %v688_v6  ;;  %v696_v58 = vmul.f32 1.442695, %v624_v33  ;;  %v976_v9 = vadd.f32 -1.0, %v1070_v42  ;;  %844 = vst [vmem:[%s1687_s10 + $0x18] sm:$0xff] %v795_v62 }
  0xc8   : > { %v694_v15 = vmul.f32 1.442695, %v2088_v53  ;;  %v796_v56 = vsel %vm556_vm6, %v1495_v49, %v974_v60  ;;  %v1074_v31 = vpop.eup %1073  ;;  %vm566_vm0 = vcmp.gt.f32.partialorder %v2090_v10, 0.0  ;;  %1099 = vpow2.f32 %v690_v17 }
  0xc9   : > { %v2091_v3 = vmin.f32 %v1558_v11, 0.0  ;;  %v977_v54 = vadd.f32 -1.0, %v1072_v32  ;;  %v797_v33 = vsel %vm557_vm7, %v1498_v34, %v975_v59  ;;  %845 = vst [vmem:[%s1687_s10 + $0x20] sm:$0xff] %v796_v56  ;;  %v1076_v6 = vpop.eup %1075  ;;  %vm567_vm1 = vcmp.gt.f32.partialorder %v1528_v51, 0.0 }
  0xca   : > { %1101 = vpow2.f32 %v692_v40  ;;  %v700_v49 = vmul.f32 1.442695, %v626_v46  ;;  %v978_v60 = vadd.f32 -1.0, %v1074_v31  ;;  %v798_v17 = vsel %vm558_vm8, %v2075_v21, %v976_v9  ;;  %846 = vst.msk [vmem:[%s1687_s10 + $0x28] sm:$0xff] %vm842_vm2, %v797_v33  ;;  %v1078_v42 = vpop.eup %1077 }
  0xcb   : > { %v698_v16 = vmul.f32 1.442695, %v2091_v3  ;;  %vm568_vm3 = vcmp.gt.f32.partialorder %v1531_v57, 0.0  ;;  %1103 = vpow2.f32 %v694_v15  ;;  %v702_v34 = vmul.f32 1.442695, %v627_v23  ;;  %847 = vst [vmem:[%s1687_s10 + $0x30] sm:$0xff] %v798_v17  ;;  %v1080_v40 = vpop.eup %1079 }
  0xcc   : > { %v979_v53 = vadd.f32 -1.0, %v1076_v6  ;;  %v799_v46 = vsel %vm559_vm9, %v2078_v2, %v977_v54  ;;  %vm569_vm4 = vcmp.gt.f32.partialorder %v1534_v26, 0.0  ;;  %1105 = vpow2.f32 %v696_v58  ;;  %v1082_v15 = vpop.eup %1081 }
  0xcd   : > { %v2092_v21 = vmin.f32 %v1567_v8, 0.0  ;;  %v980_v62 = vadd.f32 -1.0, %v1078_v42  ;;  %v800_v23 = vsel %vm560_vm10, %v2081_v55, %v978_v60  ;;  %848 = vst [vmem:[%s1687_s10 + $0x38] sm:$0xff] %v799_v46  ;;  %vm570_vm5 = vcmp.gt.f32.partialorder %v1537_v39, 0.0  ;;  %v1084_v56 = vpop.eup %1083 }
  0xce   : > { %1107 = vpow2.f32 %v698_v16  ;;  %v2093_v2 = vmin.f32 %v1570_v41, 0.0  ;;  %v981_v9 = vadd.f32 -1.0, %v1080_v40  ;;  %v801_v58 = vsel %vm561_vm11, %v2083_v24, %v979_v53  ;;  %849 = vst.msk [vmem:[%s1687_s10 + $0x40] sm:$0xff] %vm842_vm2, %v800_v23  ;;  %v1086_v54 = vpop.eup %1085 }
  0xcf   : > { %v704_v59 = vmul.f32 1.442695, %v2092_v21  ;;  %vm571_vm6 = vcmp.gt.f32.partialorder %v1540_v52, 0.0  ;;  %1109 = vpow2.f32 %v700_v49  ;;  %v2094_v55 = vmin.f32 %v1573_v4, 0.0  ;;  %850 = vst [vmem:[%s1687_s10 + $0x48] sm:$0xff] %v801_v58  ;;  %v1088_v60 = vpop.eup %1087 }
  0xd0   : > { %v706_v32 = vmul.f32 1.442695, %v2093_v2  ;;  %v982_v3 = vadd.f32 -1.0, %v1082_v15  ;;  %v802_v16 = vsel %vm562_vm12, %v2084_v61, %v980_v62  ;;  %vm572_vm7 = vcmp.gt.f32.partialorder %v1543_v50, 0.0  ;;  %v1090_v53 = vpop.eup %1089 }
  0xd1   : > { %v708_v31 = vmul.f32 1.442695, %v2094_v55  ;;  %1111 = vpow2.f32 %v702_v34  ;;  %v2095_v24 = vmin.f32 %v1576_v22, 0.0  ;;  %v983_v6 = vadd.f32 -1.0, %v1084_v56  ;;  %851 = vst [vmem:[%s1687_s10 + $0x50] sm:$0xff] %v802_v16 }
  0xd2   : > { %v803_v49 = vsel %vm563_vm13, %v2086_v13, %v981_v9  ;;  %vm573_vm8 = vcmp.gt.f32.partialorder %v1546_v14, 0.0  ;;  %1113 = vpow2.f32 %v704_v59  ;;  %v2096_v61 = vmin.f32 %v1579_v47, 0.0  ;;  %v1092_v59 = vpop.eup %1091 }
  0xd3   : > { %v710_v33 = vmul.f32 1.442695, %v2095_v24  ;;  %v984_v42 = vadd.f32 -1.0, %v1086_v54  ;;  %v804_v34 = vsel %vm564_vm14, %v2087_v45, %v982_v3  ;;  %852 = vst.msk [vmem:[%s1687_s10 + $0x58] sm:$0xff] %vm842_vm2, %v803_v49  ;;  %vm574_vm9 = vcmp.gt.f32.partialorder %v1549_v37, 0.0  ;;  %v1094_v2 = vpop.eup %1093 }
  0xd4   : > { %v712_v17 = vmul.f32 1.442695, %v2096_v61  ;;  %1115 = vpow2.f32 %v706_v32  ;;  %v2097_v13 = vmin.f32 %v1582_v5, 0.0  ;;  %v985_v40 = vadd.f32 -1.0, %v1088_v60  ;;  %853 = vst [vmem:[%s1687_s10 + $0x60] sm:$0xff] %v804_v34  ;;  %v1096_v56 = vpop.eup %1095 }
  0xd5   : > { %v805_v21 = vsel %vm565_vm15, %v2089_v7, %v983_v6  ;;  %vm575_vm10 = vcmp.gt.f32.partialorder %v1552_v19, 0.0  ;;  %1117 = vpow2.f32 %v708_v31  ;;  %v2098_v45 = vmin.f32 %v1585_v43, 0.0  ;;  %v1098_v16 = vpop.eup %1097 }
  0xd6   : > { %v714_v46 = vmul.f32 1.442695, %v2097_v13  ;;  %v986_v23 = vadd.f32 -1.0, %v1090_v53  ;;  %v806_v15 = vsel %vm566_vm0, %v2090_v10, %v984_v42  ;;  %854 = vst [vmem:[%s1687_s10 + $0x68] sm:$0xff] %v805_v21  ;;  %vm576_vm11 = vcmp.gt.f32.partialorder %v1555_v48, 0.0  ;;  %v1100_v6 = vpop.eup %1099 }
  0xd7   : > { %v716_v62 = vmul.f32 1.442695, %v2098_v45  ;;  %1119 = vpow2.f32 %v710_v33  ;;  %v2099_v7 = vmin.f32 %v1588_v44, 0.0  ;;  %v987_v9 = vadd.f32 -1.0, %v1092_v59  ;;  %855 = vst.msk [vmem:[%s1687_s10 + $0x70] sm:$0xff] %vm842_vm2, %v806_v15 }
  0xd8   : > { %v807_v58 = vsel %vm567_vm1, %v1528_v51, %v985_v40  ;;  %vm577_vm12 = vcmp.gt.f32.partialorder %v1558_v11, 0.0  ;;  %1121 = vpow2.f32 %v712_v17  ;;  %v2100_v10 = vmin.f32 %v1591_v29, 0.0  ;;  %v1102_v17 = vpop.eup %1101 }
  0xd9   : > { %v718_v32 = vmul.f32 1.442695, %v2099_v7  ;;  %v988_v31 = vadd.f32 -1.0, %v1094_v2  ;;  %v808_v3 = vsel %vm568_vm3, %v1531_v57, %v986_v23  ;;  %856 = vst [vmem:[%s1687_s10 + $0x78] sm:$0xff] %v807_v58  ;;  %vm578_vm13 = vcmp.gt.f32.partialorder %v1561_v18, 0.0  ;;  %v1104_v13 = vpop.eup %1103 }
  0xda   : > { %v720_v55 = vmul.f32 1.442695, %v2100_v10  ;;  %1123 = vpow2.f32 %v714_v46  ;;  %v2101_v51 = vmin.f32 %v1594_v25, 0.0  ;;  %v989_v24 = vadd.f32 -1.0, %v1096_v56  ;;  %857 = vst [vmem:[%s1687_s10 + $0x80] sm:$0xff] %v808_v3  ;;  %v1106_v59 = vpop.eup %1105 }
  0xdb   : > { %v809_v33 = vsel %vm569_vm4, %v1534_v26, %v987_v9  ;;  %vm579_vm14 = vcmp.gt.f32.partialorder %v1564_v30, 0.0  ;;  %1125 = vpow2.f32 %v716_v62  ;;  %v2102_v57 = vmin.f32 %v1597_v28, 0.0  ;;  %v1108_v15 = vpop.eup %1107 }
  0xdc   : > { %v722_v54 = vmul.f32 1.442695, %v2101_v51  ;;  %v990_v60 = vadd.f32 -1.0, %v1098_v16  ;;  %v810_v61 = vsel %vm570_vm5, %v1537_v39, %v988_v31  ;;  %858 = vst.msk [vmem:[%s1687_s10 + $0x88] sm:$0xff] %vm842_vm2, %v809_v33  ;;  %vm580_vm15 = vcmp.gt.f32.partialorder %v1567_v8, 0.0  ;;  %v1110_v9 = vpop.eup %1109 }
  0xdd   : > { %v724_v49 = vmul.f32 1.442695, %v2102_v57  ;;  %1127 = vpow2.f32 %v718_v32  ;;  %v2103_v26 = vmin.f32 %v1600_v0, 0.0  ;;  %v991_v34 = vadd.f32 -1.0, %v1100_v6  ;;  %859 = vst [vmem:[%s1687_s10 + $0x90] sm:$0xff] %v810_v61 }
  0xde   : > { %v811_v53 = vsel %vm571_vm6, %v1540_v52, %v989_v24  ;;  %1129 = vpow2.f32 %v720_v55  ;;  %v2104_v39 = vmin.f32 %v1603_v63, 0.0  ;;  %v992_v40 = vadd.f32 -1.0, %v1102_v17  ;;  %v1112_v55 = vpop.eup %1111 }
  0xdf   : > { %v726_v42 = vmul.f32 1.442695, %v2103_v26  ;;  %v812_v21 = vsel %vm572_vm7, %v1543_v50, %v990_v60  ;;  %860 = vst [vmem:[%s1687_s10 + $0x98] sm:$0xff] %v811_v53  ;;  %1131 = vpow2.f32 %v722_v54  ;;  %v2105_v45 = vmin.f32 %v1606_v20, 0.0  ;;  %v1114_v51 = vpop.eup %1113 }
  0xe0   : > { %v728_v46 = vmul.f32 1.442695, %v2104_v39  ;;  %v993_v52 = vadd.f32 -1.0, %v1104_v13  ;;  %v813_v23 = vsel %vm573_vm8, %v1546_v14, %v991_v34  ;;  %861 = vst.msk [vmem:[%s1687_s10 + $0xa0] sm:$0xff] %vm842_vm2, %v812_v21  ;;  %1133 = vpow2.f32 %v724_v49 }
  0xe1   : > { %v730_v62 = vmul.f32 1.442695, %v2105_v45  ;;  %v2106_v2 = vmin.f32 %v1609_v12, 0.0  ;;  %v994_v7 = vadd.f32 -1.0, %v1106_v59  ;;  %v814_v32 = vsel %vm574_vm9, %v1549_v37, %v992_v40  ;;  %862 = vst [vmem:[%s1687_s10 + $0xa8] sm:$0xff] %v813_v23  ;;  %v1116_v6 = vpop.eup %1115 }
  0xe2   : > { %1135 = vpow2.f32 %v726_v42  ;;  %v2107_v58 = vmin.f32 %v1612_v36, 0.0  ;;  %v995_v56 = vadd.f32 -1.0, %v1108_v15  ;;  %v815_v10 = vsel %vm575_vm10, %v1552_v19, %v993_v52  ;;  %863 = vst [vmem:[%s1687_s10 + $0xb0] sm:$0xff] %v814_v32  ;;  %v1118_v61 = vpop.eup %1117 }
  0xe3   : > { %v732_v50 = vmul.f32 1.442695, %v2106_v2  ;;  %1137 = vpow2.f32 %v728_v46  ;;  %v2108_v31 = vmin.f32 %v2076_v1, 0.0  ;;  %v996_v37 = vadd.f32 -1.0, %v1110_v9  ;;  %864 = vst.msk [vmem:[%s1687_s10 + $0xb8] sm:$0xff] %vm842_vm2, %v815_v10 }
  0xe4   : > { %v734_v14 = vmul.f32 1.442695, %v2107_v58  ;;  %v816_v16 = vsel %vm576_vm11, %v1555_v48, %v994_v7  ;;  %1139 = vpow2.f32 %v730_v62  ;;  %v2109_v54 = vmin.f32 %v2077_v38, 0.0  ;;  %v1120_v34 = vpop.eup %1119 }
  0xe5   : > { %v736_v3 = vmul.f32 1.442695, %v2108_v31  ;;  %v997_v24 = vadd.f32 -1.0, %v1112_v55  ;;  %v817_v33 = vsel %vm577_vm12, %v1558_v11, %v995_v56  ;;  %865 = vst [vmem:[%s1687_s10 + $0xc0] sm:$0xff] %v816_v16  ;;  %1141 = vpow2.f32 %v732_v50  ;;  %v1122_v13 = vpop.eup %1121 }
  0xe6   : > { %v738_v19 = vmul.f32 1.442695, %v2109_v54  ;;  %v2110_v57 = vmin.f32 %v2079_v35, 0.0  ;;  %v998_v49 = vadd.f32 -1.0, %v1114_v51  ;;  %v818_v60 = vsel %vm578_vm13, %v1561_v18, %v996_v37  ;;  %866 = vst [vmem:[%s1687_s10 + $0xc8] sm:$0xff] %v817_v33 }
  0xe7   : > { %1143 = vpow2.f32 %v734_v14  ;;  %v2111_v17 = vmin.f32 %v1640_v27, 0.0  ;;  %v999_v11 = vadd.f32 -1.0, %v1116_v6  ;;  %v819_v42 = vsel %vm579_vm14, %v1564_v30, %v997_v24  ;;  %867 = vst.msk [vmem:[%s1687_s10 + $0xd0] sm:$0xff] %vm842_vm2, %v818_v60  ;;  %v1124_v46 = vpop.eup %1123 }
  0xe8   : > { %v740_v48 = vmul.f32 1.442695, %v2110_v57  ;;  %vm581_vm0 = vcmp.gt.f32.partialorder %v1570_v41, 0.0  ;;  %1145 = vpow2.f32 %v736_v3  ;;  %v1000_v18 = vadd.f32 -1.0, %v1118_v61  ;;  %868 = vst [vmem:[%s1687_s10 + $0xd8] sm:$0xff] %v819_v42 }
  0xe9   : > { %v742_v26 = vmul.f32 1.442695, %v2111_v17  ;;  %v820_v53 = vsel %vm580_vm15, %v1567_v8, %v998_v49  ;;  %vm582_vm1 = vcmp.gt.f32.partialorder %v1573_v4, 0.0  ;;  %1147 = vpow2.f32 %v738_v19  ;;  %v1126_v8 = vpop.eup %1125 }
  0xea   : > { %v1001_v39 = vadd.f32 -1.0, %v1120_v34  ;;  %v821_v30 = vsel %vm581_vm0, %v1570_v41, %v999_v11  ;;  %869 = vst [vmem:[%s1687_s10 + $0xe0] sm:$0xff] %v820_v53  ;;  %vm583_vm3 = vcmp.gt.f32.partialorder %v1576_v22, 0.0  ;;  %1149 = vpow2.f32 %v740_v48  ;;  %v1128_v41 = vpop.eup %1127 }
  0xeb   : > { %v1002_v40 = vadd.f32 -1.0, %v1122_v13  ;;  %v822_v21 = vsel %vm582_vm1, %v1573_v4, %v1000_v18  ;;  %870 = vst.msk [vmem:[%s1687_s10 + $0xe8] sm:$0xff] %vm842_vm2, %v821_v30  ;;  %vm584_vm4 = vcmp.gt.f32.partialorder %v1579_v47, 0.0  ;;  %1151 = vpow2.f32 %v742_v26  ;;  %v1130_v4 = vpop.eup %1129 }
  0xec   : > { %v1003_v59 = vadd.f32 -1.0, %v1124_v46  ;;  %v823_v45 = vsel %vm583_vm3, %v1576_v22, %v1001_v39  ;;  %871 = vst [vmem:[%s1687_s10 + $0xf0] sm:$0xff] %v822_v21  ;;  %vm585_vm5 = vcmp.gt.f32.partialorder %v1582_v5, 0.0  ;;  %v1004_v62 = vadd.f32 -1.0, %v1126_v8  ;;  %v1132_v22 = vpop.eup %1131 }
  0xed   : > { %v824_v52 = vsel %vm584_vm4, %v1579_v47, %v1002_v40  ;;  %872 = vst [vmem:[%s1687_s10 + $0xf8] sm:$0xff] %v823_v45  ;;  %vm586_vm6 = vcmp.gt.f32.partialorder %v1585_v43, 0.0  ;;  %v1005_v23 = vadd.f32 -1.0, %v1128_v41  ;;  %vm587_vm7 = vcmp.gt.f32.partialorder %v1588_v44, 0.0  ;;  %v1134_v47 = vpop.eup %1133 }
  0xee   : > { %v825_v15 = vsel %vm585_vm5, %v1582_v5, %v1003_v59  ;;  %873 = vst.msk [vmem:[%s1687_s10 + $0x100] sm:$0xff] %vm842_vm2, %v824_v52  ;;  %v1006_v2 = vadd.f32 -1.0, %v1130_v4  ;;  %v826_v50 = vsel %vm586_vm6, %v1585_v43, %v1004_v62  ;;  %vm588_vm8 = vcmp.gt.f32.partialorder %v1591_v29, 0.0 }
  0xef   : > { %874 = vst [vmem:[%s1687_s10 + $0x108] sm:$0xff] %v825_v15  ;;  %v1007_v7 = vadd.f32 -1.0, %v1132_v22  ;;  %v827_v32 = vsel %vm587_vm7, %v1588_v44, %v1005_v23  ;;  %875 = vst [vmem:[%s1687_s10 + $0x110] sm:$0xff] %v826_v50  ;;  %v1136_v5 = vpop.eup %1135  ;;  %vm589_vm9 = vcmp.gt.f32.partialorder %v1594_v25, 0.0  ;;  %v1008_v9 = vadd.f32 -1.0, %v1134_v47 }
  0xf0   : > { %v828_v58 = vsel %vm588_vm8, %v1591_v29, %v1006_v2  ;;  %876 = vst.msk [vmem:[%s1687_s10 + $0x118] sm:$0xff] %vm842_vm2, %v827_v32  ;;  %v1138_v43 = vpop.eup %1137  ;;  %vm590_vm10 = vcmp.gt.f32.partialorder %v1597_v28, 0.0  ;;  %v1009_v14 = vadd.f32 -1.0, %v1136_v5  ;;  %vm591_vm11 = vcmp.gt.f32.partialorder %v1600_v0, 0.0 }
  0xf1   : > { %v829_v56 = vsel %vm589_vm9, %v1594_v25, %v1007_v7  ;;  %877 = vst [vmem:[%s1687_s10 + $0x120] sm:$0xff] %v828_v58  ;;  %v1140_v44 = vpop.eup %1139  ;;  %v1010_v10 = vadd.f32 -1.0, %v1138_v43  ;;  %v830_v55 = vsel %vm590_vm10, %v1597_v28, %v1008_v9  ;;  %vm592_vm12 = vcmp.gt.f32.partialorder %v1603_v63, 0.0 }
  0xf2   : > { %878 = vst [vmem:[%s1687_s10 + $0x128] sm:$0xff] %v829_v56  ;;  %v1142_v29 = vpop.eup %1141  ;;  %v1011_v31 = vadd.f32 -1.0, %v1140_v44  ;;  %v831_v3 = vsel %vm591_vm11, %v1600_v0, %v1009_v14  ;;  %879 = vst.msk [vmem:[%s1687_s10 + $0x130] sm:$0xff] %vm842_vm2, %v830_v55  ;;  %vm593_vm13 = vcmp.gt.f32.partialorder %v1606_v20, 0.0  ;;  %vm594_vm14 = vcmp.gt.f32.partialorder %v1609_v12, 0.0 }
  0xf3   : > { %v1012_v37 = vadd.f32 -1.0, %v1142_v29  ;;  %v832_v16 = vsel %vm592_vm12, %v1603_v63, %v1010_v10  ;;  %880 = vst [vmem:[%s1687_s10 + $0x138] sm:$0xff] %v831_v3  ;;  %vm595_vm15 = vcmp.gt.f32.partialorder %v1612_v36, 0.0  ;;  %vm596_vm0 = vcmp.gt.f32.partialorder %v2076_v1, 0.0 }
  0xf4   : > { %v1144_v25 = vpop.eup %1143  ;;  %v833_v54 = vsel %vm593_vm13, %v1606_v20, %v1011_v31  ;;  %881 = vst [vmem:[%s1687_s10 + $0x140] sm:$0xff] %v832_v16  ;;  %vm597_vm1 = vcmp.gt.f32.partialorder %v2077_v38, 0.0  ;;  %vm598_vm3 = vcmp.gt.f32.partialorder %v2079_v35, 0.0  ;;  %vm599_vm4 = vcmp.gt.f32.partialorder %v1640_v27, 0.0 }
  0xf5   : > { %v1146_v28 = vpop.eup %1145  ;;  %v1013_v51 = vadd.f32 -1.0, %v1144_v25  ;;  %v834_v24 = vsel %vm594_vm14, %v1609_v12, %v1012_v37  ;;  %882 = vst.msk [vmem:[%s1687_s10 + $0x148] sm:$0xff] %vm842_vm2, %v833_v54 }
  0xf6   : > { %v1148_v0 = vpop.eup %1147  ;;  %v1014_v19 = vadd.f32 -1.0, %v1146_v28  ;;  %883 = vst [vmem:[%s1687_s10 + $0x150] sm:$0xff] %v834_v24 }
  0xf7   : > { %v1150_v63 = vpop.eup %1149  ;;  %v1015_v33 = vadd.f32 -1.0, %v1148_v0  ;;  %v835_v6 = vsel %vm595_vm15, %v1612_v36, %v1013_v51 }
  0xf8   : > { %v1152_v20 = vpop.eup %1151  ;;  %v1016_v57 = vadd.f32 -1.0, %v1150_v63  ;;  %v836_v48 = vsel %vm596_vm0, %v2076_v1, %v1014_v19  ;;  %884 = vst [vmem:[%s1687_s10 + $0x158] sm:$0xff] %v835_v6 }
  0xf9   : > { %v1017_v12 = vadd.f32 -1.0, %v1152_v20  ;;  %v837_v49 = vsel %vm597_vm1, %v2077_v38, %v1015_v33  ;;  %885 = vst.msk [vmem:[%s1687_s10 + $0x160] sm:$0xff] %vm842_vm2, %v836_v48 }
  0xfa   : > { %v838_v36 = vsel %vm598_vm3, %v2079_v35, %v1016_v57  ;;  %886 = vst [vmem:[%s1687_s10 + $0x168] sm:$0xff] %v837_v49 }
  0xfb   : > { %v839_v60 = vsel %vm599_vm4, %v1640_v27, %v1017_v12  ;;  %887 = vst [vmem:[%s1687_s10 + $0x170] sm:$0xff] %v838_v36 }
  0xfc   : > { %888 = vst.msk [vmem:[%s1687_s10 + $0x178] sm:$0xff] %vm842_vm2, %v839_v60 }
  0xfd PF: > { %s14_s15 = sadd.s32 1, %s1159_s15  }
  0xfe   : > { %p11_p4 = scmp.ge.s32.totalorder %s14_s15, 6  }
 0x100   :  { %13 = sbr.rel (!%p11_p4) target bundleno = 1 (0x1), region = 69 }

</bundles_post_ra>
